<compile_context>
chip_gen: v5e
topology: v5e:2x2
jax: 0.10.0
libtpu: 0.0.40
codegen_flags: <defaults>
</compile_context>

<pallas_src>
import jax
import jax.numpy as jnp
from jax import lax
from jax.experimental import pallas as pl
from jax.experimental.pallas import tpu as pltpu

HIDDEN = 50
HIDDEN_PAD = 128   # lane-dense padding of the hidden dim
N_STEPS = 10       # fixed-step RK4 steps over [0, 1]


def _neural_ode_kernel(y_ref, w1_ref, b1_ref, w2_ref, b2_ref,
                       w21_ref, bw1_ref, out_ref):
    """Runs the full RK4 integration of the ODEFunc MLP in VMEM."""
    b_tile, d = y_ref.shape

    w1 = w1_ref[...]     # [D, H_PAD]
    w2 = w2_ref[...]     # [H_PAD, D]
    w21 = w21_ref[...]   # [H_PAD, H_PAD]  (= W2 @ W1, pre-fused in wrapper)

    small_tile = b_tile <= 64
    if small_tile:
        # Hoist bias broadcasts (JAX does not CSE broadcast_in_dim); cheap in
        # vregs at small b_tile and avoids re-emitting them 40+ times.
        b1v = jnp.broadcast_to(b1_ref[...], (b_tile, HIDDEN_PAD))
        b2v = jnp.broadcast_to(b2_ref[...], (b_tile, d))
        bw1v = jnp.broadcast_to(bw1_ref[...], (b_tile, HIDDEN_PAD))
    else:
        # Wide tiles: per-use implicit sublane broadcast (VPU filler, relieves
        # vreg pressure across the unrolled chain).
        b1v = b1_ref[...]
        b2v = b2_ref[...]
        bw1v = bw1_ref[...]

    dt = jnp.float32(1.0 / N_STEPS)
    half_dt = jnp.float32(0.5 / N_STEPS)
    sixth_dt = jnp.float32(1.0 / (6.0 * N_STEPS))

    def g(p):
        # Pre-activation increment: k_i @ W1 = relu(p) @ (W2@W1) + b2@W1.
        # These 4 matmuls per RK4 step are the only ones on the critical path.
        return jnp.dot(jnp.maximum(p, 0.0), w21,
                       preferred_element_type=jnp.float32) + bw1v

    def k_of(p):
        # k_i = relu(p_i) @ W2 + b2  -- off the critical path, only feeds the
        # final y-combine of the step.
        return jnp.dot(jnp.maximum(p, 0.0), w2,
                       preferred_element_type=jnp.float32) + b2v

    y0 = y_ref[...]
    p1_0 = jnp.dot(y0, w1, preferred_element_type=jnp.float32) + b1v

    def rk4_step(_, carry):
        y, p1 = carry
        g1 = g(p1)
        p2 = p1 + half_dt * g1
        g2 = g(p2)
        p3 = p1 + half_dt * g2
        g3 = g(p3)
        p4 = p1 + dt * g3
        g4 = g(p4)
        # Next step's pre-activation directly (= y_next @ W1 + b1, exactly).
        p1_next = p1 + sixth_dt * (g1 + 2.0 * g2 + 2.0 * g3 + g4)
        k1 = k_of(p1)
        k2 = k_of(p2)
        k3 = k_of(p3)
        k4 = k_of(p4)
        y_next = y + sixth_dt * (k1 + 2.0 * k2 + 2.0 * k3 + k4)
        return (y_next, p1_next)

    # Full unroll only in the tiny latency-bound regime; visible loop at wide
    # tiles to keep live ranges (and spills) bounded.
    y1, _ = lax.fori_loop(0, N_STEPS, rk4_step, (y0, p1_0),
                          unroll=bool(small_tile))
    out_ref[...] = y1.astype(out_ref.dtype)


def neural_ode_forward(x, w1, b1, w2, b2, *, b_tile=None):
    """x: [B, D] float32.  w1:[D,50], b1:[1,50], w2:[50,D], b2:[1,D].
    Returns the ODE state at t=1, shape [B, D]."""
    B, D = x.shape
    h = w1.shape[1]

    # Zero-pad hidden dim to HIDDEN_PAD (exactly equivalent through ReLU:
    # padded hidden lanes stay identically 0 throughout the integration).
    if h < HIDDEN_PAD:
        pad = HIDDEN_PAD - h
        w1 = jnp.pad(w1, ((0, 0), (0, pad)))
        b1 = jnp.pad(b1, ((0, 0), (0, pad)))
        w2 = jnp.pad(w2, ((0, pad), (0, 0)))

    # Pre-fuse (one tiny one-time matmul outside the kernel): shortens the
    # in-kernel dependent chain from 8 to 4 matmuls per RK4 step.
    w21 = jnp.dot(w2, w1, preferred_element_type=jnp.float32)   # [H_PAD, H_PAD]
    bw1 = jnp.dot(b2, w1, preferred_element_type=jnp.float32)   # [1, H_PAD]

    if b_tile is None:
        if B <= 256:
            b_tile = B                      # one wide tile
        else:
            b_tile = B
            for cand in (256, 128, 64, 32, 16, 8):
                if B % cand == 0:
                    b_tile = cand
                    break
    assert B % b_tile == 0, "batch must be divisible by b_tile"
    assert b_tile % 8 == 0 or b_tile == B, \
        "b_tile must be a multiple of 8 (sublane) or equal to B"
    grid = (B // b_tile,)

    # Per RK4 step: 4 matmuls [b,H]@[H,H] + 4 matmuls [b,H]@[H,D]; plus one
    # initial [b,D]@[D,H].
    flops = N_STEPS * 8 * B * HIDDEN_PAD * (HIDDEN_PAD + D) + 2 * B * D * HIDDEN_PAD
    bytes_accessed = 4 * (2 * B * D + w1.size + b1.size + w2.size + b2.size
                          + w21.size + bw1.size)

    return pl.pallas_call(
        _neural_ode_kernel,
        out_shape=jax.ShapeDtypeStruct((B, D), x.dtype),
        grid_spec=pltpu.PrefetchScalarGridSpec(
            num_scalar_prefetch=0,
            grid=grid,
            in_specs=[
                pl.BlockSpec((b_tile, D), lambda i: (i, 0)),             # x tile
                pl.BlockSpec((D, HIDDEN_PAD), lambda i: (0, 0)),         # w1
                pl.BlockSpec((1, HIDDEN_PAD), lambda i: (0, 0)),         # b1
                pl.BlockSpec((HIDDEN_PAD, D), lambda i: (0, 0)),         # w2
                pl.BlockSpec((1, D), lambda i: (0, 0)),                  # b2
                pl.BlockSpec((HIDDEN_PAD, HIDDEN_PAD), lambda i: (0, 0)),# w21
                pl.BlockSpec((1, HIDDEN_PAD), lambda i: (0, 0)),         # bW1
            ],
            out_specs=pl.BlockSpec((b_tile, D), lambda i: (i, 0)),
        ),
        compiler_params=pltpu.CompilerParams(
            dimension_semantics=("parallel",)),
        cost_estimate=pl.CostEstimate(
            flops=flops, transcendentals=0, bytes_accessed=bytes_accessed),
    )(x, w1, b1, w2, b2, w21, bw1)


def init_params(input_dim, key):
    """Deterministic init matching nn.Linear shapes (stored pre-transposed)."""
    k1, k2, k3, k4 = jax.random.split(key, 4)
    lim1 = 1.0 / jnp.sqrt(jnp.float32(input_dim))
    lim2 = 1.0 / jnp.sqrt(jnp.float32(HIDDEN))
    # PyTorch Linear weight is [out, in]; we store transposed [in, out].
    w1 = jax.random.uniform(k1, (input_dim, HIDDEN), jnp.float32, -lim1, lim1)
    b1 = jax.random.uniform(k2, (1, HIDDEN), jnp.float32, -lim1, lim1)
    w2 = jax.random.uniform(k3, (HIDDEN, input_dim), jnp.float32, -lim2, lim2)
    b2 = jax.random.uniform(k4, (1, input_dim), jnp.float32, -lim2, lim2)
    return w1, b1, w2, b2


def reference_forward(x, w1, b1, w2, b2):
    """Pure-JAX reference of the same fixed-step RK4 integration (unfused)."""
    def f(y):
        h = jnp.maximum(y @ w1 + b1, 0.0)
        return h @ w2 + b2

    dt = 1.0 / N_STEPS
    y = x
    for _ in range(N_STEPS):
        k1 = f(y)
        k2 = f(y + 0.5 * dt * k1)
        k3 = f(y + 0.5 * dt * k2)
        k4 = f(y + dt * k3)
        y = y + (dt / 6.0) * (k1 + 2.0 * k2 + 2.0 * k3 + k4)
    return y


if __name__ == "__main__":
    key = jax.random.PRNGKey(0)
    kx, kp = jax.random.split(key)

    B, D = 8, 32
    x = jax.random.normal(kx, (B, D), dtype=jnp.float32)
    w1, b1, w2, b2 = init_params(D, kp)

    out = neural_ode_forward(x, w1, b1, w2, b2)
    out = jax.block_until_ready(out)

    ref = reference_forward(x, w1, b1, w2, b2)
    assert out.shape == (B, D)
    assert jnp.allclose(out, ref, atol=1e-4, rtol=1e-4), "mismatch vs reference"

    print("KERNEL_OK")
</pallas_src>

<mosaic_0001>
module attributes {stable_mosaic.version = 11 : i64} {
  func.func @_neural_ode_kernel(%arg0: i32, %arg1: memref<8x32xf32, #tpu.memory_space<vmem>>, %arg2: memref<32x128xf32, #tpu.memory_space<vmem>>, %arg3: memref<1x128xf32, #tpu.memory_space<vmem>>, %arg4: memref<128x32xf32, #tpu.memory_space<vmem>>, %arg5: memref<1x32xf32, #tpu.memory_space<vmem>>, %arg6: memref<128x128xf32, #tpu.memory_space<vmem>>, %arg7: memref<1x128xf32, #tpu.memory_space<vmem>>, %arg8: memref<8x32xf32, #tpu.memory_space<vmem>>) attributes {dimension_semantics = [#tpu.dimension_semantics<parallel>], iteration_bounds = array<i64: 1>, scalar_prefetch = 0 : i64, scratch_operands = 0 : i64, tpu.core_type = #tpu.core_type<tc>, window_params = [{transform_indices = @transform_0, window_bounds = array<i64: 8, 32>}, {pipeline_mode = #tpu.pipeline_mode<synchronous>, transform_indices = @transform_1, window_bounds = array<i64: 32, 128>}, {pipeline_mode = #tpu.pipeline_mode<synchronous>, transform_indices = @transform_2, window_bounds = array<i64: 1, 128>}, {pipeline_mode = #tpu.pipeline_mode<synchronous>, transform_indices = @transform_3, window_bounds = array<i64: 128, 32>}, {pipeline_mode = #tpu.pipeline_mode<synchronous>, transform_indices = @transform_4, window_bounds = array<i64: 1, 32>}, {pipeline_mode = #tpu.pipeline_mode<synchronous>, transform_indices = @transform_5, window_bounds = array<i64: 128, 128>}, {pipeline_mode = #tpu.pipeline_mode<synchronous>, transform_indices = @transform_6, window_bounds = array<i64: 1, 128>}, {transform_indices = @transform_7, window_bounds = array<i64: 8, 32>}]} {
    %c0 = arith.constant 0 : index
    %c0_0 = arith.constant 0 : index
    %0 = vector.load %arg2[%c0, %c0_0] : memref<32x128xf32, #tpu.memory_space<vmem>>, vector<32x128xf32>
    %c0_1 = arith.constant 0 : index
    %c0_2 = arith.constant 0 : index
    %1 = vector.load %arg4[%c0_1, %c0_2] : memref<128x32xf32, #tpu.memory_space<vmem>>, vector<128x32xf32>
    %c0_3 = arith.constant 0 : index
    %c0_4 = arith.constant 0 : index
    %2 = vector.load %arg6[%c0_3, %c0_4] : memref<128x128xf32, #tpu.memory_space<vmem>>, vector<128x128xf32>
    %c0_5 = arith.constant 0 : index
    %c0_6 = arith.constant 0 : index
    %3 = vector.load %arg3[%c0_5, %c0_6] : memref<1x128xf32, #tpu.memory_space<vmem>>, vector<1x128xf32>
    %4 = vector.shape_cast %3 : vector<1x128xf32> to vector<1x128xf32>
    %5 = vector.broadcast %4 : vector<1x128xf32> to vector<8x128xf32>
    %c0_7 = arith.constant 0 : index
    %c0_8 = arith.constant 0 : index
    %6 = vector.load %arg5[%c0_7, %c0_8] : memref<1x32xf32, #tpu.memory_space<vmem>>, vector<1x32xf32>
    %7 = vector.shape_cast %6 : vector<1x32xf32> to vector<1x32xf32>
    %8 = vector.broadcast %7 : vector<1x32xf32> to vector<8x32xf32>
    %c0_9 = arith.constant 0 : index
    %c0_10 = arith.constant 0 : index
    %9 = vector.load %arg7[%c0_9, %c0_10] : memref<1x128xf32, #tpu.memory_space<vmem>>, vector<1x128xf32>
    %10 = vector.shape_cast %9 : vector<1x128xf32> to vector<1x128xf32>
    %11 = vector.broadcast %10 : vector<1x128xf32> to vector<8x128xf32>
    %c0_11 = arith.constant 0 : index
    %c0_12 = arith.constant 0 : index
    %12 = vector.load %arg1[%c0_11, %c0_12] : memref<8x32xf32, #tpu.memory_space<vmem>>, vector<8x32xf32>
    %cst = arith.constant dense<0.000000e+00> : vector<8x128xf32>
    %13 = tpu.matmul %12, %0, %cst {dimension_numbers = #tpu.dot_dimension_numbers<[1], [0], [0], [1], [0, 0, 1, 1], [], []>} : vector<8x32xf32>, vector<32x128xf32>, vector<8x128xf32> -> vector<8x128xf32>
    %14 = arith.addf %13, %5 : vector<8x128xf32>
    %cst_13 = arith.constant 5.000000e-02 : f32
    %cst_14 = arith.constant 1.000000e-01 : f32
    %cst_15 = arith.constant 0.0166666675 : f32
    %c0_i32 = arith.constant 0 : i32
    %cst_16 = arith.constant 0.000000e+00 : f32
    %15 = vector.broadcast %cst_16 : f32 to vector<8x128xf32>
    %16 = arith.maximumf %14, %15 : vector<8x128xf32>
    %cst_17 = arith.constant dense<0.000000e+00> : vector<8x128xf32>
    %17 = tpu.matmul %16, %2, %cst_17 {dimension_numbers = #tpu.dot_dimension_numbers<[1], [0], [0], [1], [0, 0, 1, 1], [], []>} : vector<8x128xf32>, vector<128x128xf32>, vector<8x128xf32> -> vector<8x128xf32>
    %18 = arith.addf %17, %11 : vector<8x128xf32>
    %19 = vector.broadcast %cst_13 : f32 to vector<8x128xf32>
    %20 = arith.mulf %19, %18 : vector<8x128xf32>
    %21 = arith.addf %14, %20 : vector<8x128xf32>
    %cst_18 = arith.constant 0.000000e+00 : f32
    %22 = vector.broadcast %cst_18 : f32 to vector<8x128xf32>
    %23 = arith.maximumf %21, %22 : vector<8x128xf32>
    %cst_19 = arith.constant dense<0.000000e+00> : vector<8x128xf32>
    %24 = tpu.matmul %23, %2, %cst_19 {dimension_numbers = #tpu.dot_dimension_numbers<[1], [0], [0], [1], [0, 0, 1, 1], [], []>} : vector<8x128xf32>, vector<128x128xf32>, vector<8x128xf32> -> vector<8x128xf32>
    %25 = arith.addf %24, %11 : vector<8x128xf32>
    %26 = vector.broadcast %cst_13 : f32 to vector<8x128xf32>
    %27 = arith.mulf %26, %25 : vector<8x128xf32>
    %28 = arith.addf %14, %27 : vector<8x128xf32>
    %cst_20 = arith.constant 0.000000e+00 : f32
    %29 = vector.broadcast %cst_20 : f32 to vector<8x128xf32>
    %30 = arith.maximumf %28, %29 : vector<8x128xf32>
    %cst_21 = arith.constant dense<0.000000e+00> : vector<8x128xf32>
    %31 = tpu.matmul %30, %2, %cst_21 {dimension_numbers = #tpu.dot_dimension_numbers<[1], [0], [0], [1], [0, 0, 1, 1], [], []>} : vector<8x128xf32>, vector<128x128xf32>, vector<8x128xf32> -> vector<8x128xf32>
    %32 = arith.addf %31, %11 : vector<8x128xf32>
    %33 = vector.broadcast %cst_14 : f32 to vector<8x128xf32>
    %34 = arith.mulf %33, %32 : vector<8x128xf32>
    %35 = arith.addf %14, %34 : vector<8x128xf32>
    %cst_22 = arith.constant 0.000000e+00 : f32
    %36 = vector.broadcast %cst_22 : f32 to vector<8x128xf32>
    %37 = arith.maximumf %35, %36 : vector<8x128xf32>
    %cst_23 = arith.constant dense<0.000000e+00> : vector<8x128xf32>
    %38 = tpu.matmul %37, %2, %cst_23 {dimension_numbers = #tpu.dot_dimension_numbers<[1], [0], [0], [1], [0, 0, 1, 1], [], []>} : vector<8x128xf32>, vector<128x128xf32>, vector<8x128xf32> -> vector<8x128xf32>
    %39 = arith.addf %38, %11 : vector<8x128xf32>
    %cst_24 = arith.constant 2.000000e+00 : f32
    %40 = vector.broadcast %cst_24 : f32 to vector<8x128xf32>
    %41 = arith.mulf %40, %25 : vector<8x128xf32>
    %42 = arith.addf %18, %41 : vector<8x128xf32>
    %cst_25 = arith.constant 2.000000e+00 : f32
    %43 = vector.broadcast %cst_25 : f32 to vector<8x128xf32>
    %44 = arith.mulf %43, %32 : vector<8x128xf32>
    %45 = arith.addf %42, %44 : vector<8x128xf32>
    %46 = arith.addf %45, %39 : vector<8x128xf32>
    %47 = vector.broadcast %cst_15 : f32 to vector<8x128xf32>
    %48 = arith.mulf %47, %46 : vector<8x128xf32>
    %49 = arith.addf %14, %48 : vector<8x128xf32>
    %cst_26 = arith.constant 0.000000e+00 : f32
    %50 = vector.broadcast %cst_26 : f32 to vector<8x128xf32>
    %51 = arith.maximumf %14, %50 : vector<8x128xf32>
    %cst_27 = arith.constant dense<0.000000e+00> : vector<8x32xf32>
    %52 = tpu.matmul %51, %1, %cst_27 {dimension_numbers = #tpu.dot_dimension_numbers<[1], [0], [0], [1], [0, 0, 1, 1], [], []>} : vector<8x128xf32>, vector<128x32xf32>, vector<8x32xf32> -> vector<8x32xf32>
    %53 = arith.addf %52, %8 : vector<8x32xf32>
    %cst_28 = arith.constant 0.000000e+00 : f32
    %54 = vector.broadcast %cst_28 : f32 to vector<8x128xf32>
    %55 = arith.maximumf %21, %54 : vector<8x128xf32>
    %cst_29 = arith.constant dense<0.000000e+00> : vector<8x32xf32>
    %56 = tpu.matmul %55, %1, %cst_29 {dimension_numbers = #tpu.dot_dimension_numbers<[1], [0], [0], [1], [0, 0, 1, 1], [], []>} : vector<8x128xf32>, vector<128x32xf32>, vector<8x32xf32> -> vector<8x32xf32>
    %57 = arith.addf %56, %8 : vector<8x32xf32>
    %cst_30 = arith.constant 0.000000e+00 : f32
    %58 = vector.broadcast %cst_30 : f32 to vector<8x128xf32>
    %59 = arith.maximumf %28, %58 : vector<8x128xf32>
    %cst_31 = arith.constant dense<0.000000e+00> : vector<8x32xf32>
    %60 = tpu.matmul %59, %1, %cst_31 {dimension_numbers = #tpu.dot_dimension_numbers<[1], [0], [0], [1], [0, 0, 1, 1], [], []>} : vector<8x128xf32>, vector<128x32xf32>, vector<8x32xf32> -> vector<8x32xf32>
    %61 = arith.addf %60, %8 : vector<8x32xf32>
    %cst_32 = arith.constant 0.000000e+00 : f32
    %62 = vector.broadcast %cst_32 : f32 to vector<8x128xf32>
    %63 = arith.maximumf %35, %62 : vector<8x128xf32>
    %cst_33 = arith.constant dense<0.000000e+00> : vector<8x32xf32>
    %64 = tpu.matmul %63, %1, %cst_33 {dimension_numbers = #tpu.dot_dimension_numbers<[1], [0], [0], [1], [0, 0, 1, 1], [], []>} : vector<8x128xf32>, vector<128x32xf32>, vector<8x32xf32> -> vector<8x32xf32>
    %65 = arith.addf %64, %8 : vector<8x32xf32>
    %cst_34 = arith.constant 2.000000e+00 : f32
    %66 = vector.broadcast %cst_34 : f32 to vector<8x32xf32>
    %67 = arith.mulf %66, %57 : vector<8x32xf32>
    %68 = arith.addf %53, %67 : vector<8x32xf32>
    %cst_35 = arith.constant 2.000000e+00 : f32
    %69 = vector.broadcast %cst_35 : f32 to vector<8x32xf32>
    %70 = arith.mulf %69, %61 : vector<8x32xf32>
    %71 = arith.addf %68, %70 : vector<8x32xf32>
    %72 = arith.addf %71, %65 : vector<8x32xf32>
    %73 = vector.broadcast %cst_15 : f32 to vector<8x32xf32>
    %74 = arith.mulf %73, %72 : vector<8x32xf32>
    %75 = arith.addf %12, %74 : vector<8x32xf32>
    %c1_i32 = arith.constant 1 : i32
    %cst_36 = arith.constant 0.000000e+00 : f32
    %76 = vector.broadcast %cst_36 : f32 to vector<8x128xf32>
    %77 = arith.maximumf %49, %76 : vector<8x128xf32>
    %cst_37 = arith.constant dense<0.000000e+00> : vector<8x128xf32>
    %78 = tpu.matmul %77, %2, %cst_37 {dimension_numbers = #tpu.dot_dimension_numbers<[1], [0], [0], [1], [0, 0, 1, 1], [], []>} : vector<8x128xf32>, vector<128x128xf32>, vector<8x128xf32> -> vector<8x128xf32>
    %79 = arith.addf %78, %11 : vector<8x128xf32>
    %80 = vector.broadcast %cst_13 : f32 to vector<8x128xf32>
    %81 = arith.mulf %80, %79 : vector<8x128xf32>
    %82 = arith.addf %49, %81 : vector<8x128xf32>
    %cst_38 = arith.constant 0.000000e+00 : f32
    %83 = vector.broadcast %cst_38 : f32 to vector<8x128xf32>
    %84 = arith.maximumf %82, %83 : vector<8x128xf32>
    %cst_39 = arith.constant dense<0.000000e+00> : vector<8x128xf32>
    %85 = tpu.matmul %84, %2, %cst_39 {dimension_numbers = #tpu.dot_dimension_numbers<[1], [0], [0], [1], [0, 0, 1, 1], [], []>} : vector<8x128xf32>, vector<128x128xf32>, vector<8x128xf32> -> vector<8x128xf32>
    %86 = arith.addf %85, %11 : vector<8x128xf32>
    %87 = vector.broadcast %cst_13 : f32 to vector<8x128xf32>
    %88 = arith.mulf %87, %86 : vector<8x128xf32>
    %89 = arith.addf %49, %88 : vector<8x128xf32>
    %cst_40 = arith.constant 0.000000e+00 : f32
    %90 = vector.broadcast %cst_40 : f32 to vector<8x128xf32>
    %91 = arith.maximumf %89, %90 : vector<8x128xf32>
    %cst_41 = arith.constant dense<0.000000e+00> : vector<8x128xf32>
    %92 = tpu.matmul %91, %2, %cst_41 {dimension_numbers = #tpu.dot_dimension_numbers<[1], [0], [0], [1], [0, 0, 1, 1], [], []>} : vector<8x128xf32>, vector<128x128xf32>, vector<8x128xf32> -> vector<8x128xf32>
    %93 = arith.addf %92, %11 : vector<8x128xf32>
    %94 = vector.broadcast %cst_14 : f32 to vector<8x128xf32>
    %95 = arith.mulf %94, %93 : vector<8x128xf32>
    %96 = arith.addf %49, %95 : vector<8x128xf32>
    %cst_42 = arith.constant 0.000000e+00 : f32
    %97 = vector.broadcast %cst_42 : f32 to vector<8x128xf32>
    %98 = arith.maximumf %96, %97 : vector<8x128xf32>
    %cst_43 = arith.constant dense<0.000000e+00> : vector<8x128xf32>
    %99 = tpu.matmul %98, %2, %cst_43 {dimension_numbers = #tpu.dot_dimension_numbers<[1], [0], [0], [1], [0, 0, 1, 1], [], []>} : vector<8x128xf32>, vector<128x128xf32>, vector<8x128xf32> -> vector<8x128xf32>
    %100 = arith.addf %99, %11 : vector<8x128xf32>
    %cst_44 = arith.constant 2.000000e+00 : f32
    %101 = vector.broadcast %cst_44 : f32 to vector<8x128xf32>
    %102 = arith.mulf %101, %86 : vector<8x128xf32>
    %103 = arith.addf %79, %102 : vector<8x128xf32>
    %cst_45 = arith.constant 2.000000e+00 : f32
    %104 = vector.broadcast %cst_45 : f32 to vector<8x128xf32>
    %105 = arith.mulf %104, %93 : vector<8x128xf32>
    %106 = arith.addf %103, %105 : vector<8x128xf32>
    %107 = arith.addf %106, %100 : vector<8x128xf32>
    %108 = vector.broadcast %cst_15 : f32 to vector<8x128xf32>
    %109 = arith.mulf %108, %107 : vector<8x128xf32>
    %110 = arith.addf %49, %109 : vector<8x128xf32>
    %cst_46 = arith.constant 0.000000e+00 : f32
    %111 = vector.broadcast %cst_46 : f32 to vector<8x128xf32>
    %112 = arith.maximumf %49, %111 : vector<8x128xf32>
    %cst_47 = arith.constant dense<0.000000e+00> : vector<8x32xf32>
    %113 = tpu.matmul %112, %1, %cst_47 {dimension_numbers = #tpu.dot_dimension_numbers<[1], [0], [0], [1], [0, 0, 1, 1], [], []>} : vector<8x128xf32>, vector<128x32xf32>, vector<8x32xf32> -> vector<8x32xf32>
    %114 = arith.addf %113, %8 : vector<8x32xf32>
    %cst_48 = arith.constant 0.000000e+00 : f32
    %115 = vector.broadcast %cst_48 : f32 to vector<8x128xf32>
    %116 = arith.maximumf %82, %115 : vector<8x128xf32>
    %cst_49 = arith.constant dense<0.000000e+00> : vector<8x32xf32>
    %117 = tpu.matmul %116, %1, %cst_49 {dimension_numbers = #tpu.dot_dimension_numbers<[1], [0], [0], [1], [0, 0, 1, 1], [], []>} : vector<8x128xf32>, vector<128x32xf32>, vector<8x32xf32> -> vector<8x32xf32>
    %118 = arith.addf %117, %8 : vector<8x32xf32>
    %cst_50 = arith.constant 0.000000e+00 : f32
    %119 = vector.broadcast %cst_50 : f32 to vector<8x128xf32>
    %120 = arith.maximumf %89, %119 : vector<8x128xf32>
    %cst_51 = arith.constant dense<0.000000e+00> : vector<8x32xf32>
    %121 = tpu.matmul %120, %1, %cst_51 {dimension_numbers = #tpu.dot_dimension_numbers<[1], [0], [0], [1], [0, 0, 1, 1], [], []>} : vector<8x128xf32>, vector<128x32xf32>, vector<8x32xf32> -> vector<8x32xf32>
    %122 = arith.addf %121, %8 : vector<8x32xf32>
    %cst_52 = arith.constant 0.000000e+00 : f32
    %123 = vector.broadcast %cst_52 : f32 to vector<8x128xf32>
    %124 = arith.maximumf %96, %123 : vector<8x128xf32>
    %cst_53 = arith.constant dense<0.000000e+00> : vector<8x32xf32>
    %125 = tpu.matmul %124, %1, %cst_53 {dimension_numbers = #tpu.dot_dimension_numbers<[1], [0], [0], [1], [0, 0, 1, 1], [], []>} : vector<8x128xf32>, vector<128x32xf32>, vector<8x32xf32> -> vector<8x32xf32>
    %126 = arith.addf %125, %8 : vector<8x32xf32>
    %cst_54 = arith.constant 2.000000e+00 : f32
    %127 = vector.broadcast %cst_54 : f32 to vector<8x32xf32>
    %128 = arith.mulf %127, %118 : vector<8x32xf32>
    %129 = arith.addf %114, %128 : vector<8x32xf32>
    %cst_55 = arith.constant 2.000000e+00 : f32
    %130 = vector.broadcast %cst_55 : f32 to vector<8x32xf32>
    %131 = arith.mulf %130, %122 : vector<8x32xf32>
    %132 = arith.addf %129, %131 : vector<8x32xf32>
    %133 = arith.addf %132, %126 : vector<8x32xf32>
    %134 = vector.broadcast %cst_15 : f32 to vector<8x32xf32>
    %135 = arith.mulf %134, %133 : vector<8x32xf32>
    %136 = arith.addf %75, %135 : vector<8x32xf32>
    %c2_i32 = arith.constant 2 : i32
    %cst_56 = arith.constant 0.000000e+00 : f32
    %137 = vector.broadcast %cst_56 : f32 to vector<8x128xf32>
    %138 = arith.maximumf %110, %137 : vector<8x128xf32>
    %cst_57 = arith.constant dense<0.000000e+00> : vector<8x128xf32>
    %139 = tpu.matmul %138, %2, %cst_57 {dimension_numbers = #tpu.dot_dimension_numbers<[1], [0], [0], [1], [0, 0, 1, 1], [], []>} : vector<8x128xf32>, vector<128x128xf32>, vector<8x128xf32> -> vector<8x128xf32>
    %140 = arith.addf %139, %11 : vector<8x128xf32>
    %141 = vector.broadcast %cst_13 : f32 to vector<8x128xf32>
    %142 = arith.mulf %141, %140 : vector<8x128xf32>
    %143 = arith.addf %110, %142 : vector<8x128xf32>
    %cst_58 = arith.constant 0.000000e+00 : f32
    %144 = vector.broadcast %cst_58 : f32 to vector<8x128xf32>
    %145 = arith.maximumf %143, %144 : vector<8x128xf32>
    %cst_59 = arith.constant dense<0.000000e+00> : vector<8x128xf32>
    %146 = tpu.matmul %145, %2, %cst_59 {dimension_numbers = #tpu.dot_dimension_numbers<[1], [0], [0], [1], [0, 0, 1, 1], [], []>} : vector<8x128xf32>, vector<128x128xf32>, vector<8x128xf32> -> vector<8x128xf32>
    %147 = arith.addf %146, %11 : vector<8x128xf32>
    %148 = vector.broadcast %cst_13 : f32 to vector<8x128xf32>
    %149 = arith.mulf %148, %147 : vector<8x128xf32>
    %150 = arith.addf %110, %149 : vector<8x128xf32>
    %cst_60 = arith.constant 0.000000e+00 : f32
    %151 = vector.broadcast %cst_60 : f32 to vector<8x128xf32>
    %152 = arith.maximumf %150, %151 : vector<8x128xf32>
    %cst_61 = arith.constant dense<0.000000e+00> : vector<8x128xf32>
    %153 = tpu.matmul %152, %2, %cst_61 {dimension_numbers = #tpu.dot_dimension_numbers<[1], [0], [0], [1], [0, 0, 1, 1], [], []>} : vector<8x128xf32>, vector<128x128xf32>, vector<8x128xf32> -> vector<8x128xf32>
    %154 = arith.addf %153, %11 : vector<8x128xf32>
    %155 = vector.broadcast %cst_14 : f32 to vector<8x128xf32>
    %156 = arith.mulf %155, %154 : vector<8x128xf32>
    %157 = arith.addf %110, %156 : vector<8x128xf32>
    %cst_62 = arith.constant 0.000000e+00 : f32
    %158 = vector.broadcast %cst_62 : f32 to vector<8x128xf32>
    %159 = arith.maximumf %157, %158 : vector<8x128xf32>
    %cst_63 = arith.constant dense<0.000000e+00> : vector<8x128xf32>
    %160 = tpu.matmul %159, %2, %cst_63 {dimension_numbers = #tpu.dot_dimension_numbers<[1], [0], [0], [1], [0, 0, 1, 1], [], []>} : vector<8x128xf32>, vector<128x128xf32>, vector<8x128xf32> -> vector<8x128xf32>
    %161 = arith.addf %160, %11 : vector<8x128xf32>
    %cst_64 = arith.constant 2.000000e+00 : f32
    %162 = vector.broadcast %cst_64 : f32 to vector<8x128xf32>
    %163 = arith.mulf %162, %147 : vector<8x128xf32>
    %164 = arith.addf %140, %163 : vector<8x128xf32>
    %cst_65 = arith.constant 2.000000e+00 : f32
    %165 = vector.broadcast %cst_65 : f32 to vector<8x128xf32>
    %166 = arith.mulf %165, %154 : vector<8x128xf32>
    %167 = arith.addf %164, %166 : vector<8x128xf32>
    %168 = arith.addf %167, %161 : vector<8x128xf32>
    %169 = vector.broadcast %cst_15 : f32 to vector<8x128xf32>
    %170 = arith.mulf %169, %168 : vector<8x128xf32>
    %171 = arith.addf %110, %170 : vector<8x128xf32>
    %cst_66 = arith.constant 0.000000e+00 : f32
    %172 = vector.broadcast %cst_66 : f32 to vector<8x128xf32>
    %173 = arith.maximumf %110, %172 : vector<8x128xf32>
    %cst_67 = arith.constant dense<0.000000e+00> : vector<8x32xf32>
    %174 = tpu.matmul %173, %1, %cst_67 {dimension_numbers = #tpu.dot_dimension_numbers<[1], [0], [0], [1], [0, 0, 1, 1], [], []>} : vector<8x128xf32>, vector<128x32xf32>, vector<8x32xf32> -> vector<8x32xf32>
    %175 = arith.addf %174, %8 : vector<8x32xf32>
    %cst_68 = arith.constant 0.000000e+00 : f32
    %176 = vector.broadcast %cst_68 : f32 to vector<8x128xf32>
    %177 = arith.maximumf %143, %176 : vector<8x128xf32>
    %cst_69 = arith.constant dense<0.000000e+00> : vector<8x32xf32>
    %178 = tpu.matmul %177, %1, %cst_69 {dimension_numbers = #tpu.dot_dimension_numbers<[1], [0], [0], [1], [0, 0, 1, 1], [], []>} : vector<8x128xf32>, vector<128x32xf32>, vector<8x32xf32> -> vector<8x32xf32>
    %179 = arith.addf %178, %8 : vector<8x32xf32>
    %cst_70 = arith.constant 0.000000e+00 : f32
    %180 = vector.broadcast %cst_70 : f32 to vector<8x128xf32>
    %181 = arith.maximumf %150, %180 : vector<8x128xf32>
    %cst_71 = arith.constant dense<0.000000e+00> : vector<8x32xf32>
    %182 = tpu.matmul %181, %1, %cst_71 {dimension_numbers = #tpu.dot_dimension_numbers<[1], [0], [0], [1], [0, 0, 1, 1], [], []>} : vector<8x128xf32>, vector<128x32xf32>, vector<8x32xf32> -> vector<8x32xf32>
    %183 = arith.addf %182, %8 : vector<8x32xf32>
    %cst_72 = arith.constant 0.000000e+00 : f32
    %184 = vector.broadcast %cst_72 : f32 to vector<8x128xf32>
    %185 = arith.maximumf %157, %184 : vector<8x128xf32>
    %cst_73 = arith.constant dense<0.000000e+00> : vector<8x32xf32>
    %186 = tpu.matmul %185, %1, %cst_73 {dimension_numbers = #tpu.dot_dimension_numbers<[1], [0], [0], [1], [0, 0, 1, 1], [], []>} : vector<8x128xf32>, vector<128x32xf32>, vector<8x32xf32> -> vector<8x32xf32>
    %187 = arith.addf %186, %8 : vector<8x32xf32>
    %cst_74 = arith.constant 2.000000e+00 : f32
    %188 = vector.broadcast %cst_74 : f32 to vector<8x32xf32>
    %189 = arith.mulf %188, %179 : vector<8x32xf32>
    %190 = arith.addf %175, %189 : vector<8x32xf32>
    %cst_75 = arith.constant 2.000000e+00 : f32
    %191 = vector.broadcast %cst_75 : f32 to vector<8x32xf32>
    %192 = arith.mulf %191, %183 : vector<8x32xf32>
    %193 = arith.addf %190, %192 : vector<8x32xf32>
    %194 = arith.addf %193, %187 : vector<8x32xf32>
    %195 = vector.broadcast %cst_15 : f32 to vector<8x32xf32>
    %196 = arith.mulf %195, %194 : vector<8x32xf32>
    %197 = arith.addf %136, %196 : vector<8x32xf32>
    %c3_i32 = arith.constant 3 : i32
    %cst_76 = arith.constant 0.000000e+00 : f32
    %198 = vector.broadcast %cst_76 : f32 to vector<8x128xf32>
    %199 = arith.maximumf %171, %198 : vector<8x128xf32>
    %cst_77 = arith.constant dense<0.000000e+00> : vector<8x128xf32>
    %200 = tpu.matmul %199, %2, %cst_77 {dimension_numbers = #tpu.dot_dimension_numbers<[1], [0], [0], [1], [0, 0, 1, 1], [], []>} : vector<8x128xf32>, vector<128x128xf32>, vector<8x128xf32> -> vector<8x128xf32>
    %201 = arith.addf %200, %11 : vector<8x128xf32>
    %202 = vector.broadcast %cst_13 : f32 to vector<8x128xf32>
    %203 = arith.mulf %202, %201 : vector<8x128xf32>
    %204 = arith.addf %171, %203 : vector<8x128xf32>
    %cst_78 = arith.constant 0.000000e+00 : f32
    %205 = vector.broadcast %cst_78 : f32 to vector<8x128xf32>
    %206 = arith.maximumf %204, %205 : vector<8x128xf32>
    %cst_79 = arith.constant dense<0.000000e+00> : vector<8x128xf32>
    %207 = tpu.matmul %206, %2, %cst_79 {dimension_numbers = #tpu.dot_dimension_numbers<[1], [0], [0], [1], [0, 0, 1, 1], [], []>} : vector<8x128xf32>, vector<128x128xf32>, vector<8x128xf32> -> vector<8x128xf32>
    %208 = arith.addf %207, %11 : vector<8x128xf32>
    %209 = vector.broadcast %cst_13 : f32 to vector<8x128xf32>
    %210 = arith.mulf %209, %208 : vector<8x128xf32>
    %211 = arith.addf %171, %210 : vector<8x128xf32>
    %cst_80 = arith.constant 0.000000e+00 : f32
    %212 = vector.broadcast %cst_80 : f32 to vector<8x128xf32>
    %213 = arith.maximumf %211, %212 : vector<8x128xf32>
    %cst_81 = arith.constant dense<0.000000e+00> : vector<8x128xf32>
    %214 = tpu.matmul %213, %2, %cst_81 {dimension_numbers = #tpu.dot_dimension_numbers<[1], [0], [0], [1], [0, 0, 1, 1], [], []>} : vector<8x128xf32>, vector<128x128xf32>, vector<8x128xf32> -> vector<8x128xf32>
    %215 = arith.addf %214, %11 : vector<8x128xf32>
    %216 = vector.broadcast %cst_14 : f32 to vector<8x128xf32>
    %217 = arith.mulf %216, %215 : vector<8x128xf32>
    %218 = arith.addf %171, %217 : vector<8x128xf32>
    %cst_82 = arith.constant 0.000000e+00 : f32
    %219 = vector.broadcast %cst_82 : f32 to vector<8x128xf32>
    %220 = arith.maximumf %218, %219 : vector<8x128xf32>
    %cst_83 = arith.constant dense<0.000000e+00> : vector<8x128xf32>
    %221 = tpu.matmul %220, %2, %cst_83 {dimension_numbers = #tpu.dot_dimension_numbers<[1], [0], [0], [1], [0, 0, 1, 1], [], []>} : vector<8x128xf32>, vector<128x128xf32>, vector<8x128xf32> -> vector<8x128xf32>
    %222 = arith.addf %221, %11 : vector<8x128xf32>
    %cst_84 = arith.constant 2.000000e+00 : f32
    %223 = vector.broadcast %cst_84 : f32 to vector<8x128xf32>
    %224 = arith.mulf %223, %208 : vector<8x128xf32>
    %225 = arith.addf %201, %224 : vector<8x128xf32>
    %cst_85 = arith.constant 2.000000e+00 : f32
    %226 = vector.broadcast %cst_85 : f32 to vector<8x128xf32>
    %227 = arith.mulf %226, %215 : vector<8x128xf32>
    %228 = arith.addf %225, %227 : vector<8x128xf32>
    %229 = arith.addf %228, %222 : vector<8x128xf32>
    %230 = vector.broadcast %cst_15 : f32 to vector<8x128xf32>
    %231 = arith.mulf %230, %229 : vector<8x128xf32>
    %232 = arith.addf %171, %231 : vector<8x128xf32>
    %cst_86 = arith.constant 0.000000e+00 : f32
    %233 = vector.broadcast %cst_86 : f32 to vector<8x128xf32>
    %234 = arith.maximumf %171, %233 : vector<8x128xf32>
    %cst_87 = arith.constant dense<0.000000e+00> : vector<8x32xf32>
    %235 = tpu.matmul %234, %1, %cst_87 {dimension_numbers = #tpu.dot_dimension_numbers<[1], [0], [0], [1], [0, 0, 1, 1], [], []>} : vector<8x128xf32>, vector<128x32xf32>, vector<8x32xf32> -> vector<8x32xf32>
    %236 = arith.addf %235, %8 : vector<8x32xf32>
    %cst_88 = arith.constant 0.000000e+00 : f32
    %237 = vector.broadcast %cst_88 : f32 to vector<8x128xf32>
    %238 = arith.maximumf %204, %237 : vector<8x128xf32>
    %cst_89 = arith.constant dense<0.000000e+00> : vector<8x32xf32>
    %239 = tpu.matmul %238, %1, %cst_89 {dimension_numbers = #tpu.dot_dimension_numbers<[1], [0], [0], [1], [0, 0, 1, 1], [], []>} : vector<8x128xf32>, vector<128x32xf32>, vector<8x32xf32> -> vector<8x32xf32>
    %240 = arith.addf %239, %8 : vector<8x32xf32>
    %cst_90 = arith.constant 0.000000e+00 : f32
    %241 = vector.broadcast %cst_90 : f32 to vector<8x128xf32>
    %242 = arith.maximumf %211, %241 : vector<8x128xf32>
    %cst_91 = arith.constant dense<0.000000e+00> : vector<8x32xf32>
    %243 = tpu.matmul %242, %1, %cst_91 {dimension_numbers = #tpu.dot_dimension_numbers<[1], [0], [0], [1], [0, 0, 1, 1], [], []>} : vector<8x128xf32>, vector<128x32xf32>, vector<8x32xf32> -> vector<8x32xf32>
    %244 = arith.addf %243, %8 : vector<8x32xf32>
    %cst_92 = arith.constant 0.000000e+00 : f32
    %245 = vector.broadcast %cst_92 : f32 to vector<8x128xf32>
    %246 = arith.maximumf %218, %245 : vector<8x128xf32>
    %cst_93 = arith.constant dense<0.000000e+00> : vector<8x32xf32>
    %247 = tpu.matmul %246, %1, %cst_93 {dimension_numbers = #tpu.dot_dimension_numbers<[1], [0], [0], [1], [0, 0, 1, 1], [], []>} : vector<8x128xf32>, vector<128x32xf32>, vector<8x32xf32> -> vector<8x32xf32>
    %248 = arith.addf %247, %8 : vector<8x32xf32>
    %cst_94 = arith.constant 2.000000e+00 : f32
    %249 = vector.broadcast %cst_94 : f32 to vector<8x32xf32>
    %250 = arith.mulf %249, %240 : vector<8x32xf32>
    %251 = arith.addf %236, %250 : vector<8x32xf32>
    %cst_95 = arith.constant 2.000000e+00 : f32
    %252 = vector.broadcast %cst_95 : f32 to vector<8x32xf32>
    %253 = arith.mulf %252, %244 : vector<8x32xf32>
    %254 = arith.addf %251, %253 : vector<8x32xf32>
    %255 = arith.addf %254, %248 : vector<8x32xf32>
    %256 = vector.broadcast %cst_15 : f32 to vector<8x32xf32>
    %257 = arith.mulf %256, %255 : vector<8x32xf32>
    %258 = arith.addf %197, %257 : vector<8x32xf32>
    %c4_i32 = arith.constant 4 : i32
    %cst_96 = arith.constant 0.000000e+00 : f32
    %259 = vector.broadcast %cst_96 : f32 to vector<8x128xf32>
    %260 = arith.maximumf %232, %259 : vector<8x128xf32>
    %cst_97 = arith.constant dense<0.000000e+00> : vector<8x128xf32>
    %261 = tpu.matmul %260, %2, %cst_97 {dimension_numbers = #tpu.dot_dimension_numbers<[1], [0], [0], [1], [0, 0, 1, 1], [], []>} : vector<8x128xf32>, vector<128x128xf32>, vector<8x128xf32> -> vector<8x128xf32>
    %262 = arith.addf %261, %11 : vector<8x128xf32>
    %263 = vector.broadcast %cst_13 : f32 to vector<8x128xf32>
    %264 = arith.mulf %263, %262 : vector<8x128xf32>
    %265 = arith.addf %232, %264 : vector<8x128xf32>
    %cst_98 = arith.constant 0.000000e+00 : f32
    %266 = vector.broadcast %cst_98 : f32 to vector<8x128xf32>
    %267 = arith.maximumf %265, %266 : vector<8x128xf32>
    %cst_99 = arith.constant dense<0.000000e+00> : vector<8x128xf32>
    %268 = tpu.matmul %267, %2, %cst_99 {dimension_numbers = #tpu.dot_dimension_numbers<[1], [0], [0], [1], [0, 0, 1, 1], [], []>} : vector<8x128xf32>, vector<128x128xf32>, vector<8x128xf32> -> vector<8x128xf32>
    %269 = arith.addf %268, %11 : vector<8x128xf32>
    %270 = vector.broadcast %cst_13 : f32 to vector<8x128xf32>
    %271 = arith.mulf %270, %269 : vector<8x128xf32>
    %272 = arith.addf %232, %271 : vector<8x128xf32>
    %cst_100 = arith.constant 0.000000e+00 : f32
    %273 = vector.broadcast %cst_100 : f32 to vector<8x128xf32>
    %274 = arith.maximumf %272, %273 : vector<8x128xf32>
    %cst_101 = arith.constant dense<0.000000e+00> : vector<8x128xf32>
    %275 = tpu.matmul %274, %2, %cst_101 {dimension_numbers = #tpu.dot_dimension_numbers<[1], [0], [0], [1], [0, 0, 1, 1], [], []>} : vector<8x128xf32>, vector<128x128xf32>, vector<8x128xf32> -> vector<8x128xf32>
    %276 = arith.addf %275, %11 : vector<8x128xf32>
    %277 = vector.broadcast %cst_14 : f32 to vector<8x128xf32>
    %278 = arith.mulf %277, %276 : vector<8x128xf32>
    %279 = arith.addf %232, %278 : vector<8x128xf32>
    %cst_102 = arith.constant 0.000000e+00 : f32
    %280 = vector.broadcast %cst_102 : f32 to vector<8x128xf32>
    %281 = arith.maximumf %279, %280 : vector<8x128xf32>
    %cst_103 = arith.constant dense<0.000000e+00> : vector<8x128xf32>
    %282 = tpu.matmul %281, %2, %cst_103 {dimension_numbers = #tpu.dot_dimension_numbers<[1], [0], [0], [1], [0, 0, 1, 1], [], []>} : vector<8x128xf32>, vector<128x128xf32>, vector<8x128xf32> -> vector<8x128xf32>
    %283 = arith.addf %282, %11 : vector<8x128xf32>
    %cst_104 = arith.constant 2.000000e+00 : f32
    %284 = vector.broadcast %cst_104 : f32 to vector<8x128xf32>
    %285 = arith.mulf %284, %269 : vector<8x128xf32>
    %286 = arith.addf %262, %285 : vector<8x128xf32>
    %cst_105 = arith.constant 2.000000e+00 : f32
    %287 = vector.broadcast %cst_105 : f32 to vector<8x128xf32>
    %288 = arith.mulf %287, %276 : vector<8x128xf32>
    %289 = arith.addf %286, %288 : vector<8x128xf32>
    %290 = arith.addf %289, %283 : vector<8x128xf32>
    %291 = vector.broadcast %cst_15 : f32 to vector<8x128xf32>
    %292 = arith.mulf %291, %290 : vector<8x128xf32>
    %293 = arith.addf %232, %292 : vector<8x128xf32>
    %cst_106 = arith.constant 0.000000e+00 : f32
    %294 = vector.broadcast %cst_106 : f32 to vector<8x128xf32>
    %295 = arith.maximumf %232, %294 : vector<8x128xf32>
    %cst_107 = arith.constant dense<0.000000e+00> : vector<8x32xf32>
    %296 = tpu.matmul %295, %1, %cst_107 {dimension_numbers = #tpu.dot_dimension_numbers<[1], [0], [0], [1], [0, 0, 1, 1], [], []>} : vector<8x128xf32>, vector<128x32xf32>, vector<8x32xf32> -> vector<8x32xf32>
    %297 = arith.addf %296, %8 : vector<8x32xf32>
    %cst_108 = arith.constant 0.000000e+00 : f32
    %298 = vector.broadcast %cst_108 : f32 to vector<8x128xf32>
    %299 = arith.maximumf %265, %298 : vector<8x128xf32>
    %cst_109 = arith.constant dense<0.000000e+00> : vector<8x32xf32>
    %300 = tpu.matmul %299, %1, %cst_109 {dimension_numbers = #tpu.dot_dimension_numbers<[1], [0], [0], [1], [0, 0, 1, 1], [], []>} : vector<8x128xf32>, vector<128x32xf32>, vector<8x32xf32> -> vector<8x32xf32>
    %301 = arith.addf %300, %8 : vector<8x32xf32>
    %cst_110 = arith.constant 0.000000e+00 : f32
    %302 = vector.broadcast %cst_110 : f32 to vector<8x128xf32>
    %303 = arith.maximumf %272, %302 : vector<8x128xf32>
    %cst_111 = arith.constant dense<0.000000e+00> : vector<8x32xf32>
    %304 = tpu.matmul %303, %1, %cst_111 {dimension_numbers = #tpu.dot_dimension_numbers<[1], [0], [0], [1], [0, 0, 1, 1], [], []>} : vector<8x128xf32>, vector<128x32xf32>, vector<8x32xf32> -> vector<8x32xf32>
    %305 = arith.addf %304, %8 : vector<8x32xf32>
    %cst_112 = arith.constant 0.000000e+00 : f32
    %306 = vector.broadcast %cst_112 : f32 to vector<8x128xf32>
    %307 = arith.maximumf %279, %306 : vector<8x128xf32>
    %cst_113 = arith.constant dense<0.000000e+00> : vector<8x32xf32>
    %308 = tpu.matmul %307, %1, %cst_113 {dimension_numbers = #tpu.dot_dimension_numbers<[1], [0], [0], [1], [0, 0, 1, 1], [], []>} : vector<8x128xf32>, vector<128x32xf32>, vector<8x32xf32> -> vector<8x32xf32>
    %309 = arith.addf %308, %8 : vector<8x32xf32>
    %cst_114 = arith.constant 2.000000e+00 : f32
    %310 = vector.broadcast %cst_114 : f32 to vector<8x32xf32>
    %311 = arith.mulf %310, %301 : vector<8x32xf32>
    %312 = arith.addf %297, %311 : vector<8x32xf32>
    %cst_115 = arith.constant 2.000000e+00 : f32
    %313 = vector.broadcast %cst_115 : f32 to vector<8x32xf32>
    %314 = arith.mulf %313, %305 : vector<8x32xf32>
    %315 = arith.addf %312, %314 : vector<8x32xf32>
    %316 = arith.addf %315, %309 : vector<8x32xf32>
    %317 = vector.broadcast %cst_15 : f32 to vector<8x32xf32>
    %318 = arith.mulf %317, %316 : vector<8x32xf32>
    %319 = arith.addf %258, %318 : vector<8x32xf32>
    %c5_i32 = arith.constant 5 : i32
    %cst_116 = arith.constant 0.000000e+00 : f32
    %320 = vector.broadcast %cst_116 : f32 to vector<8x128xf32>
    %321 = arith.maximumf %293, %320 : vector<8x128xf32>
    %cst_117 = arith.constant dense<0.000000e+00> : vector<8x128xf32>
    %322 = tpu.matmul %321, %2, %cst_117 {dimension_numbers = #tpu.dot_dimension_numbers<[1], [0], [0], [1], [0, 0, 1, 1], [], []>} : vector<8x128xf32>, vector<128x128xf32>, vector<8x128xf32> -> vector<8x128xf32>
    %323 = arith.addf %322, %11 : vector<8x128xf32>
    %324 = vector.broadcast %cst_13 : f32 to vector<8x128xf32>
    %325 = arith.mulf %324, %323 : vector<8x128xf32>
    %326 = arith.addf %293, %325 : vector<8x128xf32>
    %cst_118 = arith.constant 0.000000e+00 : f32
    %327 = vector.broadcast %cst_118 : f32 to vector<8x128xf32>
    %328 = arith.maximumf %326, %327 : vector<8x128xf32>
    %cst_119 = arith.constant dense<0.000000e+00> : vector<8x128xf32>
    %329 = tpu.matmul %328, %2, %cst_119 {dimension_numbers = #tpu.dot_dimension_numbers<[1], [0], [0], [1], [0, 0, 1, 1], [], []>} : vector<8x128xf32>, vector<128x128xf32>, vector<8x128xf32> -> vector<8x128xf32>
    %330 = arith.addf %329, %11 : vector<8x128xf32>
    %331 = vector.broadcast %cst_13 : f32 to vector<8x128xf32>
    %332 = arith.mulf %331, %330 : vector<8x128xf32>
    %333 = arith.addf %293, %332 : vector<8x128xf32>
    %cst_120 = arith.constant 0.000000e+00 : f32
    %334 = vector.broadcast %cst_120 : f32 to vector<8x128xf32>
    %335 = arith.maximumf %333, %334 : vector<8x128xf32>
    %cst_121 = arith.constant dense<0.000000e+00> : vector<8x128xf32>
    %336 = tpu.matmul %335, %2, %cst_121 {dimension_numbers = #tpu.dot_dimension_numbers<[1], [0], [0], [1], [0, 0, 1, 1], [], []>} : vector<8x128xf32>, vector<128x128xf32>, vector<8x128xf32> -> vector<8x128xf32>
    %337 = arith.addf %336, %11 : vector<8x128xf32>
    %338 = vector.broadcast %cst_14 : f32 to vector<8x128xf32>
    %339 = arith.mulf %338, %337 : vector<8x128xf32>
    %340 = arith.addf %293, %339 : vector<8x128xf32>
    %cst_122 = arith.constant 0.000000e+00 : f32
    %341 = vector.broadcast %cst_122 : f32 to vector<8x128xf32>
    %342 = arith.maximumf %340, %341 : vector<8x128xf32>
    %cst_123 = arith.constant dense<0.000000e+00> : vector<8x128xf32>
    %343 = tpu.matmul %342, %2, %cst_123 {dimension_numbers = #tpu.dot_dimension_numbers<[1], [0], [0], [1], [0, 0, 1, 1], [], []>} : vector<8x128xf32>, vector<128x128xf32>, vector<8x128xf32> -> vector<8x128xf32>
    %344 = arith.addf %343, %11 : vector<8x128xf32>
    %cst_124 = arith.constant 2.000000e+00 : f32
    %345 = vector.broadcast %cst_124 : f32 to vector<8x128xf32>
    %346 = arith.mulf %345, %330 : vector<8x128xf32>
    %347 = arith.addf %323, %346 : vector<8x128xf32>
    %cst_125 = arith.constant 2.000000e+00 : f32
    %348 = vector.broadcast %cst_125 : f32 to vector<8x128xf32>
    %349 = arith.mulf %348, %337 : vector<8x128xf32>
    %350 = arith.addf %347, %349 : vector<8x128xf32>
    %351 = arith.addf %350, %344 : vector<8x128xf32>
    %352 = vector.broadcast %cst_15 : f32 to vector<8x128xf32>
    %353 = arith.mulf %352, %351 : vector<8x128xf32>
    %354 = arith.addf %293, %353 : vector<8x128xf32>
    %cst_126 = arith.constant 0.000000e+00 : f32
    %355 = vector.broadcast %cst_126 : f32 to vector<8x128xf32>
    %356 = arith.maximumf %293, %355 : vector<8x128xf32>
    %cst_127 = arith.constant dense<0.000000e+00> : vector<8x32xf32>
    %357 = tpu.matmul %356, %1, %cst_127 {dimension_numbers = #tpu.dot_dimension_numbers<[1], [0], [0], [1], [0, 0, 1, 1], [], []>} : vector<8x128xf32>, vector<128x32xf32>, vector<8x32xf32> -> vector<8x32xf32>
    %358 = arith.addf %357, %8 : vector<8x32xf32>
    %cst_128 = arith.constant 0.000000e+00 : f32
    %359 = vector.broadcast %cst_128 : f32 to vector<8x128xf32>
    %360 = arith.maximumf %326, %359 : vector<8x128xf32>
    %cst_129 = arith.constant dense<0.000000e+00> : vector<8x32xf32>
    %361 = tpu.matmul %360, %1, %cst_129 {dimension_numbers = #tpu.dot_dimension_numbers<[1], [0], [0], [1], [0, 0, 1, 1], [], []>} : vector<8x128xf32>, vector<128x32xf32>, vector<8x32xf32> -> vector<8x32xf32>
    %362 = arith.addf %361, %8 : vector<8x32xf32>
    %cst_130 = arith.constant 0.000000e+00 : f32
    %363 = vector.broadcast %cst_130 : f32 to vector<8x128xf32>
    %364 = arith.maximumf %333, %363 : vector<8x128xf32>
    %cst_131 = arith.constant dense<0.000000e+00> : vector<8x32xf32>
    %365 = tpu.matmul %364, %1, %cst_131 {dimension_numbers = #tpu.dot_dimension_numbers<[1], [0], [0], [1], [0, 0, 1, 1], [], []>} : vector<8x128xf32>, vector<128x32xf32>, vector<8x32xf32> -> vector<8x32xf32>
    %366 = arith.addf %365, %8 : vector<8x32xf32>
    %cst_132 = arith.constant 0.000000e+00 : f32
    %367 = vector.broadcast %cst_132 : f32 to vector<8x128xf32>
    %368 = arith.maximumf %340, %367 : vector<8x128xf32>
    %cst_133 = arith.constant dense<0.000000e+00> : vector<8x32xf32>
    %369 = tpu.matmul %368, %1, %cst_133 {dimension_numbers = #tpu.dot_dimension_numbers<[1], [0], [0], [1], [0, 0, 1, 1], [], []>} : vector<8x128xf32>, vector<128x32xf32>, vector<8x32xf32> -> vector<8x32xf32>
    %370 = arith.addf %369, %8 : vector<8x32xf32>
    %cst_134 = arith.constant 2.000000e+00 : f32
    %371 = vector.broadcast %cst_134 : f32 to vector<8x32xf32>
    %372 = arith.mulf %371, %362 : vector<8x32xf32>
    %373 = arith.addf %358, %372 : vector<8x32xf32>
    %cst_135 = arith.constant 2.000000e+00 : f32
    %374 = vector.broadcast %cst_135 : f32 to vector<8x32xf32>
    %375 = arith.mulf %374, %366 : vector<8x32xf32>
    %376 = arith.addf %373, %375 : vector<8x32xf32>
    %377 = arith.addf %376, %370 : vector<8x32xf32>
    %378 = vector.broadcast %cst_15 : f32 to vector<8x32xf32>
    %379 = arith.mulf %378, %377 : vector<8x32xf32>
    %380 = arith.addf %319, %379 : vector<8x32xf32>
    %c6_i32 = arith.constant 6 : i32
    %cst_136 = arith.constant 0.000000e+00 : f32
    %381 = vector.broadcast %cst_136 : f32 to vector<8x128xf32>
    %382 = arith.maximumf %354, %381 : vector<8x128xf32>
    %cst_137 = arith.constant dense<0.000000e+00> : vector<8x128xf32>
    %383 = tpu.matmul %382, %2, %cst_137 {dimension_numbers = #tpu.dot_dimension_numbers<[1], [0], [0], [1], [0, 0, 1, 1], [], []>} : vector<8x128xf32>, vector<128x128xf32>, vector<8x128xf32> -> vector<8x128xf32>
    %384 = arith.addf %383, %11 : vector<8x128xf32>
    %385 = vector.broadcast %cst_13 : f32 to vector<8x128xf32>
    %386 = arith.mulf %385, %384 : vector<8x128xf32>
    %387 = arith.addf %354, %386 : vector<8x128xf32>
    %cst_138 = arith.constant 0.000000e+00 : f32
    %388 = vector.broadcast %cst_138 : f32 to vector<8x128xf32>
    %389 = arith.maximumf %387, %388 : vector<8x128xf32>
    %cst_139 = arith.constant dense<0.000000e+00> : vector<8x128xf32>
    %390 = tpu.matmul %389, %2, %cst_139 {dimension_numbers = #tpu.dot_dimension_numbers<[1], [0], [0], [1], [0, 0, 1, 1], [], []>} : vector<8x128xf32>, vector<128x128xf32>, vector<8x128xf32> -> vector<8x128xf32>
    %391 = arith.addf %390, %11 : vector<8x128xf32>
    %392 = vector.broadcast %cst_13 : f32 to vector<8x128xf32>
    %393 = arith.mulf %392, %391 : vector<8x128xf32>
    %394 = arith.addf %354, %393 : vector<8x128xf32>
    %cst_140 = arith.constant 0.000000e+00 : f32
    %395 = vector.broadcast %cst_140 : f32 to vector<8x128xf32>
    %396 = arith.maximumf %394, %395 : vector<8x128xf32>
    %cst_141 = arith.constant dense<0.000000e+00> : vector<8x128xf32>
    %397 = tpu.matmul %396, %2, %cst_141 {dimension_numbers = #tpu.dot_dimension_numbers<[1], [0], [0], [1], [0, 0, 1, 1], [], []>} : vector<8x128xf32>, vector<128x128xf32>, vector<8x128xf32> -> vector<8x128xf32>
    %398 = arith.addf %397, %11 : vector<8x128xf32>
    %399 = vector.broadcast %cst_14 : f32 to vector<8x128xf32>
    %400 = arith.mulf %399, %398 : vector<8x128xf32>
    %401 = arith.addf %354, %400 : vector<8x128xf32>
    %cst_142 = arith.constant 0.000000e+00 : f32
    %402 = vector.broadcast %cst_142 : f32 to vector<8x128xf32>
    %403 = arith.maximumf %401, %402 : vector<8x128xf32>
    %cst_143 = arith.constant dense<0.000000e+00> : vector<8x128xf32>
    %404 = tpu.matmul %403, %2, %cst_143 {dimension_numbers = #tpu.dot_dimension_numbers<[1], [0], [0], [1], [0, 0, 1, 1], [], []>} : vector<8x128xf32>, vector<128x128xf32>, vector<8x128xf32> -> vector<8x128xf32>
    %405 = arith.addf %404, %11 : vector<8x128xf32>
    %cst_144 = arith.constant 2.000000e+00 : f32
    %406 = vector.broadcast %cst_144 : f32 to vector<8x128xf32>
    %407 = arith.mulf %406, %391 : vector<8x128xf32>
    %408 = arith.addf %384, %407 : vector<8x128xf32>
    %cst_145 = arith.constant 2.000000e+00 : f32
    %409 = vector.broadcast %cst_145 : f32 to vector<8x128xf32>
    %410 = arith.mulf %409, %398 : vector<8x128xf32>
    %411 = arith.addf %408, %410 : vector<8x128xf32>
    %412 = arith.addf %411, %405 : vector<8x128xf32>
    %413 = vector.broadcast %cst_15 : f32 to vector<8x128xf32>
    %414 = arith.mulf %413, %412 : vector<8x128xf32>
    %415 = arith.addf %354, %414 : vector<8x128xf32>
    %cst_146 = arith.constant 0.000000e+00 : f32
    %416 = vector.broadcast %cst_146 : f32 to vector<8x128xf32>
    %417 = arith.maximumf %354, %416 : vector<8x128xf32>
    %cst_147 = arith.constant dense<0.000000e+00> : vector<8x32xf32>
    %418 = tpu.matmul %417, %1, %cst_147 {dimension_numbers = #tpu.dot_dimension_numbers<[1], [0], [0], [1], [0, 0, 1, 1], [], []>} : vector<8x128xf32>, vector<128x32xf32>, vector<8x32xf32> -> vector<8x32xf32>
    %419 = arith.addf %418, %8 : vector<8x32xf32>
    %cst_148 = arith.constant 0.000000e+00 : f32
    %420 = vector.broadcast %cst_148 : f32 to vector<8x128xf32>
    %421 = arith.maximumf %387, %420 : vector<8x128xf32>
    %cst_149 = arith.constant dense<0.000000e+00> : vector<8x32xf32>
    %422 = tpu.matmul %421, %1, %cst_149 {dimension_numbers = #tpu.dot_dimension_numbers<[1], [0], [0], [1], [0, 0, 1, 1], [], []>} : vector<8x128xf32>, vector<128x32xf32>, vector<8x32xf32> -> vector<8x32xf32>
    %423 = arith.addf %422, %8 : vector<8x32xf32>
    %cst_150 = arith.constant 0.000000e+00 : f32
    %424 = vector.broadcast %cst_150 : f32 to vector<8x128xf32>
    %425 = arith.maximumf %394, %424 : vector<8x128xf32>
    %cst_151 = arith.constant dense<0.000000e+00> : vector<8x32xf32>
    %426 = tpu.matmul %425, %1, %cst_151 {dimension_numbers = #tpu.dot_dimension_numbers<[1], [0], [0], [1], [0, 0, 1, 1], [], []>} : vector<8x128xf32>, vector<128x32xf32>, vector<8x32xf32> -> vector<8x32xf32>
    %427 = arith.addf %426, %8 : vector<8x32xf32>
    %cst_152 = arith.constant 0.000000e+00 : f32
    %428 = vector.broadcast %cst_152 : f32 to vector<8x128xf32>
    %429 = arith.maximumf %401, %428 : vector<8x128xf32>
    %cst_153 = arith.constant dense<0.000000e+00> : vector<8x32xf32>
    %430 = tpu.matmul %429, %1, %cst_153 {dimension_numbers = #tpu.dot_dimension_numbers<[1], [0], [0], [1], [0, 0, 1, 1], [], []>} : vector<8x128xf32>, vector<128x32xf32>, vector<8x32xf32> -> vector<8x32xf32>
    %431 = arith.addf %430, %8 : vector<8x32xf32>
    %cst_154 = arith.constant 2.000000e+00 : f32
    %432 = vector.broadcast %cst_154 : f32 to vector<8x32xf32>
    %433 = arith.mulf %432, %423 : vector<8x32xf32>
    %434 = arith.addf %419, %433 : vector<8x32xf32>
    %cst_155 = arith.constant 2.000000e+00 : f32
    %435 = vector.broadcast %cst_155 : f32 to vector<8x32xf32>
    %436 = arith.mulf %435, %427 : vector<8x32xf32>
    %437 = arith.addf %434, %436 : vector<8x32xf32>
    %438 = arith.addf %437, %431 : vector<8x32xf32>
    %439 = vector.broadcast %cst_15 : f32 to vector<8x32xf32>
    %440 = arith.mulf %439, %438 : vector<8x32xf32>
    %441 = arith.addf %380, %440 : vector<8x32xf32>
    %c7_i32 = arith.constant 7 : i32
    %cst_156 = arith.constant 0.000000e+00 : f32
    %442 = vector.broadcast %cst_156 : f32 to vector<8x128xf32>
    %443 = arith.maximumf %415, %442 : vector<8x128xf32>
    %cst_157 = arith.constant dense<0.000000e+00> : vector<8x128xf32>
    %444 = tpu.matmul %443, %2, %cst_157 {dimension_numbers = #tpu.dot_dimension_numbers<[1], [0], [0], [1], [0, 0, 1, 1], [], []>} : vector<8x128xf32>, vector<128x128xf32>, vector<8x128xf32> -> vector<8x128xf32>
    %445 = arith.addf %444, %11 : vector<8x128xf32>
    %446 = vector.broadcast %cst_13 : f32 to vector<8x128xf32>
    %447 = arith.mulf %446, %445 : vector<8x128xf32>
    %448 = arith.addf %415, %447 : vector<8x128xf32>
    %cst_158 = arith.constant 0.000000e+00 : f32
    %449 = vector.broadcast %cst_158 : f32 to vector<8x128xf32>
    %450 = arith.maximumf %448, %449 : vector<8x128xf32>
    %cst_159 = arith.constant dense<0.000000e+00> : vector<8x128xf32>
    %451 = tpu.matmul %450, %2, %cst_159 {dimension_numbers = #tpu.dot_dimension_numbers<[1], [0], [0], [1], [0, 0, 1, 1], [], []>} : vector<8x128xf32>, vector<128x128xf32>, vector<8x128xf32> -> vector<8x128xf32>
    %452 = arith.addf %451, %11 : vector<8x128xf32>
    %453 = vector.broadcast %cst_13 : f32 to vector<8x128xf32>
    %454 = arith.mulf %453, %452 : vector<8x128xf32>
    %455 = arith.addf %415, %454 : vector<8x128xf32>
    %cst_160 = arith.constant 0.000000e+00 : f32
    %456 = vector.broadcast %cst_160 : f32 to vector<8x128xf32>
    %457 = arith.maximumf %455, %456 : vector<8x128xf32>
    %cst_161 = arith.constant dense<0.000000e+00> : vector<8x128xf32>
    %458 = tpu.matmul %457, %2, %cst_161 {dimension_numbers = #tpu.dot_dimension_numbers<[1], [0], [0], [1], [0, 0, 1, 1], [], []>} : vector<8x128xf32>, vector<128x128xf32>, vector<8x128xf32> -> vector<8x128xf32>
    %459 = arith.addf %458, %11 : vector<8x128xf32>
    %460 = vector.broadcast %cst_14 : f32 to vector<8x128xf32>
    %461 = arith.mulf %460, %459 : vector<8x128xf32>
    %462 = arith.addf %415, %461 : vector<8x128xf32>
    %cst_162 = arith.constant 0.000000e+00 : f32
    %463 = vector.broadcast %cst_162 : f32 to vector<8x128xf32>
    %464 = arith.maximumf %462, %463 : vector<8x128xf32>
    %cst_163 = arith.constant dense<0.000000e+00> : vector<8x128xf32>
    %465 = tpu.matmul %464, %2, %cst_163 {dimension_numbers = #tpu.dot_dimension_numbers<[1], [0], [0], [1], [0, 0, 1, 1], [], []>} : vector<8x128xf32>, vector<128x128xf32>, vector<8x128xf32> -> vector<8x128xf32>
    %466 = arith.addf %465, %11 : vector<8x128xf32>
    %cst_164 = arith.constant 2.000000e+00 : f32
    %467 = vector.broadcast %cst_164 : f32 to vector<8x128xf32>
    %468 = arith.mulf %467, %452 : vector<8x128xf32>
    %469 = arith.addf %445, %468 : vector<8x128xf32>
    %cst_165 = arith.constant 2.000000e+00 : f32
    %470 = vector.broadcast %cst_165 : f32 to vector<8x128xf32>
    %471 = arith.mulf %470, %459 : vector<8x128xf32>
    %472 = arith.addf %469, %471 : vector<8x128xf32>
    %473 = arith.addf %472, %466 : vector<8x128xf32>
    %474 = vector.broadcast %cst_15 : f32 to vector<8x128xf32>
    %475 = arith.mulf %474, %473 : vector<8x128xf32>
    %476 = arith.addf %415, %475 : vector<8x128xf32>
    %cst_166 = arith.constant 0.000000e+00 : f32
    %477 = vector.broadcast %cst_166 : f32 to vector<8x128xf32>
    %478 = arith.maximumf %415, %477 : vector<8x128xf32>
    %cst_167 = arith.constant dense<0.000000e+00> : vector<8x32xf32>
    %479 = tpu.matmul %478, %1, %cst_167 {dimension_numbers = #tpu.dot_dimension_numbers<[1], [0], [0], [1], [0, 0, 1, 1], [], []>} : vector<8x128xf32>, vector<128x32xf32>, vector<8x32xf32> -> vector<8x32xf32>
    %480 = arith.addf %479, %8 : vector<8x32xf32>
    %cst_168 = arith.constant 0.000000e+00 : f32
    %481 = vector.broadcast %cst_168 : f32 to vector<8x128xf32>
    %482 = arith.maximumf %448, %481 : vector<8x128xf32>
    %cst_169 = arith.constant dense<0.000000e+00> : vector<8x32xf32>
    %483 = tpu.matmul %482, %1, %cst_169 {dimension_numbers = #tpu.dot_dimension_numbers<[1], [0], [0], [1], [0, 0, 1, 1], [], []>} : vector<8x128xf32>, vector<128x32xf32>, vector<8x32xf32> -> vector<8x32xf32>
    %484 = arith.addf %483, %8 : vector<8x32xf32>
    %cst_170 = arith.constant 0.000000e+00 : f32
    %485 = vector.broadcast %cst_170 : f32 to vector<8x128xf32>
    %486 = arith.maximumf %455, %485 : vector<8x128xf32>
    %cst_171 = arith.constant dense<0.000000e+00> : vector<8x32xf32>
    %487 = tpu.matmul %486, %1, %cst_171 {dimension_numbers = #tpu.dot_dimension_numbers<[1], [0], [0], [1], [0, 0, 1, 1], [], []>} : vector<8x128xf32>, vector<128x32xf32>, vector<8x32xf32> -> vector<8x32xf32>
    %488 = arith.addf %487, %8 : vector<8x32xf32>
    %cst_172 = arith.constant 0.000000e+00 : f32
    %489 = vector.broadcast %cst_172 : f32 to vector<8x128xf32>
    %490 = arith.maximumf %462, %489 : vector<8x128xf32>
    %cst_173 = arith.constant dense<0.000000e+00> : vector<8x32xf32>
    %491 = tpu.matmul %490, %1, %cst_173 {dimension_numbers = #tpu.dot_dimension_numbers<[1], [0], [0], [1], [0, 0, 1, 1], [], []>} : vector<8x128xf32>, vector<128x32xf32>, vector<8x32xf32> -> vector<8x32xf32>
    %492 = arith.addf %491, %8 : vector<8x32xf32>
    %cst_174 = arith.constant 2.000000e+00 : f32
    %493 = vector.broadcast %cst_174 : f32 to vector<8x32xf32>
    %494 = arith.mulf %493, %484 : vector<8x32xf32>
    %495 = arith.addf %480, %494 : vector<8x32xf32>
    %cst_175 = arith.constant 2.000000e+00 : f32
    %496 = vector.broadcast %cst_175 : f32 to vector<8x32xf32>
    %497 = arith.mulf %496, %488 : vector<8x32xf32>
    %498 = arith.addf %495, %497 : vector<8x32xf32>
    %499 = arith.addf %498, %492 : vector<8x32xf32>
    %500 = vector.broadcast %cst_15 : f32 to vector<8x32xf32>
    %501 = arith.mulf %500, %499 : vector<8x32xf32>
    %502 = arith.addf %441, %501 : vector<8x32xf32>
    %c8_i32 = arith.constant 8 : i32
    %cst_176 = arith.constant 0.000000e+00 : f32
    %503 = vector.broadcast %cst_176 : f32 to vector<8x128xf32>
    %504 = arith.maximumf %476, %503 : vector<8x128xf32>
    %cst_177 = arith.constant dense<0.000000e+00> : vector<8x128xf32>
    %505 = tpu.matmul %504, %2, %cst_177 {dimension_numbers = #tpu.dot_dimension_numbers<[1], [0], [0], [1], [0, 0, 1, 1], [], []>} : vector<8x128xf32>, vector<128x128xf32>, vector<8x128xf32> -> vector<8x128xf32>
    %506 = arith.addf %505, %11 : vector<8x128xf32>
    %507 = vector.broadcast %cst_13 : f32 to vector<8x128xf32>
    %508 = arith.mulf %507, %506 : vector<8x128xf32>
    %509 = arith.addf %476, %508 : vector<8x128xf32>
    %cst_178 = arith.constant 0.000000e+00 : f32
    %510 = vector.broadcast %cst_178 : f32 to vector<8x128xf32>
    %511 = arith.maximumf %509, %510 : vector<8x128xf32>
    %cst_179 = arith.constant dense<0.000000e+00> : vector<8x128xf32>
    %512 = tpu.matmul %511, %2, %cst_179 {dimension_numbers = #tpu.dot_dimension_numbers<[1], [0], [0], [1], [0, 0, 1, 1], [], []>} : vector<8x128xf32>, vector<128x128xf32>, vector<8x128xf32> -> vector<8x128xf32>
    %513 = arith.addf %512, %11 : vector<8x128xf32>
    %514 = vector.broadcast %cst_13 : f32 to vector<8x128xf32>
    %515 = arith.mulf %514, %513 : vector<8x128xf32>
    %516 = arith.addf %476, %515 : vector<8x128xf32>
    %cst_180 = arith.constant 0.000000e+00 : f32
    %517 = vector.broadcast %cst_180 : f32 to vector<8x128xf32>
    %518 = arith.maximumf %516, %517 : vector<8x128xf32>
    %cst_181 = arith.constant dense<0.000000e+00> : vector<8x128xf32>
    %519 = tpu.matmul %518, %2, %cst_181 {dimension_numbers = #tpu.dot_dimension_numbers<[1], [0], [0], [1], [0, 0, 1, 1], [], []>} : vector<8x128xf32>, vector<128x128xf32>, vector<8x128xf32> -> vector<8x128xf32>
    %520 = arith.addf %519, %11 : vector<8x128xf32>
    %521 = vector.broadcast %cst_14 : f32 to vector<8x128xf32>
    %522 = arith.mulf %521, %520 : vector<8x128xf32>
    %523 = arith.addf %476, %522 : vector<8x128xf32>
    %cst_182 = arith.constant 0.000000e+00 : f32
    %524 = vector.broadcast %cst_182 : f32 to vector<8x128xf32>
    %525 = arith.maximumf %523, %524 : vector<8x128xf32>
    %cst_183 = arith.constant dense<0.000000e+00> : vector<8x128xf32>
    %526 = tpu.matmul %525, %2, %cst_183 {dimension_numbers = #tpu.dot_dimension_numbers<[1], [0], [0], [1], [0, 0, 1, 1], [], []>} : vector<8x128xf32>, vector<128x128xf32>, vector<8x128xf32> -> vector<8x128xf32>
    %527 = arith.addf %526, %11 : vector<8x128xf32>
    %cst_184 = arith.constant 2.000000e+00 : f32
    %528 = vector.broadcast %cst_184 : f32 to vector<8x128xf32>
    %529 = arith.mulf %528, %513 : vector<8x128xf32>
    %530 = arith.addf %506, %529 : vector<8x128xf32>
    %cst_185 = arith.constant 2.000000e+00 : f32
    %531 = vector.broadcast %cst_185 : f32 to vector<8x128xf32>
    %532 = arith.mulf %531, %520 : vector<8x128xf32>
    %533 = arith.addf %530, %532 : vector<8x128xf32>
    %534 = arith.addf %533, %527 : vector<8x128xf32>
    %535 = vector.broadcast %cst_15 : f32 to vector<8x128xf32>
    %536 = arith.mulf %535, %534 : vector<8x128xf32>
    %537 = arith.addf %476, %536 : vector<8x128xf32>
    %cst_186 = arith.constant 0.000000e+00 : f32
    %538 = vector.broadcast %cst_186 : f32 to vector<8x128xf32>
    %539 = arith.maximumf %476, %538 : vector<8x128xf32>
    %cst_187 = arith.constant dense<0.000000e+00> : vector<8x32xf32>
    %540 = tpu.matmul %539, %1, %cst_187 {dimension_numbers = #tpu.dot_dimension_numbers<[1], [0], [0], [1], [0, 0, 1, 1], [], []>} : vector<8x128xf32>, vector<128x32xf32>, vector<8x32xf32> -> vector<8x32xf32>
    %541 = arith.addf %540, %8 : vector<8x32xf32>
    %cst_188 = arith.constant 0.000000e+00 : f32
    %542 = vector.broadcast %cst_188 : f32 to vector<8x128xf32>
    %543 = arith.maximumf %509, %542 : vector<8x128xf32>
    %cst_189 = arith.constant dense<0.000000e+00> : vector<8x32xf32>
    %544 = tpu.matmul %543, %1, %cst_189 {dimension_numbers = #tpu.dot_dimension_numbers<[1], [0], [0], [1], [0, 0, 1, 1], [], []>} : vector<8x128xf32>, vector<128x32xf32>, vector<8x32xf32> -> vector<8x32xf32>
    %545 = arith.addf %544, %8 : vector<8x32xf32>
    %cst_190 = arith.constant 0.000000e+00 : f32
    %546 = vector.broadcast %cst_190 : f32 to vector<8x128xf32>
    %547 = arith.maximumf %516, %546 : vector<8x128xf32>
    %cst_191 = arith.constant dense<0.000000e+00> : vector<8x32xf32>
    %548 = tpu.matmul %547, %1, %cst_191 {dimension_numbers = #tpu.dot_dimension_numbers<[1], [0], [0], [1], [0, 0, 1, 1], [], []>} : vector<8x128xf32>, vector<128x32xf32>, vector<8x32xf32> -> vector<8x32xf32>
    %549 = arith.addf %548, %8 : vector<8x32xf32>
    %cst_192 = arith.constant 0.000000e+00 : f32
    %550 = vector.broadcast %cst_192 : f32 to vector<8x128xf32>
    %551 = arith.maximumf %523, %550 : vector<8x128xf32>
    %cst_193 = arith.constant dense<0.000000e+00> : vector<8x32xf32>
    %552 = tpu.matmul %551, %1, %cst_193 {dimension_numbers = #tpu.dot_dimension_numbers<[1], [0], [0], [1], [0, 0, 1, 1], [], []>} : vector<8x128xf32>, vector<128x32xf32>, vector<8x32xf32> -> vector<8x32xf32>
    %553 = arith.addf %552, %8 : vector<8x32xf32>
    %cst_194 = arith.constant 2.000000e+00 : f32
    %554 = vector.broadcast %cst_194 : f32 to vector<8x32xf32>
    %555 = arith.mulf %554, %545 : vector<8x32xf32>
    %556 = arith.addf %541, %555 : vector<8x32xf32>
    %cst_195 = arith.constant 2.000000e+00 : f32
    %557 = vector.broadcast %cst_195 : f32 to vector<8x32xf32>
    %558 = arith.mulf %557, %549 : vector<8x32xf32>
    %559 = arith.addf %556, %558 : vector<8x32xf32>
    %560 = arith.addf %559, %553 : vector<8x32xf32>
    %561 = vector.broadcast %cst_15 : f32 to vector<8x32xf32>
    %562 = arith.mulf %561, %560 : vector<8x32xf32>
    %563 = arith.addf %502, %562 : vector<8x32xf32>
    %c9_i32 = arith.constant 9 : i32
    %cst_196 = arith.constant 0.000000e+00 : f32
    %564 = vector.broadcast %cst_196 : f32 to vector<8x128xf32>
    %565 = arith.maximumf %537, %564 : vector<8x128xf32>
    %cst_197 = arith.constant dense<0.000000e+00> : vector<8x128xf32>
    %566 = tpu.matmul %565, %2, %cst_197 {dimension_numbers = #tpu.dot_dimension_numbers<[1], [0], [0], [1], [0, 0, 1, 1], [], []>} : vector<8x128xf32>, vector<128x128xf32>, vector<8x128xf32> -> vector<8x128xf32>
    %567 = arith.addf %566, %11 : vector<8x128xf32>
    %568 = vector.broadcast %cst_13 : f32 to vector<8x128xf32>
    %569 = arith.mulf %568, %567 : vector<8x128xf32>
    %570 = arith.addf %537, %569 : vector<8x128xf32>
    %cst_198 = arith.constant 0.000000e+00 : f32
    %571 = vector.broadcast %cst_198 : f32 to vector<8x128xf32>
    %572 = arith.maximumf %570, %571 : vector<8x128xf32>
    %cst_199 = arith.constant dense<0.000000e+00> : vector<8x128xf32>
    %573 = tpu.matmul %572, %2, %cst_199 {dimension_numbers = #tpu.dot_dimension_numbers<[1], [0], [0], [1], [0, 0, 1, 1], [], []>} : vector<8x128xf32>, vector<128x128xf32>, vector<8x128xf32> -> vector<8x128xf32>
    %574 = arith.addf %573, %11 : vector<8x128xf32>
    %575 = vector.broadcast %cst_13 : f32 to vector<8x128xf32>
    %576 = arith.mulf %575, %574 : vector<8x128xf32>
    %577 = arith.addf %537, %576 : vector<8x128xf32>
    %cst_200 = arith.constant 0.000000e+00 : f32
    %578 = vector.broadcast %cst_200 : f32 to vector<8x128xf32>
    %579 = arith.maximumf %577, %578 : vector<8x128xf32>
    %cst_201 = arith.constant dense<0.000000e+00> : vector<8x128xf32>
    %580 = tpu.matmul %579, %2, %cst_201 {dimension_numbers = #tpu.dot_dimension_numbers<[1], [0], [0], [1], [0, 0, 1, 1], [], []>} : vector<8x128xf32>, vector<128x128xf32>, vector<8x128xf32> -> vector<8x128xf32>
    %581 = arith.addf %580, %11 : vector<8x128xf32>
    %582 = vector.broadcast %cst_14 : f32 to vector<8x128xf32>
    %583 = arith.mulf %582, %581 : vector<8x128xf32>
    %584 = arith.addf %537, %583 : vector<8x128xf32>
    %cst_202 = arith.constant 0.000000e+00 : f32
    %585 = vector.broadcast %cst_202 : f32 to vector<8x128xf32>
    %586 = arith.maximumf %584, %585 : vector<8x128xf32>
    %cst_203 = arith.constant dense<0.000000e+00> : vector<8x128xf32>
    %587 = tpu.matmul %586, %2, %cst_203 {dimension_numbers = #tpu.dot_dimension_numbers<[1], [0], [0], [1], [0, 0, 1, 1], [], []>} : vector<8x128xf32>, vector<128x128xf32>, vector<8x128xf32> -> vector<8x128xf32>
    %588 = arith.addf %587, %11 : vector<8x128xf32>
    %cst_204 = arith.constant 2.000000e+00 : f32
    %589 = vector.broadcast %cst_204 : f32 to vector<8x128xf32>
    %590 = arith.mulf %589, %574 : vector<8x128xf32>
    %591 = arith.addf %567, %590 : vector<8x128xf32>
    %cst_205 = arith.constant 2.000000e+00 : f32
    %592 = vector.broadcast %cst_205 : f32 to vector<8x128xf32>
    %593 = arith.mulf %592, %581 : vector<8x128xf32>
    %594 = arith.addf %591, %593 : vector<8x128xf32>
    %595 = arith.addf %594, %588 : vector<8x128xf32>
    %596 = vector.broadcast %cst_15 : f32 to vector<8x128xf32>
    %597 = arith.mulf %596, %595 : vector<8x128xf32>
    %598 = arith.addf %537, %597 : vector<8x128xf32>
    %cst_206 = arith.constant 0.000000e+00 : f32
    %599 = vector.broadcast %cst_206 : f32 to vector<8x128xf32>
    %600 = arith.maximumf %537, %599 : vector<8x128xf32>
    %cst_207 = arith.constant dense<0.000000e+00> : vector<8x32xf32>
    %601 = tpu.matmul %600, %1, %cst_207 {dimension_numbers = #tpu.dot_dimension_numbers<[1], [0], [0], [1], [0, 0, 1, 1], [], []>} : vector<8x128xf32>, vector<128x32xf32>, vector<8x32xf32> -> vector<8x32xf32>
    %602 = arith.addf %601, %8 : vector<8x32xf32>
    %cst_208 = arith.constant 0.000000e+00 : f32
    %603 = vector.broadcast %cst_208 : f32 to vector<8x128xf32>
    %604 = arith.maximumf %570, %603 : vector<8x128xf32>
    %cst_209 = arith.constant dense<0.000000e+00> : vector<8x32xf32>
    %605 = tpu.matmul %604, %1, %cst_209 {dimension_numbers = #tpu.dot_dimension_numbers<[1], [0], [0], [1], [0, 0, 1, 1], [], []>} : vector<8x128xf32>, vector<128x32xf32>, vector<8x32xf32> -> vector<8x32xf32>
    %606 = arith.addf %605, %8 : vector<8x32xf32>
    %cst_210 = arith.constant 0.000000e+00 : f32
    %607 = vector.broadcast %cst_210 : f32 to vector<8x128xf32>
    %608 = arith.maximumf %577, %607 : vector<8x128xf32>
    %cst_211 = arith.constant dense<0.000000e+00> : vector<8x32xf32>
    %609 = tpu.matmul %608, %1, %cst_211 {dimension_numbers = #tpu.dot_dimension_numbers<[1], [0], [0], [1], [0, 0, 1, 1], [], []>} : vector<8x128xf32>, vector<128x32xf32>, vector<8x32xf32> -> vector<8x32xf32>
    %610 = arith.addf %609, %8 : vector<8x32xf32>
    %cst_212 = arith.constant 0.000000e+00 : f32
    %611 = vector.broadcast %cst_212 : f32 to vector<8x128xf32>
    %612 = arith.maximumf %584, %611 : vector<8x128xf32>
    %cst_213 = arith.constant dense<0.000000e+00> : vector<8x32xf32>
    %613 = tpu.matmul %612, %1, %cst_213 {dimension_numbers = #tpu.dot_dimension_numbers<[1], [0], [0], [1], [0, 0, 1, 1], [], []>} : vector<8x128xf32>, vector<128x32xf32>, vector<8x32xf32> -> vector<8x32xf32>
    %614 = arith.addf %613, %8 : vector<8x32xf32>
    %cst_214 = arith.constant 2.000000e+00 : f32
    %615 = vector.broadcast %cst_214 : f32 to vector<8x32xf32>
    %616 = arith.mulf %615, %606 : vector<8x32xf32>
    %617 = arith.addf %602, %616 : vector<8x32xf32>
    %cst_215 = arith.constant 2.000000e+00 : f32
    %618 = vector.broadcast %cst_215 : f32 to vector<8x32xf32>
    %619 = arith.mulf %618, %610 : vector<8x32xf32>
    %620 = arith.addf %617, %619 : vector<8x32xf32>
    %621 = arith.addf %620, %614 : vector<8x32xf32>
    %622 = vector.broadcast %cst_15 : f32 to vector<8x32xf32>
    %623 = arith.mulf %622, %621 : vector<8x32xf32>
    %624 = arith.addf %563, %623 : vector<8x32xf32>
    %c0_216 = arith.constant 0 : index
    %c0_217 = arith.constant 0 : index
    %625 = vector.load %arg8[%c0_216, %c0_217] : memref<8x32xf32, #tpu.memory_space<vmem>>, vector<8x32xf32>
    tpu.vector_store %arg8[%c0_216, %c0_217], %624 {strides = array<i32>} : memref<8x32xf32, #tpu.memory_space<vmem>>, vector<8x32xf32>,
    return
  }
  func.func @transform_0(%arg0: i32) -> (i32, i32) {
    %c0_i32 = arith.constant 0 : i32
    %c0_i32_0 = arith.constant 0 : i32
    return %arg0, %c0_i32 : i32, i32
  }
  func.func @transform_1(%arg0: i32) -> (i32, i32) {
    %c0_i32 = arith.constant 0 : i32
    %c0_i32_0 = arith.constant 0 : i32
    %c0_i32_1 = arith.constant 0 : i32
    return %c0_i32, %c0_i32_0 : i32, i32
  }
  func.func @transform_2(%arg0: i32) -> (i32, i32) {
    %c0_i32 = arith.constant 0 : i32
    %c0_i32_0 = arith.constant 0 : i32
    %c0_i32_1 = arith.constant 0 : i32
    return %c0_i32, %c0_i32_0 : i32, i32
  }
  func.func @transform_3(%arg0: i32) -> (i32, i32) {
    %c0_i32 = arith.constant 0 : i32
    %c0_i32_0 = arith.constant 0 : i32
    %c0_i32_1 = arith.constant 0 : i32
    return %c0_i32, %c0_i32_0 : i32, i32
  }
  func.func @transform_4(%arg0: i32) -> (i32, i32) {
    %c0_i32 = arith.constant 0 : i32
    %c0_i32_0 = arith.constant 0 : i32
    %c0_i32_1 = arith.constant 0 : i32
    return %c0_i32, %c0_i32_0 : i32, i32
  }
  func.func @transform_5(%arg0: i32) -> (i32, i32) {
    %c0_i32 = arith.constant 0 : i32
    %c0_i32_0 = arith.constant 0 : i32
    %c0_i32_1 = arith.constant 0 : i32
    return %c0_i32, %c0_i32_0 : i32, i32
  }
  func.func @transform_6(%arg0: i32) -> (i32, i32) {
    %c0_i32 = arith.constant 0 : i32
    %c0_i32_0 = arith.constant 0 : i32
    %c0_i32_1 = arith.constant 0 : i32
    return %c0_i32, %c0_i32_0 : i32, i32
  }
  func.func @transform_7(%arg0: i32) -> (i32, i32) {
    %c0_i32 = arith.constant 0 : i32
    %c0_i32_0 = arith.constant 0 : i32
    return %arg0, %c0_i32 : i32, i32
  }
}

</mosaic_0001>

<bundles_post_ra>
// kernel: tpu_custom_call.1
= control target key start
LH: loop header
LB: loop body
LE: loop exit
PB: predicated region body
PF: predicated region fallthrough
CT: control target
= control target key end

     0   :  { %12 = vsyncpa [#allocation3], 0  ;;  %s4182_s0 = inlined_call_operand.hbm [shape: f32[8,32], index: 0, kind: input, shape index: {}]   ;;  %s4183_s1 = inlined_call_operand.vmem [shape: f32[32,128], index: 1, kind: input, shape index: {}]   ;;  %s4184_s2 = inlined_call_operand.vmem [shape: f32[1,128], index: 2, kind: input, shape index: {}]   ;;  %s4185_s3 = inlined_call_operand.vmem [shape: f32[128,32], index: 3, kind: input, shape index: {}]   ;;  %s4186_s4 = inlined_call_operand.vmem [shape: f32[1,32], index: 4, kind: input, shape index: {}]   ;;  %s4187_s5 = inlined_call_operand.vmem [shape: f32[128,128], index: 5, kind: input, shape index: {}]   ;;  %s4188_s6 = inlined_call_operand.vmem [shape: f32[1,128], index: 6, kind: input, shape index: {}]   ;;  %s4189_s7 = inlined_call_operand.hbm [shape: f32[8,32], index: 7, kind: output, shape index: {}]  }
   0x1   :  { %13 = vsyncpa [#allocation4], 0  ;;  %s19_s26 = sshll.u32 %s4182_s0, 4  ;;  %s2070_s27 = smov [#allocation2]   ;;  %s20_s26 = int_to_ptr.hbm [resolvable:$true] %s19_s26 }
   0x2   :  { %s21_s28 = sshll.u32 %s2070_s27, 4  ;;  %s22_s28 = int_to_ptr.vmem [resolvable:$true] %s21_s28 }
   0x3   :  { %24 = dma.hbm_to_vmem [thread:$0]  %s20_s26, 128, %s22_s28, [#allocation3]  }
   0x4   :  { %2066 = dma.done.wait [#allocation3], 128  }
   0x5   :  { %2067 = vsyncadd [#allocation3], 4294967168  ;;  %v44_v0 = vld [vmem:[%s4183_s1 + $0x18] sm:$0xff]  ;;  %v43_v1 = vld [vmem:[%s4183_s1 + $0x10] sm:$0xff]  ;;  %vm90_vm0 = vcmask 261120   ;;  %s1935_s9 = sshll.u32 %s4189_s7, 4  ;;  %s1936_s9 = int_to_ptr.hbm [resolvable:$true] %s1935_s9 }
   0x6   :  { %106 = vmatpush.msra.mxu0 %v44_v0  ;;  %v2124_v2 = vld [vmem:[%s4187_s5 + $0x78] sm:$0xff]  ;;  %v42_v3 = vld [vmem:[%s4183_s1 + $0x8] sm:$0xff]  ;;  %v2133_v4 = vld [vmem:[%s4187_s5 + $0x70] sm:$0xff] }
   0x7   :  { %115 = vmatpush.msra.mxu1 %v2124_v2  ;;  %138 = vmatpush.msra.mxu2 %v2124_v2  ;;  %v2139_v5 = vld [vmem:[%s4187_s5 + $0x68] sm:$0xff]  ;;  %v41_v6 = vld [vmem:[%s4183_s1] sm:$0xff]  ;;  %v2158_v9 = vld [vmem:[%s4187_s5 + $0x58] sm:$0xff] }
   0x8   :  { %107 = vmatpush.msra.mxu0 %v43_v1  ;;  %161 = vmatpush.msra.mxu3 %v2124_v2  ;;  %v89_v7 = vld [vmem:[#allocation2] sm:$0xff]  ;;  %v2166_v10 = vld [vmem:[%s4187_s5 + $0x50] sm:$0xff]  ;;  %v2175_v11 = vld [vmem:[%s4187_s5 + $0x48] sm:$0xff] }
   0x9   :  { %116 = vmatpush.msra.mxu1 %v2133_v4  ;;  %139 = vmatpush.msra.mxu2 %v2133_v4  ;;  %v2150_v8 = vld [vmem:[%s4187_s5 + $0x60] sm:$0xff]  ;;  %v2193_v13 = vld [vmem:[%s4187_s5 + $0x38] sm:$0xff]  ;;  %v2202_v14 = vld [vmem:[%s4187_s5 + $0x30] sm:$0xff] }
   0xa   :  { %108 = vmatpush.msra.mxu0 %v42_v3  ;;  %162 = vmatpush.msra.mxu3 %v2133_v4  ;;  %v2184_v12 = vld [vmem:[%s4187_s5 + $0x40] sm:$0xff]  ;;  %v2211_v15 = vld [vmem:[%s4187_s5 + $0x28] sm:$0xff]  ;;  %v2229_v17 = vld [vmem:[%s4187_s5 + $0x18] sm:$0xff] }
   0xb   :  { %117 = vmatpush.msra.mxu1 %v2139_v5  ;;  %140 = vmatpush.msra.mxu2 %v2139_v5  ;;  %v2220_v16 = vld [vmem:[%s4187_s5 + $0x20] sm:$0xff]  ;;  %v2238_v18 = vld [vmem:[%s4187_s5 + $0x10] sm:$0xff]  ;;  %v2247_v19 = vld [vmem:[%s4187_s5 + $0x8] sm:$0xff] }
   0xc   :  { %109 = vmatpush.msra.mxu0 %v41_v6  ;;  %163 = vmatpush.msra.mxu3 %v2139_v5  ;;  %v2256_v20 = vld [vmem:[%s4187_s5] sm:$0xff]  ;;  %v2264_v21 = vld [vmem:[%s4185_s3 + $0x78] sm:$0xff]  ;;  %v2273_v22 = vld [vmem:[%s4185_s3 + $0x70] sm:$0xff] }
   0xd   :  { %1945 = vmatmul.msk.f32.vlgmr.msra.gmra.mxu0 %vm90_vm0, %v89_v7  ;;  %118 = vmatpush.msra.mxu1 %v2150_v8  ;;  %v2281_v23 = vld [vmem:[%s4185_s3 + $0x68] sm:$0xff]  ;;  %v2290_v24 = vld [vmem:[%s4185_s3 + $0x60] sm:$0xff]  ;;  %v2299_v25 = vld [vmem:[%s4185_s3 + $0x58] sm:$0xff] }
   0xe   :  { %141 = vmatpush.msra.mxu2 %v2150_v8  ;;  %164 = vmatpush.msra.mxu3 %v2150_v8  ;;  %v2308_v26 = vld [vmem:[%s4185_s3 + $0x50] sm:$0xff]  ;;  %v2317_v27 = vld [vmem:[%s4185_s3 + $0x48] sm:$0xff]  ;;  %v2326_v28 = vld [vmem:[%s4185_s3 + $0x40] sm:$0xff] }
   0xf   :  { %119 = vmatpush.msra.mxu1 %v2158_v9  ;;  %184 = vmatpush.msrb.mxu0 %v2124_v2  ;;  %v2335_v29 = vld [vmem:[%s4185_s3 + $0x38] sm:$0xff]  ;;  %v2356_v30 = vld [vmem:[%s4185_s3 + $0x30] sm:$0xff]  ;;  %v2363_v31 = vld [vmem:[%s4185_s3 + $0x28] sm:$0xff] }
  0x10   :  { %142 = vmatpush.msra.mxu2 %v2158_v9  ;;  %165 = vmatpush.msra.mxu3 %v2158_v9  ;;  %v2368_v32 = vld [vmem:[%s4185_s3 + $0x20] sm:$0xff]  ;;  %v2381_v33 = vld [vmem:[%s4185_s3 + $0x18] sm:$0xff]  ;;  %v2386_v34 = vld [vmem:[%s4185_s3 + $0x10] sm:$0xff] }
  0x11   :  { %120 = vmatpush.msra.mxu1 %v2166_v10  ;;  %185 = vmatpush.msrb.mxu0 %v2133_v4  ;;  %v2395_v35 = vld [vmem:[%s4185_s3 + $0x8] sm:$0xff]  ;;  %v2404_v36 = vld [vmem:[%s4185_s3] sm:$0xff] }
  0x12   :  { %143 = vmatpush.msra.mxu2 %v2166_v10  ;;  %166 = vmatpush.msra.mxu3 %v2166_v10  ;;  %v1948_v37 = vld [vmem:[%s4184_s2] ss:$0 sm:$0xff] }
  0x13   :  { %121 = vmatpush.msra.mxu1 %v2175_v11  ;;  %186 = vmatpush.msrb.mxu0 %v2139_v5  ;;  %v2457_v41 = vld [vmem:[%s4188_s6] ss:$0 sm:$0xff] }
  0x14   :  { %144 = vmatpush.msra.mxu2 %v2175_v11  ;;  %167 = vmatpush.msra.mxu3 %v2175_v11 }
  0x15   :  { %122 = vmatpush.msra.mxu1 %v2184_v12  ;;  %187 = vmatpush.msrb.mxu0 %v2150_v8 }
  0x16   :  { %145 = vmatpush.msra.mxu2 %v2184_v12  ;;  %168 = vmatpush.msra.mxu3 %v2184_v12 }
  0x17   :  { %123 = vmatpush.msra.mxu1 %v2193_v13  ;;  %188 = vmatpush.msrb.mxu0 %v2158_v9 }
  0x18   :  { %146 = vmatpush.msra.mxu2 %v2193_v13  ;;  %169 = vmatpush.msra.mxu3 %v2193_v13 }
  0x19   :  { %124 = vmatpush.msra.mxu1 %v2202_v14  ;;  %189 = vmatpush.msrb.mxu0 %v2166_v10 }
  0x1a   :  { %147 = vmatpush.msra.mxu2 %v2202_v14  ;;  %170 = vmatpush.msra.mxu3 %v2202_v14 }
  0x1b   :  { %125 = vmatpush.msra.mxu1 %v2211_v15  ;;  %190 = vmatpush.msrb.mxu0 %v2175_v11 }
  0x1c   :  { %148 = vmatpush.msra.mxu2 %v2211_v15  ;;  %171 = vmatpush.msra.mxu3 %v2211_v15 }
  0x1d   :  { %126 = vmatpush.msra.mxu1 %v2220_v16  ;;  %191 = vmatpush.msrb.mxu0 %v2184_v12 }
  0x1e   :  { %149 = vmatpush.msra.mxu2 %v2220_v16  ;;  %172 = vmatpush.msra.mxu3 %v2220_v16 }
  0x1f   :  { %127 = vmatpush.msra.mxu1 %v2229_v17  ;;  %192 = vmatpush.msrb.mxu0 %v2193_v13 }
  0x20   :  { %150 = vmatpush.msra.mxu2 %v2229_v17  ;;  %173 = vmatpush.msra.mxu3 %v2229_v17 }
  0x21   :  { %128 = vmatpush.msra.mxu1 %v2238_v18  ;;  %193 = vmatpush.msrb.mxu0 %v2202_v14 }
  0x22   :  { %151 = vmatpush.msra.mxu2 %v2238_v18  ;;  %174 = vmatpush.msra.mxu3 %v2238_v18 }
  0x23   :  { %129 = vmatpush.msra.mxu1 %v2247_v19  ;;  %194 = vmatpush.msrb.mxu0 %v2211_v15 }
  0x24   :  { %152 = vmatpush.msra.mxu2 %v2247_v19  ;;  %175 = vmatpush.msra.mxu3 %v2247_v19 }
  0x25   :  { %130 = vmatpush.msra.mxu1 %v2256_v20  ;;  %195 = vmatpush.msrb.mxu0 %v2220_v16 }
  0x26   :  { %153 = vmatpush.msra.mxu2 %v2256_v20  ;;  %176 = vmatpush.msra.mxu3 %v2256_v20 }
  0x27   :  { %211 = vmatpush.msrb.mxu1 %v2264_v21  ;;  %196 = vmatpush.msrb.mxu0 %v2229_v17 }
  0x28   :  { %231 = vmatpush.msrb.mxu2 %v2264_v21  ;;  %251 = vmatpush.msrb.mxu3 %v2264_v21 }
  0x29   :  { %212 = vmatpush.msrb.mxu1 %v2273_v22  ;;  %197 = vmatpush.msrb.mxu0 %v2238_v18 }
  0x2a   :  { %232 = vmatpush.msrb.mxu2 %v2273_v22  ;;  %252 = vmatpush.msrb.mxu3 %v2273_v22 }
  0x2b   :  { %213 = vmatpush.msrb.mxu1 %v2281_v23  ;;  %198 = vmatpush.msrb.mxu0 %v2247_v19 }
  0x2c   :  { %233 = vmatpush.msrb.mxu2 %v2281_v23  ;;  %253 = vmatpush.msrb.mxu3 %v2281_v23 }
  0x2d   :  { %214 = vmatpush.msrb.mxu1 %v2290_v24  ;;  %199 = vmatpush.msrb.mxu0 %v2256_v20 }
  0x2e   :  { %234 = vmatpush.msrb.mxu2 %v2290_v24  ;;  %254 = vmatpush.msrb.mxu3 %v2290_v24 }
  0x2f   :  { %215 = vmatpush.msrb.mxu1 %v2299_v25  ;;  %271 = vmatpush.msra.mxu0 %v2264_v21 }
  0x30   :  { %235 = vmatpush.msrb.mxu2 %v2299_v25  ;;  %255 = vmatpush.msrb.mxu3 %v2299_v25 }
  0x31   :  { %216 = vmatpush.msrb.mxu1 %v2308_v26  ;;  %272 = vmatpush.msra.mxu0 %v2273_v22 }
  0x32   :  { %236 = vmatpush.msrb.mxu2 %v2308_v26  ;;  %256 = vmatpush.msrb.mxu3 %v2308_v26 }
  0x33   :  { %217 = vmatpush.msrb.mxu1 %v2317_v27  ;;  %273 = vmatpush.msra.mxu0 %v2281_v23 }
  0x34   :  { %237 = vmatpush.msrb.mxu2 %v2317_v27  ;;  %257 = vmatpush.msrb.mxu3 %v2317_v27 }
  0x35   :  { %218 = vmatpush.msrb.mxu1 %v2326_v28  ;;  %274 = vmatpush.msra.mxu0 %v2290_v24 }
  0x36   :  { %238 = vmatpush.msrb.mxu2 %v2326_v28  ;;  %258 = vmatpush.msrb.mxu3 %v2326_v28 }
  0x37   :  { %219 = vmatpush.msrb.mxu1 %v2335_v29  ;;  %275 = vmatpush.msra.mxu0 %v2299_v25 }
  0x38   :  { %239 = vmatpush.msrb.mxu2 %v2335_v29  ;;  %259 = vmatpush.msrb.mxu3 %v2335_v29 }
  0x39   :  { %276 = vmatpush.msra.mxu0 %v2308_v26  ;;  %220 = vmatpush.msrb.mxu1 %v2356_v30 }
  0x3a   :  { %240 = vmatpush.msrb.mxu2 %v2356_v30  ;;  %260 = vmatpush.msrb.mxu3 %v2356_v30 }
  0x3b   :  { %277 = vmatpush.msra.mxu0 %v2317_v27  ;;  %221 = vmatpush.msrb.mxu1 %v2363_v31 }
  0x3c   :  { %241 = vmatpush.msrb.mxu2 %v2363_v31  ;;  %261 = vmatpush.msrb.mxu3 %v2363_v31 }
  0x3d   :  { %278 = vmatpush.msra.mxu0 %v2326_v28  ;;  %222 = vmatpush.msrb.mxu1 %v2368_v32 }
  0x3e   :  { %242 = vmatpush.msrb.mxu2 %v2368_v32  ;;  %262 = vmatpush.msrb.mxu3 %v2368_v32 }
  0x3f   :  { %279 = vmatpush.msra.mxu0 %v2335_v29  ;;  %223 = vmatpush.msrb.mxu1 %v2381_v33 }
  0x40   :  { %243 = vmatpush.msrb.mxu2 %v2381_v33  ;;  %263 = vmatpush.msrb.mxu3 %v2381_v33 }
  0x41   :  { %280 = vmatpush.msra.mxu0 %v2356_v30  ;;  %224 = vmatpush.msrb.mxu1 %v2386_v34 }
  0x42   :  { %244 = vmatpush.msrb.mxu2 %v2386_v34  ;;  %264 = vmatpush.msrb.mxu3 %v2386_v34 }
  0x43   :  { %281 = vmatpush.msra.mxu0 %v2363_v31  ;;  %225 = vmatpush.msrb.mxu1 %v2395_v35 }
  0x44   :  { %245 = vmatpush.msrb.mxu2 %v2395_v35  ;;  %265 = vmatpush.msrb.mxu3 %v2395_v35 }
  0x45   :  { %282 = vmatpush.msra.mxu0 %v2368_v32  ;;  %226 = vmatpush.msrb.mxu1 %v2404_v36 }
  0x46   :  { %246 = vmatpush.msrb.mxu2 %v2404_v36  ;;  %266 = vmatpush.msrb.mxu3 %v2404_v36 }
  0x47   :  { %283 = vmatpush.msra.mxu0 %v2381_v33 }
  0x49   :  { %284 = vmatpush.msra.mxu0 %v2386_v34 }
  0x4b   :  { %285 = vmatpush.msra.mxu0 %v2395_v35 }
  0x4d   :  { %286 = vmatpush.msra.mxu0 %v2404_v36 }
  0x8a   :  { %v111_v38 = vpop.f32.mrf.mxu0 }
  0x8b   :  { %v2419_v39 = vadd.f32 %v1948_v37, %v111_v38 }
  0x8d   :  { %v114_v40 = vmax.f32 %v2419_v39, 0.0 }
  0x8f   :  { %131 = vmatmul.f32.vlgmr.msra.gmra.mxu1 %v114_v40 }
  0x90   :  { %299 = vmatpush.msra.mxu1 %v2124_v2 }
  0x92   :  { %300 = vmatpush.msra.mxu1 %v2133_v4 }
  0x94   :  { %301 = vmatpush.msra.mxu1 %v2139_v5 }
  0x96   :  { %302 = vmatpush.msra.mxu1 %v2150_v8 }
  0x97   :  { %227 = vmatmul.f32.vlgmr.msrb.gmra.mxu1 %v114_v40 }
  0x98   :  { %303 = vmatpush.msra.mxu1 %v2158_v9 }
  0x9a   :  { %304 = vmatpush.msra.mxu1 %v2166_v10 }
  0x9c   :  { %305 = vmatpush.msra.mxu1 %v2175_v11 }
  0x9e   :  { %306 = vmatpush.msra.mxu1 %v2184_v12 }
  0xa0   :  { %307 = vmatpush.msra.mxu1 %v2193_v13 }
  0xa2   :  { %308 = vmatpush.msra.mxu1 %v2202_v14 }
  0xa4   :  { %309 = vmatpush.msra.mxu1 %v2211_v15 }
  0xa6   :  { %310 = vmatpush.msra.mxu1 %v2220_v16 }
  0xa8   :  { %311 = vmatpush.msra.mxu1 %v2229_v17 }
  0xaa   :  { %312 = vmatpush.msra.mxu1 %v2238_v18 }
  0xac   :  { %313 = vmatpush.msra.mxu1 %v2247_v19 }
  0xae   :  { %314 = vmatpush.msra.mxu1 %v2256_v20 }
  0xb0   :  { %395 = vmatpush.msrb.mxu1 %v2264_v21 }
  0xb2   :  { %396 = vmatpush.msrb.mxu1 %v2273_v22 }
  0xb4   :  { %397 = vmatpush.msrb.mxu1 %v2281_v23 }
  0xb6   :  { %398 = vmatpush.msrb.mxu1 %v2290_v24 }
  0xb8   :  { %399 = vmatpush.msrb.mxu1 %v2299_v25 }
  0xba   :  { %400 = vmatpush.msrb.mxu1 %v2308_v26 }
  0xbc   :  { %401 = vmatpush.msrb.mxu1 %v2317_v27 }
  0xbe   :  { %402 = vmatpush.msrb.mxu1 %v2326_v28 }
  0xc0   :  { %403 = vmatpush.msrb.mxu1 %v2335_v29 }
  0xc2   :  { %404 = vmatpush.msrb.mxu1 %v2356_v30 }
  0xc4   :  { %405 = vmatpush.msrb.mxu1 %v2363_v31 }
  0xc6   :  { %406 = vmatpush.msrb.mxu1 %v2368_v32 }
  0xc8   :  { %407 = vmatpush.msrb.mxu1 %v2381_v33 }
  0xca   :  { %408 = vmatpush.msrb.mxu1 %v2386_v34 }
  0xcc   :  { %409 = vmatpush.msrb.mxu1 %v2395_v35 }
  0xce   :  { %410 = vmatpush.msrb.mxu1 %v2404_v36 }
 0x10c   :  { %v132_v42 = vpop.f32.mrf.mxu1 }
 0x10d   :  { %v2460_v43 = vadd.f32 %v2457_v41, %v132_v42 }
 0x10f   :  { %v135_v44 = vmul.f32 0.05, %v2460_v43 }
 0x111   :  { %v136_v45 = vadd.f32 %v135_v44, %v2419_v39 }
 0x113   :  { %v137_v46 = vmax.f32 %v136_v45, 0.0 }
 0x114   :  { %v2602_v6 = vpop.f32.mrf.mxu1 }
 0x115   :  { %154 = vmatmul.f32.vlgmr.msra.gmra.mxu2 %v137_v46 }
 0x116   :  { %322 = vmatpush.msra.mxu2 %v2124_v2 }
 0x118   :  { %323 = vmatpush.msra.mxu2 %v2133_v4 }
 0x11a   :  { %324 = vmatpush.msra.mxu2 %v2139_v5 }
 0x11c   :  { %325 = vmatpush.msra.mxu2 %v2150_v8 }
 0x11d   :  { %247 = vmatmul.f32.vlgmr.msrb.gmra.mxu2 %v137_v46 }
 0x11e   :  { %326 = vmatpush.msra.mxu2 %v2158_v9 }
 0x120   :  { %327 = vmatpush.msra.mxu2 %v2166_v10 }
 0x122   :  { %328 = vmatpush.msra.mxu2 %v2175_v11 }
 0x124   :  { %329 = vmatpush.msra.mxu2 %v2184_v12 }
 0x126   :  { %330 = vmatpush.msra.mxu2 %v2193_v13 }
 0x128   :  { %331 = vmatpush.msra.mxu2 %v2202_v14 }
 0x12a   :  { %332 = vmatpush.msra.mxu2 %v2211_v15 }
 0x12c   :  { %333 = vmatpush.msra.mxu2 %v2220_v16 }
 0x12e   :  { %334 = vmatpush.msra.mxu2 %v2229_v17 }
 0x130   :  { %335 = vmatpush.msra.mxu2 %v2238_v18 }
 0x132   :  { %336 = vmatpush.msra.mxu2 %v2247_v19 }
 0x134   :  { %337 = vmatpush.msra.mxu2 %v2256_v20 }
 0x136   :  { %415 = vmatpush.msrb.mxu2 %v2264_v21 }
 0x138   :  { %416 = vmatpush.msrb.mxu2 %v2273_v22 }
 0x13a   :  { %417 = vmatpush.msrb.mxu2 %v2281_v23 }
 0x13c   :  { %418 = vmatpush.msrb.mxu2 %v2290_v24 }
 0x13e   :  { %419 = vmatpush.msrb.mxu2 %v2299_v25 }
 0x140   :  { %420 = vmatpush.msrb.mxu2 %v2308_v26 }
 0x142   :  { %421 = vmatpush.msrb.mxu2 %v2317_v27 }
 0x144   :  { %422 = vmatpush.msrb.mxu2 %v2326_v28 }
 0x146   :  { %423 = vmatpush.msrb.mxu2 %v2335_v29 }
 0x148   :  { %424 = vmatpush.msrb.mxu2 %v2356_v30 }
 0x14a   :  { %425 = vmatpush.msrb.mxu2 %v2363_v31 }
 0x14c   :  { %426 = vmatpush.msrb.mxu2 %v2368_v32 }
 0x14e   :  { %427 = vmatpush.msrb.mxu2 %v2381_v33 }
 0x150   :  { %428 = vmatpush.msrb.mxu2 %v2386_v34 }
 0x152   :  { %429 = vmatpush.msrb.mxu2 %v2395_v35 }
 0x154   :  { %430 = vmatpush.msrb.mxu2 %v2404_v36 }
 0x198   :  { %v155_v47 = vpop.f32.mrf.mxu2 }
 0x199   :  { %v156_v48 = vadd.f32 %v2457_v41, %v155_v47 }
 0x19b   :  { %v158_v49 = vmul.f32 0.05, %v156_v48  ;;  %v204_v52 = vmul.f32 2.0, %v156_v48 }
 0x19d   :  { %v159_v50 = vadd.f32 %v158_v49, %v2419_v39  ;;  %v205_v55 = vadd.f32 %v204_v52, %v2460_v43 }
 0x19f   :  { %v160_v51 = vmax.f32 %v159_v50, 0.0 }
 0x1a0   :  { %v2641_v42 = vpop.f32.mrf.mxu2 }
 0x1a1   :  { %177 = vmatmul.f32.vlgmr.msra.gmra.mxu3 %v160_v51 }
 0x1a2   :  { %345 = vmatpush.msra.mxu3 %v2124_v2 }
 0x1a4   :  { %346 = vmatpush.msra.mxu3 %v2133_v4 }
 0x1a6   :  { %347 = vmatpush.msra.mxu3 %v2139_v5 }
 0x1a8   :  { %348 = vmatpush.msra.mxu3 %v2150_v8 }
 0x1a9   :  { %267 = vmatmul.f32.vlgmr.msrb.gmra.mxu3 %v160_v51 }
 0x1aa   :  { %349 = vmatpush.msra.mxu3 %v2158_v9 }
 0x1ac   :  { %350 = vmatpush.msra.mxu3 %v2166_v10 }
 0x1ae   :  { %351 = vmatpush.msra.mxu3 %v2175_v11 }
 0x1b0   :  { %352 = vmatpush.msra.mxu3 %v2184_v12 }
 0x1b2   :  { %353 = vmatpush.msra.mxu3 %v2193_v13 }
 0x1b4   :  { %354 = vmatpush.msra.mxu3 %v2202_v14 }
 0x1b6   :  { %355 = vmatpush.msra.mxu3 %v2211_v15 }
 0x1b8   :  { %356 = vmatpush.msra.mxu3 %v2220_v16 }
 0x1ba   :  { %357 = vmatpush.msra.mxu3 %v2229_v17 }
 0x1bc   :  { %358 = vmatpush.msra.mxu3 %v2238_v18 }
 0x1be   :  { %359 = vmatpush.msra.mxu3 %v2247_v19 }
 0x1c0   :  { %360 = vmatpush.msra.mxu3 %v2256_v20 }
 0x1c2   :  { %435 = vmatpush.msrb.mxu3 %v2264_v21 }
 0x1c4   :  { %436 = vmatpush.msrb.mxu3 %v2273_v22 }
 0x1c6   :  { %437 = vmatpush.msrb.mxu3 %v2281_v23 }
 0x1c8   :  { %438 = vmatpush.msrb.mxu3 %v2290_v24 }
 0x1ca   :  { %439 = vmatpush.msrb.mxu3 %v2299_v25 }
 0x1cc   :  { %440 = vmatpush.msrb.mxu3 %v2308_v26 }
 0x1ce   :  { %441 = vmatpush.msrb.mxu3 %v2317_v27 }
 0x1d0   :  { %442 = vmatpush.msrb.mxu3 %v2326_v28 }
 0x1d2   :  { %443 = vmatpush.msrb.mxu3 %v2335_v29 }
 0x1d4   :  { %444 = vmatpush.msrb.mxu3 %v2356_v30 }
 0x1d6   :  { %445 = vmatpush.msrb.mxu3 %v2363_v31 }
 0x1d8   :  { %446 = vmatpush.msrb.mxu3 %v2368_v32 }
 0x1da   :  { %447 = vmatpush.msrb.mxu3 %v2381_v33 }
 0x1dc   :  { %448 = vmatpush.msrb.mxu3 %v2386_v34 }
 0x1de   :  { %449 = vmatpush.msrb.mxu3 %v2395_v35 }
 0x1e0   :  { %450 = vmatpush.msrb.mxu3 %v2404_v36 }
 0x224   :  { %v178_v53 = vpop.f32.mrf.mxu3 }
 0x225   :  { %v179_v54 = vadd.f32 %v2457_v41, %v178_v53 }
 0x227   :  { %v181_v56 = vmul.f32 0.1, %v179_v54  ;;  %v206_v57 = vmul.f32 2.0, %v179_v54 }
 0x229   :  { %v182_v58 = vadd.f32 %v181_v56, %v2419_v39  ;;  %v207_v59 = vadd.f32 %v206_v57, %v205_v55 }
 0x22b   :  { %v183_v60 = vmax.f32 %v182_v58, 0.0 }
 0x22c   :  { %v2677_v48 = vpop.f32.mrf.mxu3 }
 0x22d   :  { %200 = vmatmul.f32.vlgmr.msrb.gmra.mxu0 %v183_v60 }
 0x22e   :  { %368 = vmatpush.msrb.mxu0 %v2124_v2 }
 0x230   :  { %369 = vmatpush.msrb.mxu0 %v2133_v4 }
 0x232   :  { %370 = vmatpush.msrb.mxu0 %v2139_v5 }
 0x234   :  { %371 = vmatpush.msrb.mxu0 %v2150_v8 }
 0x235   :  { %287 = vmatmul.f32.vlgmr.msra.gmra.mxu0 %v183_v60 }
 0x236   :  { %372 = vmatpush.msrb.mxu0 %v2158_v9 }
 0x238   :  { %373 = vmatpush.msrb.mxu0 %v2166_v10 }
 0x23a   :  { %374 = vmatpush.msrb.mxu0 %v2175_v11 }
 0x23c   :  { %375 = vmatpush.msrb.mxu0 %v2184_v12 }
 0x23e   :  { %376 = vmatpush.msrb.mxu0 %v2193_v13 }
 0x240   :  { %377 = vmatpush.msrb.mxu0 %v2202_v14 }
 0x242   :  { %378 = vmatpush.msrb.mxu0 %v2211_v15 }
 0x244   :  { %379 = vmatpush.msrb.mxu0 %v2220_v16 }
 0x246   :  { %380 = vmatpush.msrb.mxu0 %v2229_v17 }
 0x248   :  { %381 = vmatpush.msrb.mxu0 %v2238_v18 }
 0x24a   :  { %382 = vmatpush.msrb.mxu0 %v2247_v19 }
 0x24c   :  { %383 = vmatpush.msrb.mxu0 %v2256_v20 }
 0x24e   :  { %455 = vmatpush.msra.mxu0 %v2264_v21 }
 0x250   :  { %456 = vmatpush.msra.mxu0 %v2273_v22 }
 0x252   :  { %457 = vmatpush.msra.mxu0 %v2281_v23 }
 0x254   :  { %458 = vmatpush.msra.mxu0 %v2290_v24 }
 0x256   :  { %459 = vmatpush.msra.mxu0 %v2299_v25 }
 0x258   :  { %460 = vmatpush.msra.mxu0 %v2308_v26 }
 0x25a   :  { %461 = vmatpush.msra.mxu0 %v2317_v27 }
 0x25c   :  { %462 = vmatpush.msra.mxu0 %v2326_v28 }
 0x25e   :  { %463 = vmatpush.msra.mxu0 %v2335_v29 }
 0x260   :  { %464 = vmatpush.msra.mxu0 %v2356_v30 }
 0x262   :  { %465 = vmatpush.msra.mxu0 %v2363_v31 }
 0x264   :  { %466 = vmatpush.msra.mxu0 %v2368_v32 }
 0x266   :  { %467 = vmatpush.msra.mxu0 %v2381_v33 }
 0x268   :  { %468 = vmatpush.msra.mxu0 %v2386_v34 }
 0x26a   :  { %469 = vmatpush.msra.mxu0 %v2395_v35 }
 0x26c   :  { %470 = vmatpush.msra.mxu0 %v2404_v36 }
 0x2aa   :  { %v201_v61 = vpop.f32.mrf.mxu0 }
 0x2ab   :  { %v202_v62 = vadd.f32 %v2457_v41, %v201_v61 }
 0x2ad   :  { %v208_v63 = vadd.f32 %v207_v59, %v202_v62 }
 0x2af   :  { %v209_v0 = vmul.f32 0.016666668, %v208_v63 }
 0x2b1   :  { %v2567_v1 = vadd.f32 %v209_v0, %v2419_v39 }
 0x2b2   :  { %v2714_v58 = vpop.f32.mrf.mxu0 }
 0x2b3   :  { %v298_v3 = vmax.f32 %v2567_v1, 0.0 }
 0x2b5   :  { %315 = vmatmul.f32.vlgmr.msra.gmra.mxu1 %v298_v3 }
 0x2b6   :  { %483 = vmatpush.msra.mxu1 %v2124_v2 }
 0x2b8   :  { %484 = vmatpush.msra.mxu1 %v2133_v4 }
 0x2ba   :  { %485 = vmatpush.msra.mxu1 %v2139_v5 }
 0x2bc   :  { %486 = vmatpush.msra.mxu1 %v2150_v8 }
 0x2bd   :  { %411 = vmatmul.f32.vlgmr.msrb.gmra.mxu1 %v298_v3  ;;  %v2781_v3 = vld [vmem:[%s4187_s5 + $0x60] sm:$0xff] }
 0x2be   :  { %487 = vmatpush.msra.mxu1 %v2158_v9 }
 0x2c0   :  { %488 = vmatpush.msra.mxu1 %v2166_v10 }
 0x2c2   :  { %489 = vmatpush.msra.mxu1 %v2175_v11 }
 0x2c4   :  { %490 = vmatpush.msra.mxu1 %v2184_v12 }
 0x2c6   :  { %491 = vmatpush.msra.mxu1 %v2193_v13 }
 0x2c8   :  { %492 = vmatpush.msra.mxu1 %v2202_v14 }
 0x2ca   :  { %493 = vmatpush.msra.mxu1 %v2211_v15 }
 0x2cc   :  { %494 = vmatpush.msra.mxu1 %v2220_v16 }
 0x2ce   :  { %495 = vmatpush.msra.mxu1 %v2229_v17 }
 0x2d0   :  { %496 = vmatpush.msra.mxu1 %v2238_v18 }
 0x2d2   :  { %497 = vmatpush.msra.mxu1 %v2247_v19 }
 0x2d4   :  { %498 = vmatpush.msra.mxu1 %v2256_v20 }
 0x2d6   :  { %579 = vmatpush.msrb.mxu1 %v2264_v21 }
 0x2d8   :  { %580 = vmatpush.msrb.mxu1 %v2273_v22 }
 0x2da   :  { %581 = vmatpush.msrb.mxu1 %v2281_v23 }
 0x2dc   :  { %582 = vmatpush.msrb.mxu1 %v2290_v24 }
 0x2de   :  { %583 = vmatpush.msrb.mxu1 %v2299_v25 }
 0x2e0   :  { %584 = vmatpush.msrb.mxu1 %v2308_v26 }
 0x2e2   :  { %585 = vmatpush.msrb.mxu1 %v2317_v27 }
 0x2e4   :  { %586 = vmatpush.msrb.mxu1 %v2326_v28 }
 0x2e6   :  { %587 = vmatpush.msrb.mxu1 %v2335_v29 }
 0x2e8   :  { %588 = vmatpush.msrb.mxu1 %v2356_v30 }
 0x2ea   :  { %589 = vmatpush.msrb.mxu1 %v2363_v31 }
 0x2ec   :  { %590 = vmatpush.msrb.mxu1 %v2368_v32 }
 0x2ee   :  { %591 = vmatpush.msrb.mxu1 %v2381_v33 }
 0x2f0   :  { %592 = vmatpush.msrb.mxu1 %v2386_v34 }
 0x2f2   :  { %593 = vmatpush.msrb.mxu1 %v2395_v35 }
 0x2f4   :  { %594 = vmatpush.msrb.mxu1 %v2404_v36 }
 0x332   :  { %v316_v7 = vpop.f32.mrf.mxu1 }
 0x333   :  { %v2605_v37 = vadd.f32 %v2457_v41, %v316_v7  ;;  %v2787_v7 = vld [vmem:[%s4187_s5 + $0x58] sm:$0xff] }
 0x335   :  { %v319_v38 = vmul.f32 0.05, %v2605_v37 }
 0x337   :  { %v320_v39 = vadd.f32 %v319_v38, %v2567_v1  ;;  %v2799_v38 = vld [vmem:[%s4187_s5 + $0x48] sm:$0xff] }
 0x339   :  { %v321_v40 = vmax.f32 %v320_v39, 0.0  ;;  %v2805_v39 = vld [vmem:[%s4187_s5 + $0x40] sm:$0xff] }
 0x33b   :  { %338 = vmatmul.f32.vlgmr.msra.gmra.mxu2 %v321_v40 }
 0x33c   :  { %506 = vmatpush.msra.mxu2 %v2124_v2 }
 0x33e   :  { %507 = vmatpush.msra.mxu2 %v2133_v4 }
 0x340   :  { %508 = vmatpush.msra.mxu2 %v2139_v5 }
 0x342   :  { %509 = vmatpush.msra.mxu2 %v2150_v8 }
 0x343   :  { %431 = vmatmul.f32.vlgmr.msrb.gmra.mxu2 %v321_v40  ;;  %v2877_v40 = vld [vmem:[%s4187_s5 + $0x10] sm:$0xff] }
 0x344   :  { %510 = vmatpush.msra.mxu2 %v2158_v9 }
 0x346   :  { %511 = vmatpush.msra.mxu2 %v2166_v10 }
 0x348   :  { %512 = vmatpush.msra.mxu2 %v2175_v11 }
 0x34a   :  { %513 = vmatpush.msra.mxu2 %v2184_v12 }
 0x34c   :  { %514 = vmatpush.msra.mxu2 %v2193_v13 }
 0x34e   :  { %515 = vmatpush.msra.mxu2 %v2202_v14 }
 0x350   :  { %516 = vmatpush.msra.mxu2 %v2211_v15 }
 0x352   :  { %517 = vmatpush.msra.mxu2 %v2220_v16 }
 0x354   :  { %518 = vmatpush.msra.mxu2 %v2229_v17 }
 0x356   :  { %519 = vmatpush.msra.mxu2 %v2238_v18 }
 0x358   :  { %520 = vmatpush.msra.mxu2 %v2247_v19 }
 0x35a   :  { %521 = vmatpush.msra.mxu2 %v2256_v20 }
 0x35c   :  { %599 = vmatpush.msrb.mxu2 %v2264_v21 }
 0x35e   :  { %600 = vmatpush.msrb.mxu2 %v2273_v22 }
 0x360   :  { %601 = vmatpush.msrb.mxu2 %v2281_v23 }
 0x362   :  { %602 = vmatpush.msrb.mxu2 %v2290_v24 }
 0x364   :  { %603 = vmatpush.msrb.mxu2 %v2299_v25 }
 0x366   :  { %604 = vmatpush.msrb.mxu2 %v2308_v26 }
 0x368   :  { %605 = vmatpush.msrb.mxu2 %v2317_v27 }
 0x36a   :  { %606 = vmatpush.msrb.mxu2 %v2326_v28 }
 0x36c   :  { %607 = vmatpush.msrb.mxu2 %v2335_v29 }
 0x36e   :  { %608 = vmatpush.msrb.mxu2 %v2356_v30 }
 0x370   :  { %609 = vmatpush.msrb.mxu2 %v2363_v31 }
 0x372   :  { %610 = vmatpush.msrb.mxu2 %v2368_v32 }
 0x374   :  { %611 = vmatpush.msrb.mxu2 %v2381_v33 }
 0x376   :  { %612 = vmatpush.msrb.mxu2 %v2386_v34 }
 0x378   :  { %613 = vmatpush.msrb.mxu2 %v2395_v35 }
 0x37a   :  { %614 = vmatpush.msrb.mxu2 %v2404_v36 }
 0x3be   :  { %v339_v43 = vpop.f32.mrf.mxu2 }
 0x3bf   :  { %v340_v44 = vadd.f32 %v2457_v41, %v339_v43  ;;  %v2883_v43 = vld [vmem:[%s4187_s5 + $0x8] sm:$0xff] }
 0x3c1   :  { %v342_v45 = vmul.f32 0.05, %v340_v44  ;;  %v388_v49 = vmul.f32 2.0, %v340_v44  ;;  %v2889_v44 = vld [vmem:[%s4187_s5] sm:$0xff] }
 0x3c3   :  { %v343_v46 = vadd.f32 %v342_v45, %v2567_v1  ;;  %v389_v52 = vadd.f32 %v388_v49, %v2605_v37  ;;  %v2793_v37 = vld [vmem:[%s4187_s5 + $0x50] sm:$0xff]  ;;  %v2895_v45 = vld [vmem:[%s4185_s3 + $0x78] sm:$0xff] }
 0x3c5   :  { %v344_v47 = vmax.f32 %v343_v46, 0.0  ;;  %v2901_v46 = vld [vmem:[%s4185_s3 + $0x70] sm:$0xff] }
 0x3c7   :  { %361 = vmatmul.f32.vlgmr.msra.gmra.mxu3 %v344_v47 }
 0x3c8   :  { %529 = vmatpush.msra.mxu3 %v2124_v2 }
 0x3ca   :  { %530 = vmatpush.msra.mxu3 %v2133_v4 }
 0x3cc   :  { %531 = vmatpush.msra.mxu3 %v2139_v5 }
 0x3ce   :  { %532 = vmatpush.msra.mxu3 %v2150_v8 }
 0x3cf   :  { %451 = vmatmul.f32.vlgmr.msrb.gmra.mxu3 %v344_v47  ;;  %v2907_v47 = vld [vmem:[%s4185_s3 + $0x68] sm:$0xff] }
 0x3d0   :  { %533 = vmatpush.msra.mxu3 %v2158_v9 }
 0x3d2   :  { %534 = vmatpush.msra.mxu3 %v2166_v10 }
 0x3d4   :  { %535 = vmatpush.msra.mxu3 %v2175_v11 }
 0x3d6   :  { %536 = vmatpush.msra.mxu3 %v2184_v12 }
 0x3d8   :  { %537 = vmatpush.msra.mxu3 %v2193_v13 }
 0x3da   :  { %538 = vmatpush.msra.mxu3 %v2202_v14 }
 0x3dc   :  { %539 = vmatpush.msra.mxu3 %v2211_v15 }
 0x3de   :  { %540 = vmatpush.msra.mxu3 %v2220_v16 }
 0x3e0   :  { %541 = vmatpush.msra.mxu3 %v2229_v17 }
 0x3e2   :  { %542 = vmatpush.msra.mxu3 %v2238_v18 }
 0x3e4   :  { %543 = vmatpush.msra.mxu3 %v2247_v19 }
 0x3e6   :  { %544 = vmatpush.msra.mxu3 %v2256_v20 }
 0x3e8   :  { %619 = vmatpush.msrb.mxu3 %v2264_v21 }
 0x3ea   :  { %620 = vmatpush.msrb.mxu3 %v2273_v22 }
 0x3ec   :  { %621 = vmatpush.msrb.mxu3 %v2281_v23 }
 0x3ee   :  { %622 = vmatpush.msrb.mxu3 %v2290_v24 }
 0x3f0   :  { %623 = vmatpush.msrb.mxu3 %v2299_v25 }
 0x3f2   :  { %624 = vmatpush.msrb.mxu3 %v2308_v26 }
 0x3f4   :  { %625 = vmatpush.msrb.mxu3 %v2317_v27 }
 0x3f6   :  { %626 = vmatpush.msrb.mxu3 %v2326_v28 }
 0x3f8   :  { %627 = vmatpush.msrb.mxu3 %v2335_v29 }
 0x3fa   :  { %628 = vmatpush.msrb.mxu3 %v2356_v30 }
 0x3fc   :  { %629 = vmatpush.msrb.mxu3 %v2363_v31 }
 0x3fe   :  { %630 = vmatpush.msrb.mxu3 %v2368_v32 }
 0x400   :  { %631 = vmatpush.msrb.mxu3 %v2381_v33 }
 0x402   :  { %632 = vmatpush.msrb.mxu3 %v2386_v34 }
 0x404   :  { %633 = vmatpush.msrb.mxu3 %v2395_v35 }
 0x406   :  { %634 = vmatpush.msrb.mxu3 %v2404_v36 }
 0x44a   :  { %v362_v50 = vpop.f32.mrf.mxu3 }
 0x44b   :  { %v363_v51 = vadd.f32 %v2457_v41, %v362_v50  ;;  %v2950_v50 = vld [vmem:[%s4185_s3 + $0x60] sm:$0xff] }
 0x44d   :  { %v365_v53 = vmul.f32 0.1, %v363_v51  ;;  %v390_v54 = vmul.f32 2.0, %v363_v51  ;;  %v2956_v51 = vld [vmem:[%s4185_s3 + $0x58] sm:$0xff] }
 0x44f   :  { %v366_v55 = vadd.f32 %v365_v53, %v2567_v1  ;;  %v391_v56 = vadd.f32 %v390_v54, %v389_v52  ;;  %v2962_v52 = vld [vmem:[%s4185_s3 + $0x50] sm:$0xff]  ;;  %v2968_v53 = vld [vmem:[%s4185_s3 + $0x48] sm:$0xff]  ;;  %v2974_v54 = vld [vmem:[%s4185_s3 + $0x40] sm:$0xff] }
 0x451   :  { %v367_v57 = vmax.f32 %v366_v55, 0.0  ;;  %v2980_v55 = vld [vmem:[%s4185_s3 + $0x38] sm:$0xff] }
 0x453   :  { %384 = vmatmul.f32.vlgmr.msrb.gmra.mxu0 %v367_v57 }
 0x454   :  { %552 = vmatpush.msrb.mxu0 %v2124_v2 }
 0x456   :  { %553 = vmatpush.msrb.mxu0 %v2133_v4 }
 0x458   :  { %554 = vmatpush.msrb.mxu0 %v2139_v5 }
 0x45a   :  { %555 = vmatpush.msrb.mxu0 %v2150_v8 }
 0x45b   :  { %471 = vmatmul.f32.vlgmr.msra.gmra.mxu0 %v367_v57  ;;  %v2992_v57 = vld [vmem:[%s4185_s3 + $0x28] sm:$0xff] }
 0x45c   :  { %556 = vmatpush.msrb.mxu0 %v2158_v9 }
 0x45e   :  { %557 = vmatpush.msrb.mxu0 %v2166_v10 }
 0x460   :  { %558 = vmatpush.msrb.mxu0 %v2175_v11 }
 0x462   :  { %559 = vmatpush.msrb.mxu0 %v2184_v12 }
 0x464   :  { %560 = vmatpush.msrb.mxu0 %v2193_v13 }
 0x466   :  { %561 = vmatpush.msrb.mxu0 %v2202_v14 }
 0x468   :  { %562 = vmatpush.msrb.mxu0 %v2211_v15 }
 0x46a   :  { %563 = vmatpush.msrb.mxu0 %v2220_v16 }
 0x46c   :  { %564 = vmatpush.msrb.mxu0 %v2229_v17 }
 0x46e   :  { %565 = vmatpush.msrb.mxu0 %v2238_v18 }
 0x470   :  { %566 = vmatpush.msrb.mxu0 %v2247_v19 }
 0x472   :  { %567 = vmatpush.msrb.mxu0 %v2256_v20 }
 0x474   :  { %639 = vmatpush.msra.mxu0 %v2264_v21 }
 0x476   :  { %640 = vmatpush.msra.mxu0 %v2273_v22 }
 0x478   :  { %641 = vmatpush.msra.mxu0 %v2281_v23 }
 0x47a   :  { %642 = vmatpush.msra.mxu0 %v2290_v24 }
 0x47c   :  { %643 = vmatpush.msra.mxu0 %v2299_v25 }
 0x47e   :  { %644 = vmatpush.msra.mxu0 %v2308_v26 }
 0x480   :  { %645 = vmatpush.msra.mxu0 %v2317_v27 }
 0x482   :  { %646 = vmatpush.msra.mxu0 %v2326_v28 }
 0x484   :  { %647 = vmatpush.msra.mxu0 %v2335_v29 }
 0x486   :  { %648 = vmatpush.msra.mxu0 %v2356_v30 }
 0x488   :  { %649 = vmatpush.msra.mxu0 %v2363_v31 }
 0x48a   :  { %650 = vmatpush.msra.mxu0 %v2368_v32 }
 0x48c   :  { %651 = vmatpush.msra.mxu0 %v2381_v33 }
 0x48e   :  { %652 = vmatpush.msra.mxu0 %v2386_v34 }
 0x490   :  { %653 = vmatpush.msra.mxu0 %v2395_v35 }
 0x492   :  { %654 = vmatpush.msra.mxu0 %v2404_v36 }
 0x4d0   :  { %v385_v59 = vpop.f32.mrf.mxu0 }
 0x4d1   :  { %v386_v60 = vadd.f32 %v2457_v41, %v385_v59  ;;  %v2998_v59 = vld [vmem:[%s4185_s3 + $0x20] sm:$0xff] }
 0x4d3   :  { %v392_v61 = vadd.f32 %v391_v56, %v386_v60  ;;  %v2986_v56 = vld [vmem:[%s4185_s3 + $0x30] sm:$0xff] }
 0x4d5   :  { %v393_v62 = vmul.f32 0.016666668, %v392_v61 }
 0x4d7   :  { %v2718_v63 = vadd.f32 %v393_v62, %v2567_v1  ;;  %v2775_v1 = vld [vmem:[%s4187_s5 + $0x68] sm:$0xff] }
 0x4d8   :  { %v3005_v60 = vpop.f32.mrf.mxu0 }
 0x4d9   :  { %v482_v0 = vmax.f32 %v2718_v63, 0.0 }
 0x4db   :  { %499 = vmatmul.f32.vlgmr.msra.gmra.mxu1 %v482_v0 }
 0x4dc   :  { %667 = vmatpush.msra.mxu1 %v2124_v2  ;;  %v2753_v2 = vpop.f32.mrf.mxu1 }
 0x4de   :  { %668 = vmatpush.msra.mxu1 %v2133_v4 }
 0x4e0   :  { %669 = vmatpush.msra.mxu1 %v2139_v5 }
 0x4e2   :  { %670 = vmatpush.msra.mxu1 %v2150_v8 }
 0x4e3   :  { %595 = vmatmul.f32.vlgmr.msrb.gmra.mxu1 %v482_v0 }
 0x4e4   :  { %671 = vmatpush.msra.mxu1 %v2158_v9 }
 0x4e6   :  { %672 = vmatpush.msra.mxu1 %v2166_v10 }
 0x4e8   :  { %673 = vmatpush.msra.mxu1 %v2175_v11  ;;  %v2763_v11 = vld [vmem:[%s4187_s5 + $0x78] sm:$0xff] }
 0x4ea   :  { %674 = vmatpush.msra.mxu1 %v2184_v12  ;;  %v2769_v12 = vld [vmem:[%s4187_s5 + $0x70] sm:$0xff] }
 0x4ec   :  { %675 = vmatpush.msra.mxu1 %v2193_v13 }
 0x4ee   :  { %676 = vmatpush.msra.mxu1 %v2202_v14 }
 0x4f0   :  { %677 = vmatpush.msra.mxu1 %v2211_v15 }
 0x4f2   :  { %678 = vmatpush.msra.mxu1 %v2220_v16 }
 0x4f4   :  { %679 = vmatpush.msra.mxu1 %v2229_v17 }
 0x4f6   :  { %680 = vmatpush.msra.mxu1 %v2238_v18 }
 0x4f8   :  { %681 = vmatpush.msra.mxu1 %v2247_v19 }
 0x4fa   :  { %682 = vmatpush.msra.mxu1 %v2256_v20 }
 0x4fc   :  { %763 = vmatpush.msrb.mxu1 %v2264_v21 }
 0x4fe   :  { %764 = vmatpush.msrb.mxu1 %v2273_v22 }
 0x500   :  { %765 = vmatpush.msrb.mxu1 %v2281_v23 }
 0x502   :  { %766 = vmatpush.msrb.mxu1 %v2290_v24 }
 0x504   :  { %767 = vmatpush.msrb.mxu1 %v2299_v25 }
 0x506   :  { %768 = vmatpush.msrb.mxu1 %v2308_v26 }
 0x508   :  { %769 = vmatpush.msrb.mxu1 %v2317_v27 }
 0x50a   :  { %770 = vmatpush.msrb.mxu1 %v2326_v28 }
 0x50c   :  { %771 = vmatpush.msrb.mxu1 %v2335_v29 }
 0x50e   :  { %772 = vmatpush.msrb.mxu1 %v2356_v30 }
 0x510   :  { %773 = vmatpush.msrb.mxu1 %v2363_v31 }
 0x512   :  { %774 = vmatpush.msrb.mxu1 %v2368_v32 }
 0x514   :  { %775 = vmatpush.msrb.mxu1 %v2381_v33 }
 0x516   :  { %776 = vmatpush.msrb.mxu1 %v2386_v34 }
 0x518   :  { %777 = vmatpush.msrb.mxu1 %v2395_v35 }
 0x51a   :  { %778 = vmatpush.msrb.mxu1 %v2404_v36 }
 0x558   :  { %v500_v4 = vpop.f32.mrf.mxu1 }
 0x559   :  { %v2756_v5 = vadd.f32 %v2457_v41, %v500_v4 }
 0x55b   :  { %v503_v8 = vmul.f32 0.05, %v2756_v5 }
 0x55d   :  { %v504_v9 = vadd.f32 %v503_v8, %v2718_v63 }
 0x55f   :  { %v505_v10 = vmax.f32 %v504_v9, 0.0 }
 0x561   :  { %522 = vmatmul.f32.vlgmr.msra.gmra.mxu2 %v505_v10 }
 0x562   :  { %690 = vmatpush.msra.mxu2 %v2763_v11 }
 0x564   :  { %691 = vmatpush.msra.mxu2 %v2769_v12 }
 0x566   :  { %692 = vmatpush.msra.mxu2 %v2775_v1 }
 0x568   :  { %693 = vmatpush.msra.mxu2 %v2781_v3 }
 0x569   :  { %615 = vmatmul.f32.vlgmr.msrb.gmra.mxu2 %v505_v10 }
 0x56a   :  { %694 = vmatpush.msra.mxu2 %v2787_v7 }
 0x56c   :  { %695 = vmatpush.msra.mxu2 %v2793_v37 }
 0x56e   :  { %696 = vmatpush.msra.mxu2 %v2799_v38 }
 0x570   :  { %697 = vmatpush.msra.mxu2 %v2805_v39 }
 0x572   :  { %698 = vmatpush.msra.mxu2 %v2193_v13  ;;  %v2832_v13 = vpop.f32.mrf.mxu2 }
 0x574   :  { %699 = vmatpush.msra.mxu2 %v2202_v14 }
 0x576   :  { %700 = vmatpush.msra.mxu2 %v2211_v15 }
 0x578   :  { %701 = vmatpush.msra.mxu2 %v2220_v16 }
 0x57a   :  { %702 = vmatpush.msra.mxu2 %v2229_v17 }
 0x57c   :  { %703 = vmatpush.msra.mxu2 %v2238_v18 }
 0x57e   :  { %704 = vmatpush.msra.mxu2 %v2247_v19  ;;  %v2847_v19 = vld [vmem:[%s4187_s5 + $0x38] sm:$0xff] }
 0x580   :  { %705 = vmatpush.msra.mxu2 %v2256_v20  ;;  %v2853_v20 = vld [vmem:[%s4187_s5 + $0x30] sm:$0xff] }
 0x582   :  { %783 = vmatpush.msrb.mxu2 %v2264_v21  ;;  %v2859_v21 = vld [vmem:[%s4187_s5 + $0x28] sm:$0xff] }
 0x584   :  { %784 = vmatpush.msrb.mxu2 %v2273_v22  ;;  %v2865_v22 = vld [vmem:[%s4187_s5 + $0x20] sm:$0xff] }
 0x586   :  { %785 = vmatpush.msrb.mxu2 %v2281_v23  ;;  %v2871_v23 = vld [vmem:[%s4187_s5 + $0x18] sm:$0xff] }
 0x588   :  { %786 = vmatpush.msrb.mxu2 %v2290_v24 }
 0x58a   :  { %787 = vmatpush.msrb.mxu2 %v2299_v25 }
 0x58c   :  { %788 = vmatpush.msrb.mxu2 %v2308_v26 }
 0x58e   :  { %789 = vmatpush.msrb.mxu2 %v2317_v27 }
 0x590   :  { %790 = vmatpush.msrb.mxu2 %v2326_v28 }
 0x592   :  { %791 = vmatpush.msrb.mxu2 %v2335_v29 }
 0x594   :  { %792 = vmatpush.msrb.mxu2 %v2356_v30 }
 0x596   :  { %793 = vmatpush.msrb.mxu2 %v2363_v31 }
 0x598   :  { %794 = vmatpush.msrb.mxu2 %v2368_v32 }
 0x59a   :  { %795 = vmatpush.msrb.mxu2 %v2381_v33 }
 0x59c   :  { %796 = vmatpush.msrb.mxu2 %v2386_v34 }
 0x59e   :  { %797 = vmatpush.msrb.mxu2 %v2395_v35 }
 0x5a0   :  { %798 = vmatpush.msrb.mxu2 %v2404_v36 }
 0x5e4   :  { %v523_v14 = vpop.f32.mrf.mxu2 }
 0x5e5   :  { %v524_v15 = vadd.f32 %v2457_v41, %v523_v14 }
 0x5e7   :  { %v526_v16 = vmul.f32 0.05, %v524_v15 }
 0x5e9   :  { %v527_v17 = vadd.f32 %v526_v16, %v2718_v63 }
 0x5eb   :  { %v528_v18 = vmax.f32 %v527_v17, 0.0 }
 0x5ed   :  { %545 = vmatmul.f32.vlgmr.msra.gmra.mxu3 %v528_v18 }
 0x5ee   :  { %713 = vmatpush.msra.mxu3 %v2763_v11 }
 0x5f0   :  { %714 = vmatpush.msra.mxu3 %v2769_v12 }
 0x5f2   :  { %715 = vmatpush.msra.mxu3 %v2775_v1 }
 0x5f4   :  { %716 = vmatpush.msra.mxu3 %v2781_v3 }
 0x5f5   :  { %635 = vmatmul.f32.vlgmr.msrb.gmra.mxu3 %v528_v18  ;;  %v3108_v18 = vld [vmem:[%s4188_s6] ss:$0 sm:$0xff] }
 0x5f6   :  { %717 = vmatpush.msra.mxu3 %v2787_v7 }
 0x5f8   :  { %718 = vmatpush.msra.mxu3 %v2793_v37 }
 0x5fa   :  { %719 = vmatpush.msra.mxu3 %v2799_v38 }
 0x5fc   :  { %720 = vmatpush.msra.mxu3 %v2805_v39 }
 0x5fe   :  { %721 = vmatpush.msra.mxu3 %v2847_v19 }
 0x600   :  { %722 = vmatpush.msra.mxu3 %v2853_v20 }
 0x602   :  { %723 = vmatpush.msra.mxu3 %v2859_v21 }
 0x604   :  { %724 = vmatpush.msra.mxu3 %v2865_v22 }
 0x606   :  { %725 = vmatpush.msra.mxu3 %v2871_v23 }
 0x608   :  { %726 = vmatpush.msra.mxu3 %v2877_v40 }
 0x60a   :  { %727 = vmatpush.msra.mxu3 %v2883_v43 }
 0x60c   :  { %728 = vmatpush.msra.mxu3 %v2889_v44 }
 0x60e   :  { %803 = vmatpush.msrb.mxu3 %v2895_v45 }
 0x610   :  { %804 = vmatpush.msrb.mxu3 %v2901_v46 }
 0x612   :  { %805 = vmatpush.msrb.mxu3 %v2907_v47 }
 0x614   :  { %806 = vmatpush.msrb.mxu3 %v2290_v24  ;;  %v2923_v24 = vpop.f32.mrf.mxu3 }
 0x616   :  { %807 = vmatpush.msrb.mxu3 %v2299_v25  ;;  %v572_v25 = vmul.f32 2.0, %v524_v15 }
 0x618   :  { %808 = vmatpush.msrb.mxu3 %v2308_v26 }
 0x61a   :  { %809 = vmatpush.msrb.mxu3 %v2317_v27 }
 0x61c   :  { %810 = vmatpush.msrb.mxu3 %v2326_v28  ;;  %v573_v28 = vadd.f32 %v572_v25, %v2756_v5 }
 0x61e   :  { %811 = vmatpush.msrb.mxu3 %v2335_v29 }
 0x620   :  { %812 = vmatpush.msrb.mxu3 %v2356_v30 }
 0x622   :  { %813 = vmatpush.msrb.mxu3 %v2363_v31 }
 0x624   :  { %814 = vmatpush.msrb.mxu3 %v2368_v32 }
 0x626   :  { %815 = vmatpush.msrb.mxu3 %v2381_v33 }
 0x628   :  { %816 = vmatpush.msrb.mxu3 %v2386_v34 }
 0x62a   :  { %817 = vmatpush.msrb.mxu3 %v2395_v35 }
 0x62c   :  { %818 = vmatpush.msrb.mxu3 %v2404_v36 }
 0x670   :  { %v546_v26 = vpop.f32.mrf.mxu3 }
 0x671   :  { %v547_v27 = vadd.f32 %v2457_v41, %v546_v26 }
 0x673   :  { %v549_v29 = vmul.f32 0.1, %v547_v27  ;;  %v574_v30 = vmul.f32 2.0, %v547_v27 }
 0x675   :  { %v550_v31 = vadd.f32 %v549_v29, %v2718_v63  ;;  %v575_v32 = vadd.f32 %v574_v30, %v573_v28 }
 0x677   :  { %v551_v49 = vmax.f32 %v550_v31, 0.0 }
 0x678   :  { %v3144_v29 = vpop.f32.mrf.mxu3 }
 0x679   :  { %568 = vmatmul.f32.vlgmr.msrb.gmra.mxu0 %v551_v49 }
 0x67a   :  { %736 = vmatpush.msrb.mxu0 %v2763_v11 }
 0x67c   :  { %737 = vmatpush.msrb.mxu0 %v2769_v12 }
 0x67e   :  { %738 = vmatpush.msrb.mxu0 %v2775_v1 }
 0x680   :  { %739 = vmatpush.msrb.mxu0 %v2781_v3 }
 0x681   :  { %655 = vmatmul.f32.vlgmr.msra.gmra.mxu0 %v551_v49 }
 0x682   :  { %740 = vmatpush.msrb.mxu0 %v2787_v7 }
 0x684   :  { %741 = vmatpush.msrb.mxu0 %v2793_v37 }
 0x686   :  { %742 = vmatpush.msrb.mxu0 %v2799_v38 }
 0x688   :  { %743 = vmatpush.msrb.mxu0 %v2805_v39 }
 0x68a   :  { %744 = vmatpush.msrb.mxu0 %v2847_v19 }
 0x68c   :  { %745 = vmatpush.msrb.mxu0 %v2853_v20 }
 0x68e   :  { %746 = vmatpush.msrb.mxu0 %v2859_v21 }
 0x690   :  { %747 = vmatpush.msrb.mxu0 %v2865_v22 }
 0x692   :  { %748 = vmatpush.msrb.mxu0 %v2871_v23 }
 0x694   :  { %749 = vmatpush.msrb.mxu0 %v2877_v40 }
 0x696   :  { %750 = vmatpush.msrb.mxu0 %v2883_v43 }
 0x698   :  { %751 = vmatpush.msrb.mxu0 %v2889_v44 }
 0x69a   :  { %823 = vmatpush.msra.mxu0 %v2895_v45 }
 0x69c   :  { %824 = vmatpush.msra.mxu0 %v2901_v46 }
 0x69e   :  { %825 = vmatpush.msra.mxu0 %v2907_v47 }
 0x6a0   :  { %826 = vmatpush.msra.mxu0 %v2950_v50 }
 0x6a2   :  { %827 = vmatpush.msra.mxu0 %v2956_v51 }
 0x6a4   :  { %828 = vmatpush.msra.mxu0 %v2962_v52 }
 0x6a6   :  { %829 = vmatpush.msra.mxu0 %v2968_v53 }
 0x6a8   :  { %830 = vmatpush.msra.mxu0 %v2974_v54 }
 0x6aa   :  { %831 = vmatpush.msra.mxu0 %v2980_v55 }
 0x6ac   :  { %832 = vmatpush.msra.mxu0 %v2986_v56 }
 0x6ae   :  { %833 = vmatpush.msra.mxu0 %v2992_v57 }
 0x6b0   :  { %834 = vmatpush.msra.mxu0 %v2998_v59 }
 0x6b2   :  { %835 = vmatpush.msra.mxu0 %v2381_v33  ;;  %v3043_v33 = vld [vmem:[%s4185_s3 + $0x18] sm:$0xff] }
 0x6b4   :  { %836 = vmatpush.msra.mxu0 %v2386_v34  ;;  %v3049_v34 = vld [vmem:[%s4185_s3 + $0x10] sm:$0xff] }
 0x6b6   :  { %837 = vmatpush.msra.mxu0 %v2395_v35  ;;  %v3055_v35 = vld [vmem:[%s4185_s3 + $0x8] sm:$0xff] }
 0x6b8   :  { %838 = vmatpush.msra.mxu0 %v2404_v36  ;;  %v3061_v36 = vld [vmem:[%s4185_s3] sm:$0xff] }
 0x6f6   :  { %v569_v61 = vpop.f32.mrf.mxu0 }
 0x6f7   :  { %v570_v62 = vadd.f32 %v2457_v41, %v569_v61 }
 0x6f9   :  { %v576_v0 = vadd.f32 %v575_v32, %v570_v62 }
 0x6fb   :  { %v577_v4 = vmul.f32 0.016666668, %v576_v0 }
 0x6fd   :  { %v3009_v5 = vadd.f32 %v577_v4, %v2718_v63  ;;  %v3064_v63 = vpop.f32.mrf.mxu1 }
 0x6ff   :  { %v666_v8 = vmax.f32 %v3009_v5, 0.0 }
 0x701   :  { %683 = vmatmul.f32.vlgmr.msra.gmra.mxu1 %v666_v8 }
 0x702   :  { %851 = vmatpush.msra.mxu1 %v2763_v11 }
 0x704   :  { %852 = vmatpush.msra.mxu1 %v2769_v12 }
 0x706   :  { %853 = vmatpush.msra.mxu1 %v2775_v1 }
 0x708   :  { %854 = vmatpush.msra.mxu1 %v2781_v3 }
 0x709   :  { %779 = vmatmul.f32.vlgmr.msrb.gmra.mxu1 %v666_v8 }
 0x70a   :  { %855 = vmatpush.msra.mxu1 %v2787_v7 }
 0x70c   :  { %856 = vmatpush.msra.mxu1 %v2793_v37 }
 0x70e   :  { %857 = vmatpush.msra.mxu1 %v2799_v38 }
 0x710   :  { %858 = vmatpush.msra.mxu1 %v2805_v39 }
 0x712   :  { %859 = vmatpush.msra.mxu1 %v2847_v19 }
 0x714   :  { %860 = vmatpush.msra.mxu1 %v2853_v20 }
 0x716   :  { %861 = vmatpush.msra.mxu1 %v2859_v21 }
 0x718   :  { %862 = vmatpush.msra.mxu1 %v2865_v22 }
 0x71a   :  { %863 = vmatpush.msra.mxu1 %v2871_v23 }
 0x71c   :  { %864 = vmatpush.msra.mxu1 %v2877_v40 }
 0x71e   :  { %865 = vmatpush.msra.mxu1 %v2883_v43 }
 0x720   :  { %866 = vmatpush.msra.mxu1 %v2889_v44 }
 0x722   :  { %947 = vmatpush.msrb.mxu1 %v2895_v45 }
 0x724   :  { %948 = vmatpush.msrb.mxu1 %v2901_v46 }
 0x726   :  { %949 = vmatpush.msrb.mxu1 %v2907_v47 }
 0x728   :  { %950 = vmatpush.msrb.mxu1 %v2950_v50 }
 0x72a   :  { %951 = vmatpush.msrb.mxu1 %v2956_v51 }
 0x72c   :  { %952 = vmatpush.msrb.mxu1 %v2962_v52 }
 0x72e   :  { %953 = vmatpush.msrb.mxu1 %v2968_v53 }
 0x730   :  { %954 = vmatpush.msrb.mxu1 %v2974_v54 }
 0x732   :  { %955 = vmatpush.msrb.mxu1 %v2980_v55 }
 0x734   :  { %956 = vmatpush.msrb.mxu1 %v2986_v56 }
 0x736   :  { %957 = vmatpush.msrb.mxu1 %v2992_v57 }
 0x738   :  { %958 = vmatpush.msrb.mxu1 %v2998_v59 }
 0x73a   :  { %959 = vmatpush.msrb.mxu1 %v3043_v33 }
 0x73c   :  { %960 = vmatpush.msrb.mxu1 %v3049_v34 }
 0x73e   :  { %961 = vmatpush.msrb.mxu1 %v3055_v35 }
 0x740   :  { %962 = vmatpush.msrb.mxu1 %v3061_v36 }
 0x77e   :  { %v684_v9 = vpop.f32.mrf.mxu1 }
 0x77f   :  { %v3067_v10 = vadd.f32 %v2457_v41, %v684_v9  ;;  %v3103_v41 = vpop.f32.mrf.mxu2  ;;  %v3181_v9 = vpop.f32.mrf.mxu0 }
 0x781   :  { %v687_v14 = vmul.f32 0.05, %v3067_v10 }
 0x783   :  { %v688_v15 = vadd.f32 %v687_v14, %v3009_v5 }
 0x785   :  { %v689_v16 = vmax.f32 %v688_v15, 0.0 }
 0x787   :  { %706 = vmatmul.f32.vlgmr.msra.gmra.mxu2 %v689_v16 }
 0x788   :  { %874 = vmatpush.msra.mxu2 %v2763_v11 }
 0x78a   :  { %875 = vmatpush.msra.mxu2 %v2769_v12 }
 0x78c   :  { %876 = vmatpush.msra.mxu2 %v2775_v1 }
 0x78e   :  { %877 = vmatpush.msra.mxu2 %v2781_v3 }
 0x78f   :  { %799 = vmatmul.f32.vlgmr.msrb.gmra.mxu2 %v689_v16 }
 0x790   :  { %878 = vmatpush.msra.mxu2 %v2787_v7 }
 0x792   :  { %879 = vmatpush.msra.mxu2 %v2793_v37 }
 0x794   :  { %880 = vmatpush.msra.mxu2 %v2799_v38 }
 0x796   :  { %881 = vmatpush.msra.mxu2 %v2805_v39 }
 0x798   :  { %882 = vmatpush.msra.mxu2 %v2847_v19 }
 0x79a   :  { %883 = vmatpush.msra.mxu2 %v2853_v20 }
 0x79c   :  { %884 = vmatpush.msra.mxu2 %v2859_v21 }
 0x79e   :  { %885 = vmatpush.msra.mxu2 %v2865_v22 }
 0x7a0   :  { %886 = vmatpush.msra.mxu2 %v2871_v23 }
 0x7a2   :  { %887 = vmatpush.msra.mxu2 %v2877_v40 }
 0x7a4   :  { %888 = vmatpush.msra.mxu2 %v2883_v43 }
 0x7a6   :  { %889 = vmatpush.msra.mxu2 %v2889_v44 }
 0x7a8   :  { %967 = vmatpush.msrb.mxu2 %v2895_v45 }
 0x7aa   :  { %968 = vmatpush.msrb.mxu2 %v2901_v46 }
 0x7ac   :  { %969 = vmatpush.msrb.mxu2 %v2907_v47 }
 0x7ae   :  { %970 = vmatpush.msrb.mxu2 %v2950_v50 }
 0x7b0   :  { %971 = vmatpush.msrb.mxu2 %v2956_v51 }
 0x7b2   :  { %972 = vmatpush.msrb.mxu2 %v2962_v52 }
 0x7b4   :  { %973 = vmatpush.msrb.mxu2 %v2968_v53 }
 0x7b6   :  { %974 = vmatpush.msrb.mxu2 %v2974_v54 }
 0x7b8   :  { %975 = vmatpush.msrb.mxu2 %v2980_v55 }
 0x7ba   :  { %976 = vmatpush.msrb.mxu2 %v2986_v56 }
 0x7bc   :  { %977 = vmatpush.msrb.mxu2 %v2992_v57 }
 0x7be   :  { %978 = vmatpush.msrb.mxu2 %v2998_v59 }
 0x7c0   :  { %979 = vmatpush.msrb.mxu2 %v3043_v33 }
 0x7c2   :  { %980 = vmatpush.msrb.mxu2 %v3049_v34 }
 0x7c4   :  { %981 = vmatpush.msrb.mxu2 %v3055_v35 }
 0x7c6   :  { %982 = vmatpush.msrb.mxu2 %v3061_v36 }
 0x80a   :  { %v707_v17 = vpop.f32.mrf.mxu2 }
 0x80b   :  { %v708_v25 = vadd.f32 %v3108_v18, %v707_v17 }
 0x80d   :  { %v710_v26 = vmul.f32 0.05, %v708_v25  ;;  %v756_v30 = vmul.f32 2.0, %v708_v25 }
 0x80f   :  { %v711_v27 = vadd.f32 %v710_v26, %v3009_v5  ;;  %v757_v49 = vadd.f32 %v756_v30, %v3067_v10 }
 0x811   :  { %v712_v28 = vmax.f32 %v711_v27, 0.0 }
 0x813   :  { %729 = vmatmul.f32.vlgmr.msra.gmra.mxu3 %v712_v28 }
 0x814   :  { %897 = vmatpush.msra.mxu3 %v2763_v11 }
 0x816   :  { %898 = vmatpush.msra.mxu3 %v2769_v12 }
 0x818   :  { %899 = vmatpush.msra.mxu3 %v2775_v1 }
 0x81a   :  { %900 = vmatpush.msra.mxu3 %v2781_v3 }
 0x81b   :  { %819 = vmatmul.f32.vlgmr.msrb.gmra.mxu3 %v712_v28 }
 0x81c   :  { %901 = vmatpush.msra.mxu3 %v2787_v7 }
 0x81e   :  { %902 = vmatpush.msra.mxu3 %v2793_v37 }
 0x820   :  { %903 = vmatpush.msra.mxu3 %v2799_v38 }
 0x822   :  { %904 = vmatpush.msra.mxu3 %v2805_v39 }
 0x824   :  { %905 = vmatpush.msra.mxu3 %v2847_v19 }
 0x826   :  { %906 = vmatpush.msra.mxu3 %v2853_v20 }
 0x828   :  { %907 = vmatpush.msra.mxu3 %v2859_v21 }
 0x82a   :  { %908 = vmatpush.msra.mxu3 %v2865_v22 }
 0x82c   :  { %909 = vmatpush.msra.mxu3 %v2871_v23 }
 0x82e   :  { %910 = vmatpush.msra.mxu3 %v2877_v40 }
 0x830   :  { %911 = vmatpush.msra.mxu3 %v2883_v43 }
 0x832   :  { %912 = vmatpush.msra.mxu3 %v2889_v44 }
 0x834   :  { %987 = vmatpush.msrb.mxu3 %v2895_v45 }
 0x836   :  { %988 = vmatpush.msrb.mxu3 %v2901_v46 }
 0x838   :  { %989 = vmatpush.msrb.mxu3 %v2907_v47 }
 0x83a   :  { %990 = vmatpush.msrb.mxu3 %v2950_v50 }
 0x83c   :  { %991 = vmatpush.msrb.mxu3 %v2956_v51 }
 0x83e   :  { %992 = vmatpush.msrb.mxu3 %v2962_v52 }
 0x840   :  { %993 = vmatpush.msrb.mxu3 %v2968_v53 }
 0x842   :  { %994 = vmatpush.msrb.mxu3 %v2974_v54 }
 0x844   :  { %995 = vmatpush.msrb.mxu3 %v2980_v55 }
 0x846   :  { %996 = vmatpush.msrb.mxu3 %v2986_v56 }
 0x848   :  { %997 = vmatpush.msrb.mxu3 %v2992_v57 }
 0x84a   :  { %998 = vmatpush.msrb.mxu3 %v2998_v59 }
 0x84c   :  { %999 = vmatpush.msrb.mxu3 %v3043_v33 }
 0x84e   :  { %1000 = vmatpush.msrb.mxu3 %v3049_v34 }
 0x850   :  { %1001 = vmatpush.msrb.mxu3 %v3055_v35 }
 0x852   :  { %1002 = vmatpush.msrb.mxu3 %v3061_v36 }
 0x896   :  { %v730_v31 = vpop.f32.mrf.mxu3 }
 0x897   :  { %v731_v32 = vadd.f32 %v3108_v18, %v730_v31 }
 0x899   :  { %v733_v61 = vmul.f32 0.1, %v731_v32  ;;  %v758_v62 = vmul.f32 2.0, %v731_v32  ;;  %v3259_v32 = vpop.f32.mrf.mxu2 }
 0x89b   :  { %v734_v0 = vadd.f32 %v733_v61, %v3009_v5  ;;  %v759_v4 = vadd.f32 %v758_v62, %v757_v49 }
 0x89d   :  { %v735_v8 = vmax.f32 %v734_v0, 0.0 }
 0x89f   :  { %752 = vmatmul.f32.vlgmr.msrb.gmra.mxu0 %v735_v8 }
 0x8a0   :  { %920 = vmatpush.msrb.mxu0 %v2763_v11 }
 0x8a2   :  { %921 = vmatpush.msrb.mxu0 %v2769_v12 }
 0x8a4   :  { %922 = vmatpush.msrb.mxu0 %v2775_v1 }
 0x8a6   :  { %923 = vmatpush.msrb.mxu0 %v2781_v3 }
 0x8a7   :  { %839 = vmatmul.f32.vlgmr.msra.gmra.mxu0 %v735_v8  ;;  %v3295_v8 = vpop.f32.mrf.mxu3 }
 0x8a8   :  { %924 = vmatpush.msrb.mxu0 %v2787_v7 }
 0x8aa   :  { %925 = vmatpush.msrb.mxu0 %v2793_v37 }
 0x8ac   :  { %926 = vmatpush.msrb.mxu0 %v2799_v38 }
 0x8ae   :  { %927 = vmatpush.msrb.mxu0 %v2805_v39 }
 0x8b0   :  { %928 = vmatpush.msrb.mxu0 %v2847_v19 }
 0x8b2   :  { %929 = vmatpush.msrb.mxu0 %v2853_v20 }
 0x8b4   :  { %930 = vmatpush.msrb.mxu0 %v2859_v21 }
 0x8b6   :  { %931 = vmatpush.msrb.mxu0 %v2865_v22 }
 0x8b8   :  { %932 = vmatpush.msrb.mxu0 %v2871_v23 }
 0x8ba   :  { %933 = vmatpush.msrb.mxu0 %v2877_v40 }
 0x8bc   :  { %934 = vmatpush.msrb.mxu0 %v2883_v43 }
 0x8be   :  { %935 = vmatpush.msrb.mxu0 %v2889_v44 }
 0x8c0   :  { %1007 = vmatpush.msra.mxu0 %v2895_v45 }
 0x8c2   :  { %1008 = vmatpush.msra.mxu0 %v2901_v46 }
 0x8c4   :  { %1009 = vmatpush.msra.mxu0 %v2907_v47 }
 0x8c6   :  { %1010 = vmatpush.msra.mxu0 %v2950_v50 }
 0x8c8   :  { %1011 = vmatpush.msra.mxu0 %v2956_v51 }
 0x8ca   :  { %1012 = vmatpush.msra.mxu0 %v2962_v52 }
 0x8cc   :  { %1013 = vmatpush.msra.mxu0 %v2968_v53 }
 0x8ce   :  { %1014 = vmatpush.msra.mxu0 %v2974_v54 }
 0x8d0   :  { %1015 = vmatpush.msra.mxu0 %v2980_v55 }
 0x8d2   :  { %1016 = vmatpush.msra.mxu0 %v2986_v56 }
 0x8d4   :  { %1017 = vmatpush.msra.mxu0 %v2992_v57 }
 0x8d6   :  { %1018 = vmatpush.msra.mxu0 %v2998_v59 }
 0x8d8   :  { %1019 = vmatpush.msra.mxu0 %v3043_v33 }
 0x8da   :  { %1020 = vmatpush.msra.mxu0 %v3049_v34 }
 0x8dc   :  { %1021 = vmatpush.msra.mxu0 %v3055_v35 }
 0x8de   :  { %1022 = vmatpush.msra.mxu0 %v3061_v36 }
 0x91c   :  { %v753_v10 = vpop.f32.mrf.mxu0 }
 0x91d   :  { %v754_v14 = vadd.f32 %v3108_v18, %v753_v10 }
 0x91f   :  { %v760_v15 = vadd.f32 %v759_v4, %v754_v14 }
 0x921   :  { %v761_v16 = vmul.f32 0.016666668, %v760_v15 }
 0x923   :  { %v3185_v17 = vadd.f32 %v761_v16, %v3009_v5  ;;  %v3220_v5 = vpop.f32.mrf.mxu1 }
 0x925   :  { %v850_v25 = vmax.f32 %v3185_v17, 0.0 }
 0x927   :  { %867 = vmatmul.f32.vlgmr.msra.gmra.mxu1 %v850_v25 }
 0x928   :  { %1035 = vmatpush.msra.mxu1 %v2763_v11 }
 0x92a   :  { %1036 = vmatpush.msra.mxu1 %v2769_v12 }
 0x92c   :  { %1037 = vmatpush.msra.mxu1 %v2775_v1 }
 0x92e   :  { %1038 = vmatpush.msra.mxu1 %v2781_v3 }
 0x92f   :  { %963 = vmatmul.f32.vlgmr.msrb.gmra.mxu1 %v850_v25 }
 0x930   :  { %1039 = vmatpush.msra.mxu1 %v2787_v7 }
 0x932   :  { %1040 = vmatpush.msra.mxu1 %v2793_v37 }
 0x934   :  { %1041 = vmatpush.msra.mxu1 %v2799_v38 }
 0x936   :  { %1042 = vmatpush.msra.mxu1 %v2805_v39 }
 0x938   :  { %1043 = vmatpush.msra.mxu1 %v2847_v19 }
 0x93a   :  { %1044 = vmatpush.msra.mxu1 %v2853_v20 }
 0x93c   :  { %1045 = vmatpush.msra.mxu1 %v2859_v21 }
 0x93e   :  { %1046 = vmatpush.msra.mxu1 %v2865_v22 }
 0x940   :  { %1047 = vmatpush.msra.mxu1 %v2871_v23 }
 0x942   :  { %1048 = vmatpush.msra.mxu1 %v2877_v40 }
 0x944   :  { %1049 = vmatpush.msra.mxu1 %v2883_v43 }
 0x946   :  { %1050 = vmatpush.msra.mxu1 %v2889_v44 }
 0x948   :  { %1131 = vmatpush.msrb.mxu1 %v2895_v45 }
 0x94a   :  { %1132 = vmatpush.msrb.mxu1 %v2901_v46 }
 0x94c   :  { %1133 = vmatpush.msrb.mxu1 %v2907_v47 }
 0x94e   :  { %1134 = vmatpush.msrb.mxu1 %v2950_v50 }
 0x950   :  { %1135 = vmatpush.msrb.mxu1 %v2956_v51 }
 0x952   :  { %1136 = vmatpush.msrb.mxu1 %v2962_v52 }
 0x954   :  { %1137 = vmatpush.msrb.mxu1 %v2968_v53 }
 0x956   :  { %1138 = vmatpush.msrb.mxu1 %v2974_v54 }
 0x958   :  { %1139 = vmatpush.msrb.mxu1 %v2980_v55 }
 0x95a   :  { %1140 = vmatpush.msrb.mxu1 %v2986_v56 }
 0x95c   :  { %1141 = vmatpush.msrb.mxu1 %v2992_v57 }
 0x95e   :  { %1142 = vmatpush.msrb.mxu1 %v2998_v59 }
 0x960   :  { %1143 = vmatpush.msrb.mxu1 %v3043_v33 }
 0x962   :  { %1144 = vmatpush.msrb.mxu1 %v3049_v34 }
 0x964   :  { %1145 = vmatpush.msrb.mxu1 %v3055_v35 }
 0x966   :  { %1146 = vmatpush.msrb.mxu1 %v3061_v36 }
 0x9a4   :  { %v868_v26 = vpop.f32.mrf.mxu1 }
 0x9a5   :  { %v3223_v27 = vadd.f32 %v3108_v18, %v868_v26 }
 0x9a7   :  { %v871_v28 = vmul.f32 0.05, %v3223_v27 }
 0x9a9   :  { %v872_v30 = vadd.f32 %v871_v28, %v3185_v17 }
 0x9ab   :  { %v873_v31 = vmax.f32 %v872_v30, 0.0 }
 0x9ad   :  { %890 = vmatmul.f32.vlgmr.msra.gmra.mxu2 %v873_v31 }
 0x9ae   :  { %1058 = vmatpush.msra.mxu2 %v2763_v11 }
 0x9b0   :  { %1059 = vmatpush.msra.mxu2 %v2769_v12 }
 0x9b2   :  { %1060 = vmatpush.msra.mxu2 %v2775_v1 }
 0x9b4   :  { %1061 = vmatpush.msra.mxu2 %v2781_v3 }
 0x9b5   :  { %983 = vmatmul.f32.vlgmr.msrb.gmra.mxu2 %v873_v31 }
 0x9b6   :  { %1062 = vmatpush.msra.mxu2 %v2787_v7 }
 0x9b8   :  { %1063 = vmatpush.msra.mxu2 %v2793_v37 }
 0x9ba   :  { %1064 = vmatpush.msra.mxu2 %v2799_v38 }
 0x9bc   :  { %1065 = vmatpush.msra.mxu2 %v2805_v39 }
 0x9be   :  { %1066 = vmatpush.msra.mxu2 %v2847_v19 }
 0x9c0   :  { %1067 = vmatpush.msra.mxu2 %v2853_v20 }
 0x9c2   :  { %1068 = vmatpush.msra.mxu2 %v2859_v21 }
 0x9c4   :  { %1069 = vmatpush.msra.mxu2 %v2865_v22 }
 0x9c6   :  { %1070 = vmatpush.msra.mxu2 %v2871_v23 }
 0x9c8   :  { %1071 = vmatpush.msra.mxu2 %v2877_v40 }
 0x9ca   :  { %1072 = vmatpush.msra.mxu2 %v2883_v43 }
 0x9cc   :  { %1073 = vmatpush.msra.mxu2 %v2889_v44 }
 0x9ce   :  { %1151 = vmatpush.msrb.mxu2 %v2895_v45 }
 0x9d0   :  { %1152 = vmatpush.msrb.mxu2 %v2901_v46 }
 0x9d2   :  { %1153 = vmatpush.msrb.mxu2 %v2907_v47 }
 0x9d4   :  { %1154 = vmatpush.msrb.mxu2 %v2950_v50 }
 0x9d6   :  { %1155 = vmatpush.msrb.mxu2 %v2956_v51 }
 0x9d8   :  { %1156 = vmatpush.msrb.mxu2 %v2962_v52 }
 0x9da   :  { %1157 = vmatpush.msrb.mxu2 %v2968_v53 }
 0x9dc   :  { %1158 = vmatpush.msrb.mxu2 %v2974_v54 }
 0x9de   :  { %1159 = vmatpush.msrb.mxu2 %v2980_v55 }
 0x9e0   :  { %1160 = vmatpush.msrb.mxu2 %v2986_v56 }
 0x9e2   :  { %1161 = vmatpush.msrb.mxu2 %v2992_v57 }
 0x9e4   :  { %1162 = vmatpush.msrb.mxu2 %v2998_v59 }
 0x9e6   :  { %1163 = vmatpush.msrb.mxu2 %v3043_v33 }
 0x9e8   :  { %1164 = vmatpush.msrb.mxu2 %v3049_v34 }
 0x9ea   :  { %1165 = vmatpush.msrb.mxu2 %v3055_v35 }
 0x9ec   :  { %1166 = vmatpush.msrb.mxu2 %v3061_v36 }
 0xa30   :  { %v891_v49 = vpop.f32.mrf.mxu2 }
 0xa31   :  { %v892_v61 = vadd.f32 %v3108_v18, %v891_v49 }
 0xa33   :  { %v894_v62 = vmul.f32 0.05, %v892_v61  ;;  %v940_v10 = vmul.f32 2.0, %v892_v61 }
 0xa35   :  { %v895_v0 = vadd.f32 %v894_v62, %v3185_v17  ;;  %v941_v16 = vadd.f32 %v940_v10, %v3223_v27  ;;  %v3332_v27 = vpop.f32.mrf.mxu0 }
 0xa36   :  { %4190 = vst [vmem:[#allocation8_spill] sm:$0xff] %v3332_v27 }
 0xa37   :  { %v896_v4 = vmax.f32 %v895_v0, 0.0 }
 0xa39   :  { %913 = vmatmul.f32.vlgmr.msra.gmra.mxu3 %v896_v4 }
 0xa3a   :  { %1081 = vmatpush.msra.mxu3 %v2763_v11 }
 0xa3c   :  { %1082 = vmatpush.msra.mxu3 %v2769_v12 }
 0xa3e   :  { %1083 = vmatpush.msra.mxu3 %v2775_v1 }
 0xa40   :  { %1084 = vmatpush.msra.mxu3 %v2781_v3 }
 0xa41   :  { %1003 = vmatmul.f32.vlgmr.msrb.gmra.mxu3 %v896_v4 }
 0xa42   :  { %1085 = vmatpush.msra.mxu3 %v2787_v7 }
 0xa44   :  { %1086 = vmatpush.msra.mxu3 %v2793_v37 }
 0xa46   :  { %1087 = vmatpush.msra.mxu3 %v2799_v38 }
 0xa48   :  { %1088 = vmatpush.msra.mxu3 %v2805_v39 }
 0xa4a   :  { %1089 = vmatpush.msra.mxu3 %v2847_v19 }
 0xa4c   :  { %1090 = vmatpush.msra.mxu3 %v2853_v20 }
 0xa4e   :  { %1091 = vmatpush.msra.mxu3 %v2859_v21 }
 0xa50   :  { %1092 = vmatpush.msra.mxu3 %v2865_v22 }
 0xa52   :  { %1093 = vmatpush.msra.mxu3 %v2871_v23 }
 0xa54   :  { %1094 = vmatpush.msra.mxu3 %v2877_v40 }
 0xa56   :  { %1095 = vmatpush.msra.mxu3 %v2883_v43 }
 0xa58   :  { %1096 = vmatpush.msra.mxu3 %v2889_v44 }
 0xa5a   :  { %1171 = vmatpush.msrb.mxu3 %v2895_v45 }
 0xa5c   :  { %1172 = vmatpush.msrb.mxu3 %v2901_v46 }
 0xa5e   :  { %1173 = vmatpush.msrb.mxu3 %v2907_v47 }
 0xa60   :  { %1174 = vmatpush.msrb.mxu3 %v2950_v50 }
 0xa62   :  { %1175 = vmatpush.msrb.mxu3 %v2956_v51 }
 0xa64   :  { %1176 = vmatpush.msrb.mxu3 %v2962_v52 }
 0xa66   :  { %1177 = vmatpush.msrb.mxu3 %v2968_v53 }
 0xa68   :  { %1178 = vmatpush.msrb.mxu3 %v2974_v54 }
 0xa6a   :  { %1179 = vmatpush.msrb.mxu3 %v2980_v55 }
 0xa6c   :  { %1180 = vmatpush.msrb.mxu3 %v2986_v56 }
 0xa6e   :  { %1181 = vmatpush.msrb.mxu3 %v2992_v57 }
 0xa70   :  { %1182 = vmatpush.msrb.mxu3 %v2998_v59 }
 0xa72   :  { %1183 = vmatpush.msrb.mxu3 %v3043_v33 }
 0xa74   :  { %1184 = vmatpush.msrb.mxu3 %v3049_v34 }
 0xa76   :  { %1185 = vmatpush.msrb.mxu3 %v3055_v35 }
 0xa78   :  { %1186 = vmatpush.msrb.mxu3 %v3061_v36 }
 0xabc   :  { %v914_v14 = vpop.f32.mrf.mxu3 }
 0xabd   :  { %v915_v15 = vadd.f32 %v3108_v18, %v914_v14 }
 0xabf   :  { %v917_v25 = vmul.f32 0.1, %v915_v15  ;;  %v942_v26 = vmul.f32 2.0, %v915_v15 }
 0xac1   :  { %v918_v28 = vadd.f32 %v917_v25, %v3185_v17  ;;  %v943_v30 = vadd.f32 %v942_v26, %v941_v16 }
 0xac3   :  { %v919_v31 = vmax.f32 %v918_v28, 0.0  ;;  %v3429_v28 = vld [vmem:[%s4187_s5 + $0x68] sm:$0xff] }
 0xac5   :  { %936 = vmatmul.f32.vlgmr.msrb.gmra.mxu0 %v919_v31 }
 0xac6   :  { %1104 = vmatpush.msrb.mxu0 %v2763_v11 }
 0xac8   :  { %1105 = vmatpush.msrb.mxu0 %v2769_v12 }
 0xaca   :  { %1106 = vmatpush.msrb.mxu0 %v2775_v1 }
 0xacc   :  { %1107 = vmatpush.msrb.mxu0 %v2781_v3 }
 0xacd   :  { %1023 = vmatmul.f32.vlgmr.msra.gmra.mxu0 %v919_v31  ;;  %v3441_v31 = vld [vmem:[%s4187_s5 + $0x58] sm:$0xff] }
 0xace   :  { %1108 = vmatpush.msrb.mxu0 %v2787_v7 }
 0xad0   :  { %1109 = vmatpush.msrb.mxu0 %v2793_v37 }
 0xad2   :  { %1110 = vmatpush.msrb.mxu0 %v2799_v38 }
 0xad4   :  { %1111 = vmatpush.msrb.mxu0 %v2805_v39 }
 0xad6   :  { %1112 = vmatpush.msrb.mxu0 %v2847_v19 }
 0xad8   :  { %1113 = vmatpush.msrb.mxu0 %v2853_v20 }
 0xada   :  { %1114 = vmatpush.msrb.mxu0 %v2859_v21 }
 0xadc   :  { %1115 = vmatpush.msrb.mxu0 %v2865_v22 }
 0xade   :  { %1116 = vmatpush.msrb.mxu0 %v2871_v23 }
 0xae0   :  { %1117 = vmatpush.msrb.mxu0 %v2877_v40 }
 0xae2   :  { %1118 = vmatpush.msrb.mxu0 %v2883_v43 }
 0xae4   :  { %1119 = vmatpush.msrb.mxu0 %v2889_v44 }
 0xae6   :  { %1191 = vmatpush.msra.mxu0 %v2895_v45 }
 0xae8   :  { %1192 = vmatpush.msra.mxu0 %v2901_v46 }
 0xaea   :  { %1193 = vmatpush.msra.mxu0 %v2907_v47 }
 0xaec   :  { %1194 = vmatpush.msra.mxu0 %v2950_v50 }
 0xaee   :  { %1195 = vmatpush.msra.mxu0 %v2956_v51 }
 0xaf0   :  { %1196 = vmatpush.msra.mxu0 %v2962_v52 }
 0xaf2   :  { %1197 = vmatpush.msra.mxu0 %v2968_v53 }
 0xaf4   :  { %1198 = vmatpush.msra.mxu0 %v2974_v54 }
 0xaf6   :  { %1199 = vmatpush.msra.mxu0 %v2980_v55 }
 0xaf8   :  { %1200 = vmatpush.msra.mxu0 %v2986_v56 }
 0xafa   :  { %1201 = vmatpush.msra.mxu0 %v2992_v57 }
 0xafc   :  { %1202 = vmatpush.msra.mxu0 %v2998_v59 }
 0xafe   :  { %1203 = vmatpush.msra.mxu0 %v3043_v33 }
 0xb00   :  { %1204 = vmatpush.msra.mxu0 %v3049_v34 }
 0xb02   :  { %1205 = vmatpush.msra.mxu0 %v3055_v35 }
 0xb04   :  { %1206 = vmatpush.msra.mxu0 %v3061_v36 }
 0xb42   :  { %v937_v49 = vpop.f32.mrf.mxu0 }
 0xb43   :  { %v938_v61 = vadd.f32 %v3108_v18, %v937_v49  ;;  %v3447_v49 = vld [vmem:[%s4187_s5 + $0x50] sm:$0xff] }
 0xb45   :  { %v944_v62 = vadd.f32 %v943_v30, %v938_v61  ;;  %v3435_v30 = vld [vmem:[%s4187_s5 + $0x60] sm:$0xff]  ;;  %v3453_v61 = vld [vmem:[%s4187_s5 + $0x48] sm:$0xff] }
 0xb47   :  { %v945_v0 = vmul.f32 0.016666668, %v944_v62  ;;  %v3459_v62 = vld [vmem:[%s4187_s5 + $0x40] sm:$0xff] }
 0xb49   :  { %v3336_v4 = vadd.f32 %v945_v0, %v3185_v17  ;;  %v3371_v17 = vpop.f32.mrf.mxu1  ;;  %v3508_v0 = vld [vmem:[%s4187_s5 + $0x30] sm:$0xff] }
 0xb4a   :  { %4191 = vst [vmem:[#allocation9_spill] sm:$0xff] %v3371_v17 }
 0xb4b   :  { %v1034_v10 = vmax.f32 %v3336_v4, 0.0 }
 0xb4d   :  { %1051 = vmatmul.f32.vlgmr.msra.gmra.mxu1 %v1034_v10 }
 0xb4e   :  { %1219 = vmatpush.msra.mxu1 %v2763_v11 }
 0xb50   :  { %1220 = vmatpush.msra.mxu1 %v2769_v12 }
 0xb52   :  { %1221 = vmatpush.msra.mxu1 %v2775_v1 }
 0xb54   :  { %1222 = vmatpush.msra.mxu1 %v2781_v3 }
 0xb55   :  { %1147 = vmatmul.f32.vlgmr.msrb.gmra.mxu1 %v1034_v10  ;;  %v3514_v10 = vld [vmem:[%s4187_s5 + $0x28] sm:$0xff] }
 0xb56   :  { %1223 = vmatpush.msra.mxu1 %v2787_v7 }
 0xb58   :  { %1224 = vmatpush.msra.mxu1 %v2793_v37 }
 0xb5a   :  { %1225 = vmatpush.msra.mxu1 %v2799_v38 }
 0xb5c   :  { %1226 = vmatpush.msra.mxu1 %v2805_v39 }
 0xb5e   :  { %1227 = vmatpush.msra.mxu1 %v2847_v19 }
 0xb60   :  { %1228 = vmatpush.msra.mxu1 %v2853_v20 }
 0xb62   :  { %1229 = vmatpush.msra.mxu1 %v2859_v21 }
 0xb64   :  { %1230 = vmatpush.msra.mxu1 %v2865_v22 }
 0xb66   :  { %1231 = vmatpush.msra.mxu1 %v2871_v23 }
 0xb68   :  { %1232 = vmatpush.msra.mxu1 %v2877_v40 }
 0xb6a   :  { %1233 = vmatpush.msra.mxu1 %v2883_v43 }
 0xb6c   :  { %1234 = vmatpush.msra.mxu1 %v2889_v44 }
 0xb6e   :  { %1315 = vmatpush.msrb.mxu1 %v2895_v45 }
 0xb70   :  { %1316 = vmatpush.msrb.mxu1 %v2901_v46 }
 0xb72   :  { %1317 = vmatpush.msrb.mxu1 %v2907_v47 }
 0xb74   :  { %1318 = vmatpush.msrb.mxu1 %v2950_v50 }
 0xb76   :  { %1319 = vmatpush.msrb.mxu1 %v2956_v51 }
 0xb78   :  { %1320 = vmatpush.msrb.mxu1 %v2962_v52 }
 0xb7a   :  { %1321 = vmatpush.msrb.mxu1 %v2968_v53 }
 0xb7c   :  { %1322 = vmatpush.msrb.mxu1 %v2974_v54 }
 0xb7e   :  { %1323 = vmatpush.msrb.mxu1 %v2980_v55 }
 0xb80   :  { %1324 = vmatpush.msrb.mxu1 %v2986_v56 }
 0xb82   :  { %1325 = vmatpush.msrb.mxu1 %v2992_v57 }
 0xb84   :  { %1326 = vmatpush.msrb.mxu1 %v2998_v59 }
 0xb86   :  { %1327 = vmatpush.msrb.mxu1 %v3043_v33 }
 0xb88   :  { %1328 = vmatpush.msrb.mxu1 %v3049_v34 }
 0xb8a   :  { %1329 = vmatpush.msrb.mxu1 %v3055_v35 }
 0xb8c   :  { %1330 = vmatpush.msrb.mxu1 %v3061_v36 }
 0xbca   :  { %v1052_v14 = vpop.f32.mrf.mxu1 }
 0xbcb   :  { %v3374_v15 = vadd.f32 %v3108_v18, %v1052_v14  ;;  %v3520_v14 = vld [vmem:[%s4187_s5 + $0x20] sm:$0xff] }
 0xbcd   :  { %v1055_v16 = vmul.f32 0.05, %v3374_v15 }
 0xbcf   :  { %v1056_v25 = vadd.f32 %v1055_v16, %v3336_v4  ;;  %v3532_v16 = vld [vmem:[%s4187_s5 + $0x10] sm:$0xff] }
 0xbd1   :  { %v1057_v26 = vmax.f32 %v1056_v25, 0.0  ;;  %v3538_v25 = vld [vmem:[%s4187_s5 + $0x8] sm:$0xff] }
 0xbd3   :  { %1074 = vmatmul.f32.vlgmr.msra.gmra.mxu2 %v1057_v26 }
 0xbd4   :  { %1242 = vmatpush.msra.mxu2 %v2763_v11  ;;  %v3410_v11 = vpop.f32.mrf.mxu2 }
 0xbd6   :  { %1243 = vmatpush.msra.mxu2 %v2769_v12 }
 0xbd8   :  { %1244 = vmatpush.msra.mxu2 %v2775_v1 }
 0xbda   :  { %1245 = vmatpush.msra.mxu2 %v2781_v3 }
 0xbdb   :  { %1167 = vmatmul.f32.vlgmr.msrb.gmra.mxu2 %v1057_v26  ;;  %v3544_v26 = vld [vmem:[%s4187_s5] sm:$0xff] }
 0xbdc   :  { %1246 = vmatpush.msra.mxu2 %v2787_v7 }
 0xbde   :  { %1247 = vmatpush.msra.mxu2 %v2793_v37 }
 0xbe0   :  { %1248 = vmatpush.msra.mxu2 %v2799_v38  ;;  %v3417_v38 = vld [vmem:[%s4187_s5 + $0x78] sm:$0xff] }
 0xbe2   :  { %1249 = vmatpush.msra.mxu2 %v2805_v39  ;;  %v3423_v39 = vld [vmem:[%s4187_s5 + $0x70] sm:$0xff] }
 0xbe4   :  { %1250 = vmatpush.msra.mxu2 %v2847_v19 }
 0xbe6   :  { %1251 = vmatpush.msra.mxu2 %v2853_v20 }
 0xbe8   :  { %1252 = vmatpush.msra.mxu2 %v2859_v21 }
 0xbea   :  { %1253 = vmatpush.msra.mxu2 %v2865_v22 }
 0xbec   :  { %1254 = vmatpush.msra.mxu2 %v2871_v23 }
 0xbee   :  { %1255 = vmatpush.msra.mxu2 %v2877_v40 }
 0xbf0   :  { %1256 = vmatpush.msra.mxu2 %v2883_v43 }
 0xbf2   :  { %1257 = vmatpush.msra.mxu2 %v2889_v44 }
 0xbf4   :  { %1335 = vmatpush.msrb.mxu2 %v2895_v45 }
 0xbf6   :  { %1336 = vmatpush.msrb.mxu2 %v2901_v46 }
 0xbf8   :  { %1337 = vmatpush.msrb.mxu2 %v2907_v47 }
 0xbfa   :  { %1338 = vmatpush.msrb.mxu2 %v2950_v50 }
 0xbfc   :  { %1339 = vmatpush.msrb.mxu2 %v2956_v51 }
 0xbfe   :  { %1340 = vmatpush.msrb.mxu2 %v2962_v52 }
 0xc00   :  { %1341 = vmatpush.msrb.mxu2 %v2968_v53 }
 0xc02   :  { %1342 = vmatpush.msrb.mxu2 %v2974_v54 }
 0xc04   :  { %1343 = vmatpush.msrb.mxu2 %v2980_v55 }
 0xc06   :  { %1344 = vmatpush.msrb.mxu2 %v2986_v56 }
 0xc08   :  { %1345 = vmatpush.msrb.mxu2 %v2992_v57 }
 0xc0a   :  { %1346 = vmatpush.msrb.mxu2 %v2998_v59 }
 0xc0c   :  { %1347 = vmatpush.msrb.mxu2 %v3043_v33 }
 0xc0e   :  { %1348 = vmatpush.msrb.mxu2 %v3049_v34 }
 0xc10   :  { %1349 = vmatpush.msrb.mxu2 %v3055_v35 }
 0xc12   :  { %1350 = vmatpush.msrb.mxu2 %v3061_v36 }
 0xc56   :  { %v1075_v12 = vpop.f32.mrf.mxu2 }
 0xc57   :  { %v1076_v1 = vadd.f32 %v3108_v18, %v1075_v12  ;;  %v3550_v12 = vld [vmem:[%s4185_s3 + $0x78] sm:$0xff] }
 0xc59   :  { %v1078_v3 = vmul.f32 0.05, %v1076_v1 }
 0xc5b   :  { %v1079_v7 = vadd.f32 %v1078_v3, %v3336_v4  ;;  %v3562_v3 = vld [vmem:[%s4185_s3 + $0x68] sm:$0xff] }
 0xc5d   :  { %v1080_v37 = vmax.f32 %v1079_v7, 0.0  ;;  %v3625_v7 = vld [vmem:[%s4185_s3 + $0x48] sm:$0xff] }
 0xc5f   :  { %1097 = vmatmul.f32.vlgmr.msra.gmra.mxu3 %v1080_v37 }
 0xc60   :  { %1265 = vmatpush.msra.mxu3 %v3417_v38 }
 0xc62   :  { %1266 = vmatpush.msra.mxu3 %v3423_v39 }
 0xc64   :  { %1267 = vmatpush.msra.mxu3 %v3429_v28 }
 0xc66   :  { %1268 = vmatpush.msra.mxu3 %v3435_v30 }
 0xc67   :  { %1187 = vmatmul.f32.vlgmr.msrb.gmra.mxu3 %v1080_v37  ;;  %v3631_v37 = vld [vmem:[%s4185_s3 + $0x40] sm:$0xff] }
 0xc68   :  { %1269 = vmatpush.msra.mxu3 %v3441_v31 }
 0xc6a   :  { %1270 = vmatpush.msra.mxu3 %v3447_v49 }
 0xc6c   :  { %1271 = vmatpush.msra.mxu3 %v3453_v61 }
 0xc6e   :  { %1272 = vmatpush.msra.mxu3 %v3459_v62 }
 0xc70   :  { %1273 = vmatpush.msra.mxu3 %v2847_v19  ;;  %v3486_v19 = vpop.f32.mrf.mxu3 }
 0xc72   :  { %1274 = vmatpush.msra.mxu3 %v2853_v20  ;;  %v1124_v20 = vmul.f32 2.0, %v1076_v1  ;;  %v3556_v1 = vld [vmem:[%s4185_s3 + $0x70] sm:$0xff] }
 0xc74   :  { %1275 = vmatpush.msra.mxu3 %v2859_v21 }
 0xc76   :  { %1276 = vmatpush.msra.mxu3 %v2865_v22 }
 0xc78   :  { %1277 = vmatpush.msra.mxu3 %v2871_v23  ;;  %v1125_v23 = vadd.f32 %v1124_v20, %v3374_v15  ;;  %v3526_v15 = vld [vmem:[%s4187_s5 + $0x18] sm:$0xff] }
 0xc79   :  { %v3637_v20 = vld [vmem:[%s4185_s3 + $0x38] sm:$0xff] }
 0xc7a   :  { %1278 = vmatpush.msra.mxu3 %v2877_v40 }
 0xc7c   :  { %1279 = vmatpush.msra.mxu3 %v2883_v43 }
 0xc7e   :  { %1280 = vmatpush.msra.mxu3 %v2889_v44 }
 0xc80   :  { %1355 = vmatpush.msrb.mxu3 %v2895_v45 }
 0xc82   :  { %1356 = vmatpush.msrb.mxu3 %v2901_v46 }
 0xc84   :  { %1357 = vmatpush.msrb.mxu3 %v2907_v47  ;;  %v3502_v47 = vld [vmem:[%s4187_s5 + $0x38] sm:$0xff] }
 0xc86   :  { %1358 = vmatpush.msrb.mxu3 %v2950_v50 }
 0xc88   :  { %1359 = vmatpush.msrb.mxu3 %v2956_v51 }
 0xc8a   :  { %1360 = vmatpush.msrb.mxu3 %v2962_v52 }
 0xc8c   :  { %1361 = vmatpush.msrb.mxu3 %v2968_v53 }
 0xc8e   :  { %1362 = vmatpush.msrb.mxu3 %v2974_v54 }
 0xc90   :  { %1363 = vmatpush.msrb.mxu3 %v2980_v55 }
 0xc92   :  { %1364 = vmatpush.msrb.mxu3 %v2986_v56 }
 0xc94   :  { %1365 = vmatpush.msrb.mxu3 %v2992_v57 }
 0xc96   :  { %1366 = vmatpush.msrb.mxu3 %v2998_v59 }
 0xc98   :  { %1367 = vmatpush.msrb.mxu3 %v3043_v33 }
 0xc9a   :  { %1368 = vmatpush.msrb.mxu3 %v3049_v34 }
 0xc9c   :  { %1369 = vmatpush.msrb.mxu3 %v3055_v35 }
 0xc9e   :  { %1370 = vmatpush.msrb.mxu3 %v3061_v36 }
 0xce2   :  { %v1098_v21 = vpop.f32.mrf.mxu3 }
 0xce3   :  { %v1099_v22 = vadd.f32 %v3108_v18, %v1098_v21  ;;  %v3643_v21 = vld [vmem:[%s4185_s3 + $0x30] sm:$0xff] }
 0xce5   :  { %v1101_v40 = vmul.f32 0.1, %v1099_v22  ;;  %v1126_v43 = vmul.f32 2.0, %v1099_v22  ;;  %v3649_v22 = vld [vmem:[%s4185_s3 + $0x28] sm:$0xff] }
 0xce7   :  { %v1102_v44 = vadd.f32 %v1101_v40, %v3336_v4  ;;  %v1127_v45 = vadd.f32 %v1126_v43, %v1125_v23  ;;  %v3655_v23 = vld [vmem:[%s4185_s3 + $0x20] sm:$0xff]  ;;  %v3662_v40 = vpop.f32.mrf.mxu1 }
 0xce8   :  { %4193 = vst [vmem:[#allocation11_spill] sm:$0xff] %v3662_v40 }
 0xce9   :  { %v1103_v46 = vmax.f32 %v1102_v44, 0.0 }
 0xceb   :  { %1120 = vmatmul.f32.vlgmr.msrb.gmra.mxu0 %v1103_v46 }
 0xcec   :  { %1288 = vmatpush.msrb.mxu0 %v3417_v38 }
 0xcee   :  { %1289 = vmatpush.msrb.mxu0 %v3423_v39 }
 0xcf0   :  { %1290 = vmatpush.msrb.mxu0 %v3429_v28 }
 0xcf2   :  { %1291 = vmatpush.msrb.mxu0 %v3435_v30 }
 0xcf3   :  { %1207 = vmatmul.f32.vlgmr.msra.gmra.mxu0 %v1103_v46 }
 0xcf4   :  { %1292 = vmatpush.msrb.mxu0 %v3441_v31 }
 0xcf6   :  { %1293 = vmatpush.msrb.mxu0 %v3447_v49 }
 0xcf8   :  { %1294 = vmatpush.msrb.mxu0 %v3453_v61 }
 0xcfa   :  { %1295 = vmatpush.msrb.mxu0 %v3459_v62 }
 0xcfc   :  { %1296 = vmatpush.msrb.mxu0 %v3502_v47 }
 0xcfe   :  { %1297 = vmatpush.msrb.mxu0 %v3508_v0 }
 0xd00   :  { %1298 = vmatpush.msrb.mxu0 %v3514_v10 }
 0xd02   :  { %1299 = vmatpush.msrb.mxu0 %v3520_v14 }
 0xd04   :  { %1300 = vmatpush.msrb.mxu0 %v3526_v15 }
 0xd06   :  { %1301 = vmatpush.msrb.mxu0 %v3532_v16 }
 0xd08   :  { %1302 = vmatpush.msrb.mxu0 %v3538_v25 }
 0xd0a   :  { %1303 = vmatpush.msrb.mxu0 %v3544_v26 }
 0xd0c   :  { %1375 = vmatpush.msra.mxu0 %v3550_v12 }
 0xd0e   :  { %1376 = vmatpush.msra.mxu0 %v3556_v1 }
 0xd10   :  { %1377 = vmatpush.msra.mxu0 %v3562_v3 }
 0xd12   :  { %1378 = vmatpush.msra.mxu0 %v2950_v50  ;;  %v3578_v50 = vpop.f32.mrf.mxu0 }
 0xd13   :  { %4192 = vst [vmem:[#allocation10_spill] sm:$0xff] %v3578_v50 }
 0xd14   :  { %1379 = vmatpush.msra.mxu0 %v2956_v51 }
 0xd16   :  { %1380 = vmatpush.msra.mxu0 %v2962_v52 }
 0xd18   :  { %1381 = vmatpush.msra.mxu0 %v2968_v53 }
 0xd1a   :  { %1382 = vmatpush.msra.mxu0 %v2974_v54 }
 0xd1c   :  { %1383 = vmatpush.msra.mxu0 %v2980_v55 }
 0xd1e   :  { %1384 = vmatpush.msra.mxu0 %v2986_v56 }
 0xd20   :  { %1385 = vmatpush.msra.mxu0 %v2992_v57  ;;  %v3607_v57 = vld [vmem:[%s4185_s3 + $0x60] sm:$0xff] }
 0xd22   :  { %1386 = vmatpush.msra.mxu0 %v2998_v59  ;;  %v3613_v59 = vld [vmem:[%s4185_s3 + $0x58] sm:$0xff] }
 0xd24   :  { %1387 = vmatpush.msra.mxu0 %v3043_v33 }
 0xd26   :  { %1388 = vmatpush.msra.mxu0 %v3049_v34 }
 0xd28   :  { %1389 = vmatpush.msra.mxu0 %v3055_v35 }
 0xd2a   :  { %1390 = vmatpush.msra.mxu0 %v3061_v36 }
 0xd68   :  { %v1121_v51 = vpop.f32.mrf.mxu0 }
 0xd69   :  { %v1122_v52 = vadd.f32 %v3108_v18, %v1121_v51 }
 0xd6b   :  { %v1128_v53 = vadd.f32 %v1127_v45, %v1122_v52  ;;  %v3721_v52 = vpop.f32.mrf.mxu2 }
 0xd6d   :  { %v1129_v54 = vmul.f32 0.016666668, %v1128_v53 }
 0xd6f   :  { %v3582_v55 = vadd.f32 %v1129_v54, %v3336_v4  ;;  %v3619_v4 = vld [vmem:[%s4185_s3 + $0x50] sm:$0xff] }
 0xd71   :  { %v1218_v56 = vmax.f32 %v3582_v55, 0.0 }
 0xd73   :  { %1235 = vmatmul.f32.vlgmr.msra.gmra.mxu1 %v1218_v56 }
 0xd74   :  { %1403 = vmatpush.msra.mxu1 %v3417_v38 }
 0xd76   :  { %1404 = vmatpush.msra.mxu1 %v3423_v39 }
 0xd78   :  { %1405 = vmatpush.msra.mxu1 %v3429_v28 }
 0xd7a   :  { %1406 = vmatpush.msra.mxu1 %v3435_v30 }
 0xd7b   :  { %1331 = vmatmul.f32.vlgmr.msrb.gmra.mxu1 %v1218_v56 }
 0xd7c   :  { %1407 = vmatpush.msra.mxu1 %v3441_v31 }
 0xd7e   :  { %1408 = vmatpush.msra.mxu1 %v3447_v49 }
 0xd80   :  { %1409 = vmatpush.msra.mxu1 %v3453_v61 }
 0xd82   :  { %1410 = vmatpush.msra.mxu1 %v3459_v62 }
 0xd84   :  { %1411 = vmatpush.msra.mxu1 %v3502_v47 }
 0xd86   :  { %1412 = vmatpush.msra.mxu1 %v3508_v0 }
 0xd88   :  { %1413 = vmatpush.msra.mxu1 %v3514_v10 }
 0xd8a   :  { %1414 = vmatpush.msra.mxu1 %v3520_v14 }
 0xd8c   :  { %1415 = vmatpush.msra.mxu1 %v3526_v15 }
 0xd8e   :  { %1416 = vmatpush.msra.mxu1 %v3532_v16 }
 0xd90   :  { %1417 = vmatpush.msra.mxu1 %v3538_v25 }
 0xd92   :  { %1418 = vmatpush.msra.mxu1 %v3544_v26 }
 0xd94   :  { %1499 = vmatpush.msrb.mxu1 %v3550_v12 }
 0xd96   :  { %1500 = vmatpush.msrb.mxu1 %v3556_v1 }
 0xd98   :  { %1501 = vmatpush.msrb.mxu1 %v3562_v3 }
 0xd9a   :  { %1502 = vmatpush.msrb.mxu1 %v3607_v57 }
 0xd9c   :  { %1503 = vmatpush.msrb.mxu1 %v3613_v59 }
 0xd9e   :  { %1504 = vmatpush.msrb.mxu1 %v3619_v4 }
 0xda0   :  { %1505 = vmatpush.msrb.mxu1 %v3625_v7 }
 0xda2   :  { %1506 = vmatpush.msrb.mxu1 %v3631_v37 }
 0xda4   :  { %1507 = vmatpush.msrb.mxu1 %v3637_v20 }
 0xda6   :  { %1508 = vmatpush.msrb.mxu1 %v3643_v21 }
 0xda8   :  { %1509 = vmatpush.msrb.mxu1 %v3649_v22 }
 0xdaa   :  { %1510 = vmatpush.msrb.mxu1 %v3655_v23 }
 0xdac   :  { %1511 = vmatpush.msrb.mxu1 %v3043_v33  ;;  %v3700_v33 = vld [vmem:[%s4185_s3 + $0x18] sm:$0xff] }
 0xdae   :  { %1512 = vmatpush.msrb.mxu1 %v3049_v34  ;;  %v3706_v34 = vld [vmem:[%s4185_s3 + $0x10] sm:$0xff] }
 0xdb0   :  { %1513 = vmatpush.msrb.mxu1 %v3055_v35  ;;  %v3712_v35 = vld [vmem:[%s4185_s3 + $0x8] sm:$0xff] }
 0xdb2   :  { %1514 = vmatpush.msrb.mxu1 %v3061_v36  ;;  %v3718_v36 = vld [vmem:[%s4185_s3] sm:$0xff] }
 0xdf0   :  { %v1236_v43 = vpop.f32.mrf.mxu1 }
 0xdf1   :  { %v3665_v44 = vadd.f32 %v3108_v18, %v1236_v43 }
 0xdf3   :  { %v1239_v45 = vmul.f32 0.05, %v3665_v44 }
 0xdf5   :  { %v1240_v46 = vadd.f32 %v1239_v45, %v3582_v55 }
 0xdf7   :  { %v1241_v51 = vmax.f32 %v1240_v46, 0.0 }
 0xdf9   :  { %1258 = vmatmul.f32.vlgmr.msra.gmra.mxu2 %v1241_v51 }
 0xdfa   :  { %1426 = vmatpush.msra.mxu2 %v3417_v38 }
 0xdfc   :  { %1427 = vmatpush.msra.mxu2 %v3423_v39 }
 0xdfe   :  { %1428 = vmatpush.msra.mxu2 %v3429_v28 }
 0xe00   :  { %1429 = vmatpush.msra.mxu2 %v3435_v30 }
 0xe01   :  { %1351 = vmatmul.f32.vlgmr.msrb.gmra.mxu2 %v1241_v51 }
 0xe02   :  { %1430 = vmatpush.msra.mxu2 %v3441_v31 }
 0xe04   :  { %1431 = vmatpush.msra.mxu2 %v3447_v49 }
 0xe06   :  { %1432 = vmatpush.msra.mxu2 %v3453_v61 }
 0xe08   :  { %1433 = vmatpush.msra.mxu2 %v3459_v62 }
 0xe0a   :  { %1434 = vmatpush.msra.mxu2 %v3502_v47 }
 0xe0c   :  { %1435 = vmatpush.msra.mxu2 %v3508_v0 }
 0xe0e   :  { %1436 = vmatpush.msra.mxu2 %v3514_v10 }
 0xe10   :  { %1437 = vmatpush.msra.mxu2 %v3520_v14 }
 0xe12   :  { %1438 = vmatpush.msra.mxu2 %v3526_v15 }
 0xe14   :  { %1439 = vmatpush.msra.mxu2 %v3532_v16 }
 0xe16   :  { %1440 = vmatpush.msra.mxu2 %v3538_v25 }
 0xe18   :  { %1441 = vmatpush.msra.mxu2 %v3544_v26 }
 0xe1a   :  { %1519 = vmatpush.msrb.mxu2 %v3550_v12 }
 0xe1c   :  { %1520 = vmatpush.msrb.mxu2 %v3556_v1 }
 0xe1e   :  { %1521 = vmatpush.msrb.mxu2 %v3562_v3 }
 0xe20   :  { %1522 = vmatpush.msrb.mxu2 %v3607_v57 }
 0xe22   :  { %1523 = vmatpush.msrb.mxu2 %v3613_v59 }
 0xe24   :  { %1524 = vmatpush.msrb.mxu2 %v3619_v4 }
 0xe26   :  { %1525 = vmatpush.msrb.mxu2 %v3625_v7 }
 0xe28   :  { %1526 = vmatpush.msrb.mxu2 %v3631_v37 }
 0xe2a   :  { %1527 = vmatpush.msrb.mxu2 %v3637_v20 }
 0xe2c   :  { %1528 = vmatpush.msrb.mxu2 %v3643_v21 }
 0xe2e   :  { %1529 = vmatpush.msrb.mxu2 %v3649_v22 }
 0xe30   :  { %1530 = vmatpush.msrb.mxu2 %v3655_v23 }
 0xe32   :  { %1531 = vmatpush.msrb.mxu2 %v3700_v33 }
 0xe34   :  { %1532 = vmatpush.msrb.mxu2 %v3706_v34 }
 0xe36   :  { %1533 = vmatpush.msrb.mxu2 %v3712_v35 }
 0xe38   :  { %1534 = vmatpush.msrb.mxu2 %v3718_v36 }
 0xe7c   :  { %v1259_v53 = vpop.f32.mrf.mxu2 }
 0xe7d   :  { %v1260_v54 = vadd.f32 %v3108_v18, %v1259_v53  ;;  %v3757_v18 = vpop.f32.mrf.mxu3  ;;  %v3762_v53 = vld [vmem:[%s4188_s6] ss:$0 sm:$0xff] }
 0xe7e   :  { %4194 = vst [vmem:[#allocation12_spill] sm:$0xff] %v3757_v18 }
 0xe7f   :  { %v1262_v56 = vmul.f32 0.05, %v1260_v54  ;;  %v1308_v46 = vmul.f32 2.0, %v1260_v54 }
 0xe81   :  { %v1263_v43 = vadd.f32 %v1262_v56, %v3582_v55 }
 0xe83   :  { %v1264_v45 = vmax.f32 %v1263_v43, 0.0  ;;  %v1309_v43 = vadd.f32 %v1308_v46, %v3665_v44 }
 0xe85   :  { %1281 = vmatmul.f32.vlgmr.msra.gmra.mxu3 %v1264_v45 }
 0xe86   :  { %1449 = vmatpush.msra.mxu3 %v3417_v38 }
 0xe88   :  { %1450 = vmatpush.msra.mxu3 %v3423_v39 }
 0xe8a   :  { %1451 = vmatpush.msra.mxu3 %v3429_v28 }
 0xe8c   :  { %1452 = vmatpush.msra.mxu3 %v3435_v30 }
 0xe8d   :  { %1371 = vmatmul.f32.vlgmr.msrb.gmra.mxu3 %v1264_v45 }
 0xe8e   :  { %1453 = vmatpush.msra.mxu3 %v3441_v31 }
 0xe90   :  { %1454 = vmatpush.msra.mxu3 %v3447_v49 }
 0xe92   :  { %1455 = vmatpush.msra.mxu3 %v3453_v61 }
 0xe94   :  { %1456 = vmatpush.msra.mxu3 %v3459_v62 }
 0xe96   :  { %1457 = vmatpush.msra.mxu3 %v3502_v47 }
 0xe98   :  { %1458 = vmatpush.msra.mxu3 %v3508_v0 }
 0xe9a   :  { %1459 = vmatpush.msra.mxu3 %v3514_v10 }
 0xe9c   :  { %1460 = vmatpush.msra.mxu3 %v3520_v14 }
 0xe9e   :  { %1461 = vmatpush.msra.mxu3 %v3526_v15 }
 0xea0   :  { %1462 = vmatpush.msra.mxu3 %v3532_v16 }
 0xea2   :  { %1463 = vmatpush.msra.mxu3 %v3538_v25 }
 0xea4   :  { %1464 = vmatpush.msra.mxu3 %v3544_v26 }
 0xea6   :  { %1539 = vmatpush.msrb.mxu3 %v3550_v12 }
 0xea8   :  { %1540 = vmatpush.msrb.mxu3 %v3556_v1 }
 0xeaa   :  { %1541 = vmatpush.msrb.mxu3 %v3562_v3 }
 0xeac   :  { %1542 = vmatpush.msrb.mxu3 %v3607_v57 }
 0xeae   :  { %1543 = vmatpush.msrb.mxu3 %v3613_v59 }
 0xeb0   :  { %1544 = vmatpush.msrb.mxu3 %v3619_v4 }
 0xeb2   :  { %1545 = vmatpush.msrb.mxu3 %v3625_v7 }
 0xeb4   :  { %1546 = vmatpush.msrb.mxu3 %v3631_v37 }
 0xeb6   :  { %1547 = vmatpush.msrb.mxu3 %v3637_v20 }
 0xeb8   :  { %1548 = vmatpush.msrb.mxu3 %v3643_v21 }
 0xeba   :  { %1549 = vmatpush.msrb.mxu3 %v3649_v22 }
 0xebc   :  { %1550 = vmatpush.msrb.mxu3 %v3655_v23 }
 0xebe   :  { %1551 = vmatpush.msrb.mxu3 %v3700_v33 }
 0xec0   :  { %1552 = vmatpush.msrb.mxu3 %v3706_v34 }
 0xec2   :  { %1553 = vmatpush.msrb.mxu3 %v3712_v35 }
 0xec4   :  { %1554 = vmatpush.msrb.mxu3 %v3718_v36 }
 0xf08   :  { %v1282_v51 = vpop.f32.mrf.mxu3 }
 0xf09   :  { %v1283_v56 = vadd.f32 %v3762_v53, %v1282_v51 }
 0xf0b   :  { %v1285_v45 = vmul.f32 0.1, %v1283_v56  ;;  %v1310_v40 = vmul.f32 2.0, %v1283_v56 }
 0xf0d   :  { %v1286_v50 = vadd.f32 %v1285_v45, %v3582_v55  ;;  %v1311_v17 = vadd.f32 %v1310_v40, %v1309_v43 }
 0xf0f   :  { %v1287_v27 = vmax.f32 %v1286_v50, 0.0 }
 0xf11   :  { %1304 = vmatmul.f32.vlgmr.msrb.gmra.mxu0 %v1287_v27 }
 0xf12   :  { %1472 = vmatpush.msrb.mxu0 %v3417_v38 }
 0xf14   :  { %1473 = vmatpush.msrb.mxu0 %v3423_v39 }
 0xf16   :  { %1474 = vmatpush.msrb.mxu0 %v3429_v28 }
 0xf18   :  { %1475 = vmatpush.msrb.mxu0 %v3435_v30 }
 0xf19   :  { %1391 = vmatmul.f32.vlgmr.msra.gmra.mxu0 %v1287_v27  ;;  %v3799_v27 = vpop.f32.mrf.mxu0 }
 0xf1a   :  { %1476 = vmatpush.msrb.mxu0 %v3441_v31  ;;  %4195 = vst [vmem:[#allocation13_spill] sm:$0xff] %v3799_v27 }
 0xf1c   :  { %1477 = vmatpush.msrb.mxu0 %v3447_v49 }
 0xf1e   :  { %1478 = vmatpush.msrb.mxu0 %v3453_v61 }
 0xf20   :  { %1479 = vmatpush.msrb.mxu0 %v3459_v62 }
 0xf22   :  { %1480 = vmatpush.msrb.mxu0 %v3502_v47 }
 0xf24   :  { %1481 = vmatpush.msrb.mxu0 %v3508_v0 }
 0xf26   :  { %1482 = vmatpush.msrb.mxu0 %v3514_v10 }
 0xf28   :  { %1483 = vmatpush.msrb.mxu0 %v3520_v14 }
 0xf2a   :  { %1484 = vmatpush.msrb.mxu0 %v3526_v15 }
 0xf2c   :  { %1485 = vmatpush.msrb.mxu0 %v3532_v16 }
 0xf2e   :  { %1486 = vmatpush.msrb.mxu0 %v3538_v25 }
 0xf30   :  { %1487 = vmatpush.msrb.mxu0 %v3544_v26 }
 0xf32   :  { %1559 = vmatpush.msra.mxu0 %v3550_v12 }
 0xf34   :  { %1560 = vmatpush.msra.mxu0 %v3556_v1 }
 0xf36   :  { %1561 = vmatpush.msra.mxu0 %v3562_v3 }
 0xf38   :  { %1562 = vmatpush.msra.mxu0 %v3607_v57 }
 0xf3a   :  { %1563 = vmatpush.msra.mxu0 %v3613_v59 }
 0xf3c   :  { %1564 = vmatpush.msra.mxu0 %v3619_v4 }
 0xf3e   :  { %1565 = vmatpush.msra.mxu0 %v3625_v7 }
 0xf40   :  { %1566 = vmatpush.msra.mxu0 %v3631_v37 }
 0xf42   :  { %1567 = vmatpush.msra.mxu0 %v3637_v20 }
 0xf44   :  { %1568 = vmatpush.msra.mxu0 %v3643_v21 }
 0xf46   :  { %1569 = vmatpush.msra.mxu0 %v3649_v22 }
 0xf48   :  { %1570 = vmatpush.msra.mxu0 %v3655_v23 }
 0xf4a   :  { %1571 = vmatpush.msra.mxu0 %v3700_v33 }
 0xf4c   :  { %1572 = vmatpush.msra.mxu0 %v3706_v34 }
 0xf4e   :  { %1573 = vmatpush.msra.mxu0 %v3712_v35 }
 0xf50   :  { %1574 = vmatpush.msra.mxu0 %v3718_v36 }
 0xf8e   :  { %v1305_v50 = vpop.f32.mrf.mxu0 }
 0xf8f   :  { %v1306_v40 = vadd.f32 %v3762_v53, %v1305_v50 }
 0xf91   :  { %v1312_v44 = vadd.f32 %v1311_v17, %v1306_v40  ;;  %v3838_v17 = vpop.f32.mrf.mxu1  ;;  %v3877_v40 = vpop.f32.mrf.mxu2 }
 0xf92   :  { %4196 = vst [vmem:[#allocation14_spill] sm:$0xff] %v3838_v17 }
 0xf93   :  { %v1313_v54 = vmul.f32 0.016666668, %v1312_v44  ;;  %4197 = vst [vmem:[#allocation15_spill] sm:$0xff] %v3877_v40 }
 0xf95   :  { %v3803_v46 = vadd.f32 %v1313_v54, %v3582_v55 }
 0xf97   :  { %v1402_v51 = vmax.f32 %v3803_v46, 0.0 }
 0xf99   :  { %1419 = vmatmul.f32.vlgmr.msra.gmra.mxu1 %v1402_v51 }
 0xf9a   :  { %1587 = vmatpush.msra.mxu1 %v3417_v38 }
 0xf9c   :  { %1588 = vmatpush.msra.mxu1 %v3423_v39 }
 0xf9e   :  { %1589 = vmatpush.msra.mxu1 %v3429_v28 }
 0xfa0   :  { %1590 = vmatpush.msra.mxu1 %v3435_v30 }
 0xfa1   :  { %1515 = vmatmul.f32.vlgmr.msrb.gmra.mxu1 %v1402_v51 }
 0xfa2   :  { %1591 = vmatpush.msra.mxu1 %v3441_v31 }
 0xfa4   :  { %1592 = vmatpush.msra.mxu1 %v3447_v49 }
 0xfa6   :  { %1593 = vmatpush.msra.mxu1 %v3453_v61 }
 0xfa8   :  { %1594 = vmatpush.msra.mxu1 %v3459_v62 }
 0xfaa   :  { %1595 = vmatpush.msra.mxu1 %v3502_v47 }
 0xfac   :  { %1596 = vmatpush.msra.mxu1 %v3508_v0 }
 0xfae   :  { %1597 = vmatpush.msra.mxu1 %v3514_v10 }
 0xfb0   :  { %1598 = vmatpush.msra.mxu1 %v3520_v14 }
 0xfb2   :  { %1599 = vmatpush.msra.mxu1 %v3526_v15 }
 0xfb4   :  { %1600 = vmatpush.msra.mxu1 %v3532_v16 }
 0xfb6   :  { %1601 = vmatpush.msra.mxu1 %v3538_v25 }
 0xfb8   :  { %1602 = vmatpush.msra.mxu1 %v3544_v26 }
 0xfba   :  { %1683 = vmatpush.msrb.mxu1 %v3550_v12 }
 0xfbc   :  { %1684 = vmatpush.msrb.mxu1 %v3556_v1 }
 0xfbe   :  { %1685 = vmatpush.msrb.mxu1 %v3562_v3 }
 0xfc0   :  { %1686 = vmatpush.msrb.mxu1 %v3607_v57 }
 0xfc2   :  { %1687 = vmatpush.msrb.mxu1 %v3613_v59 }
 0xfc4   :  { %1688 = vmatpush.msrb.mxu1 %v3619_v4 }
 0xfc6   :  { %1689 = vmatpush.msrb.mxu1 %v3625_v7 }
 0xfc8   :  { %1690 = vmatpush.msrb.mxu1 %v3631_v37 }
 0xfca   :  { %1691 = vmatpush.msrb.mxu1 %v3637_v20 }
 0xfcc   :  { %1692 = vmatpush.msrb.mxu1 %v3643_v21 }
 0xfce   :  { %1693 = vmatpush.msrb.mxu1 %v3649_v22 }
 0xfd0   :  { %1694 = vmatpush.msrb.mxu1 %v3655_v23 }
 0xfd2   :  { %1695 = vmatpush.msrb.mxu1 %v3700_v33 }
 0xfd4   :  { %1696 = vmatpush.msrb.mxu1 %v3706_v34 }
 0xfd6   :  { %1697 = vmatpush.msrb.mxu1 %v3712_v35 }
 0xfd8   :  { %1698 = vmatpush.msrb.mxu1 %v3718_v36 }
0x1016   :  { %v1420_v55 = vpop.f32.mrf.mxu1 }
0x1017   :  { %v3841_v56 = vadd.f32 %v3762_v53, %v1420_v55 }
0x1019   :  { %v1423_v43 = vmul.f32 0.05, %v3841_v56 }
0x101b   :  { %v1424_v45 = vadd.f32 %v1423_v43, %v3803_v46 }
0x101d   :  { %v1425_v50 = vmax.f32 %v1424_v45, 0.0  ;;  %v3913_v45 = vpop.f32.mrf.mxu3 }
0x101f   :  { %1442 = vmatmul.f32.vlgmr.msra.gmra.mxu2 %v1425_v50 }
0x1020   :  { %1610 = vmatpush.msra.mxu2 %v3417_v38 }
0x1022   :  { %1611 = vmatpush.msra.mxu2 %v3423_v39 }
0x1024   :  { %1612 = vmatpush.msra.mxu2 %v3429_v28 }
0x1026   :  { %1613 = vmatpush.msra.mxu2 %v3435_v30 }
0x1027   :  { %1535 = vmatmul.f32.vlgmr.msrb.gmra.mxu2 %v1425_v50 }
0x1028   :  { %1614 = vmatpush.msra.mxu2 %v3441_v31 }
0x102a   :  { %1615 = vmatpush.msra.mxu2 %v3447_v49 }
0x102c   :  { %1616 = vmatpush.msra.mxu2 %v3453_v61 }
0x102e   :  { %1617 = vmatpush.msra.mxu2 %v3459_v62 }
0x1030   :  { %1618 = vmatpush.msra.mxu2 %v3502_v47 }
0x1032   :  { %1619 = vmatpush.msra.mxu2 %v3508_v0 }
0x1034   :  { %1620 = vmatpush.msra.mxu2 %v3514_v10 }
0x1036   :  { %1621 = vmatpush.msra.mxu2 %v3520_v14 }
0x1038   :  { %1622 = vmatpush.msra.mxu2 %v3526_v15 }
0x103a   :  { %1623 = vmatpush.msra.mxu2 %v3532_v16 }
0x103c   :  { %1624 = vmatpush.msra.mxu2 %v3538_v25 }
0x103e   :  { %1625 = vmatpush.msra.mxu2 %v3544_v26 }
0x1040   :  { %1703 = vmatpush.msrb.mxu2 %v3550_v12 }
0x1042   :  { %1704 = vmatpush.msrb.mxu2 %v3556_v1 }
0x1044   :  { %1705 = vmatpush.msrb.mxu2 %v3562_v3 }
0x1046   :  { %1706 = vmatpush.msrb.mxu2 %v3607_v57 }
0x1048   :  { %1707 = vmatpush.msrb.mxu2 %v3613_v59 }
0x104a   :  { %1708 = vmatpush.msrb.mxu2 %v3619_v4 }
0x104c   :  { %1709 = vmatpush.msrb.mxu2 %v3625_v7 }
0x104e   :  { %1710 = vmatpush.msrb.mxu2 %v3631_v37 }
0x1050   :  { %1711 = vmatpush.msrb.mxu2 %v3637_v20 }
0x1052   :  { %1712 = vmatpush.msrb.mxu2 %v3643_v21 }
0x1054   :  { %1713 = vmatpush.msrb.mxu2 %v3649_v22 }
0x1056   :  { %1714 = vmatpush.msrb.mxu2 %v3655_v23 }
0x1058   :  { %1715 = vmatpush.msrb.mxu2 %v3700_v33 }
0x105a   :  { %1716 = vmatpush.msrb.mxu2 %v3706_v34 }
0x105c   :  { %1717 = vmatpush.msrb.mxu2 %v3712_v35 }
0x105e   :  { %1718 = vmatpush.msrb.mxu2 %v3718_v36 }
0x10a2   :  { %v1443_v44 = vpop.f32.mrf.mxu2 }
0x10a3   :  { %v1444_v54 = vadd.f32 %v3762_v53, %v1443_v44 }
0x10a5   :  { %v1446_v51 = vmul.f32 0.05, %v1444_v54  ;;  %v1492_v50 = vmul.f32 2.0, %v1444_v54 }
0x10a7   :  { %v1447_v55 = vadd.f32 %v1446_v51, %v3803_v46 }
0x10a9   :  { %v1448_v43 = vmax.f32 %v1447_v55, 0.0  ;;  %v1493_v55 = vadd.f32 %v1492_v50, %v3841_v56 }
0x10ab   :  { %1465 = vmatmul.f32.vlgmr.msra.gmra.mxu3 %v1448_v43 }
0x10ac   :  { %1633 = vmatpush.msra.mxu3 %v3417_v38 }
0x10ae   :  { %1634 = vmatpush.msra.mxu3 %v3423_v39 }
0x10b0   :  { %1635 = vmatpush.msra.mxu3 %v3429_v28 }
0x10b2   :  { %1636 = vmatpush.msra.mxu3 %v3435_v30 }
0x10b3   :  { %1555 = vmatmul.f32.vlgmr.msrb.gmra.mxu3 %v1448_v43 }
0x10b4   :  { %1637 = vmatpush.msra.mxu3 %v3441_v31 }
0x10b6   :  { %1638 = vmatpush.msra.mxu3 %v3447_v49 }
0x10b8   :  { %1639 = vmatpush.msra.mxu3 %v3453_v61 }
0x10ba   :  { %1640 = vmatpush.msra.mxu3 %v3459_v62 }
0x10bc   :  { %1641 = vmatpush.msra.mxu3 %v3502_v47 }
0x10be   :  { %1642 = vmatpush.msra.mxu3 %v3508_v0 }
0x10c0   :  { %1643 = vmatpush.msra.mxu3 %v3514_v10 }
0x10c2   :  { %1644 = vmatpush.msra.mxu3 %v3520_v14 }
0x10c4   :  { %1645 = vmatpush.msra.mxu3 %v3526_v15 }
0x10c6   :  { %1646 = vmatpush.msra.mxu3 %v3532_v16 }
0x10c8   :  { %1647 = vmatpush.msra.mxu3 %v3538_v25 }
0x10ca   :  { %1648 = vmatpush.msra.mxu3 %v3544_v26 }
0x10cc   :  { %1723 = vmatpush.msrb.mxu3 %v3550_v12 }
0x10ce   :  { %1724 = vmatpush.msrb.mxu3 %v3556_v1 }
0x10d0   :  { %1725 = vmatpush.msrb.mxu3 %v3562_v3 }
0x10d2   :  { %1726 = vmatpush.msrb.mxu3 %v3607_v57 }
0x10d4   :  { %1727 = vmatpush.msrb.mxu3 %v3613_v59 }
0x10d6   :  { %1728 = vmatpush.msrb.mxu3 %v3619_v4 }
0x10d8   :  { %1729 = vmatpush.msrb.mxu3 %v3625_v7 }
0x10da   :  { %1730 = vmatpush.msrb.mxu3 %v3631_v37 }
0x10dc   :  { %1731 = vmatpush.msrb.mxu3 %v3637_v20 }
0x10de   :  { %1732 = vmatpush.msrb.mxu3 %v3643_v21 }
0x10e0   :  { %1733 = vmatpush.msrb.mxu3 %v3649_v22 }
0x10e2   :  { %1734 = vmatpush.msrb.mxu3 %v3655_v23 }
0x10e4   :  { %1735 = vmatpush.msrb.mxu3 %v3700_v33 }
0x10e6   :  { %1736 = vmatpush.msrb.mxu3 %v3706_v34 }
0x10e8   :  { %1737 = vmatpush.msrb.mxu3 %v3712_v35 }
0x10ea   :  { %1738 = vmatpush.msrb.mxu3 %v3718_v36 }
0x112e   :  { %v1466_v44 = vpop.f32.mrf.mxu3 }
0x112f   :  { %v1467_v51 = vadd.f32 %v3762_v53, %v1466_v44 }
0x1131   :  { %v1469_v43 = vmul.f32 0.1, %v1467_v51  ;;  %v1494_v17 = vmul.f32 2.0, %v1467_v51 }
0x1133   :  { %v1470_v27 = vadd.f32 %v1469_v43, %v3803_v46  ;;  %v1495_v40 = vadd.f32 %v1494_v17, %v1493_v55 }
0x1135   :  { %v1471_v18 = vmax.f32 %v1470_v27, 0.0 }
0x1137   :  { %1488 = vmatmul.f32.vlgmr.msrb.gmra.mxu0 %v1471_v18 }
0x1138   :  { %1656 = vmatpush.msrb.mxu0 %v3417_v38 }
0x113a   :  { %1657 = vmatpush.msrb.mxu0 %v3423_v39 }
0x113c   :  { %1658 = vmatpush.msrb.mxu0 %v3429_v28 }
0x113e   :  { %1659 = vmatpush.msrb.mxu0 %v3435_v30 }
0x113f   :  { %1575 = vmatmul.f32.vlgmr.msra.gmra.mxu0 %v1471_v18  ;;  %v3950_v18 = vpop.f32.mrf.mxu0 }
0x1140   :  { %1660 = vmatpush.msrb.mxu0 %v3441_v31 }
0x1142   :  { %1661 = vmatpush.msrb.mxu0 %v3447_v49 }
0x1144   :  { %1662 = vmatpush.msrb.mxu0 %v3453_v61 }
0x1146   :  { %1663 = vmatpush.msrb.mxu0 %v3459_v62 }
0x1148   :  { %1664 = vmatpush.msrb.mxu0 %v3502_v47 }
0x114a   :  { %1665 = vmatpush.msrb.mxu0 %v3508_v0 }
0x114c   :  { %1666 = vmatpush.msrb.mxu0 %v3514_v10 }
0x114e   :  { %1667 = vmatpush.msrb.mxu0 %v3520_v14 }
0x1150   :  { %1668 = vmatpush.msrb.mxu0 %v3526_v15 }
0x1152   :  { %1669 = vmatpush.msrb.mxu0 %v3532_v16 }
0x1154   :  { %1670 = vmatpush.msrb.mxu0 %v3538_v25 }
0x1156   :  { %1671 = vmatpush.msrb.mxu0 %v3544_v26 }
0x1158   :  { %1743 = vmatpush.msra.mxu0 %v3550_v12 }
0x115a   :  { %1744 = vmatpush.msra.mxu0 %v3556_v1 }
0x115c   :  { %1745 = vmatpush.msra.mxu0 %v3562_v3 }
0x115e   :  { %1746 = vmatpush.msra.mxu0 %v3607_v57 }
0x1160   :  { %1747 = vmatpush.msra.mxu0 %v3613_v59 }
0x1162   :  { %1748 = vmatpush.msra.mxu0 %v3619_v4 }
0x1164   :  { %1749 = vmatpush.msra.mxu0 %v3625_v7 }
0x1166   :  { %1750 = vmatpush.msra.mxu0 %v3631_v37 }
0x1168   :  { %1751 = vmatpush.msra.mxu0 %v3637_v20 }
0x116a   :  { %1752 = vmatpush.msra.mxu0 %v3643_v21 }
0x116c   :  { %1753 = vmatpush.msra.mxu0 %v3649_v22 }
0x116e   :  { %1754 = vmatpush.msra.mxu0 %v3655_v23 }
0x1170   :  { %1755 = vmatpush.msra.mxu0 %v3700_v33 }
0x1172   :  { %1756 = vmatpush.msra.mxu0 %v3706_v34 }
0x1174   :  { %1757 = vmatpush.msra.mxu0 %v3712_v35 }
0x1176   :  { %1758 = vmatpush.msra.mxu0 %v3718_v36 }
0x11b4   :  { %v1489_v27 = vpop.f32.mrf.mxu0 }
0x11b5   :  { %v1490_v17 = vadd.f32 %v3762_v53, %v1489_v27 }
0x11b7   :  { %v1496_v56 = vadd.f32 %v1495_v40, %v1490_v17  ;;  %v4028_v17 = vpop.f32.mrf.mxu2 }
0x11b9   :  { %v1497_v54 = vmul.f32 0.016666668, %v1496_v56 }
0x11bb   :  { %v3954_v50 = vadd.f32 %v1497_v54, %v3803_v46  ;;  %v3989_v46 = vpop.f32.mrf.mxu1 }
0x11bd   :  { %v1586_v44 = vmax.f32 %v3954_v50, 0.0 }
0x11bf   :  { %1603 = vmatmul.f32.vlgmr.msra.gmra.mxu1 %v1586_v44 }
0x11c0   :  { %1771 = vmatpush.msra.mxu1 %v3417_v38 }
0x11c2   :  { %1772 = vmatpush.msra.mxu1 %v3423_v39 }
0x11c4   :  { %1773 = vmatpush.msra.mxu1 %v3429_v28 }
0x11c6   :  { %1774 = vmatpush.msra.mxu1 %v3435_v30 }
0x11c7   :  { %1699 = vmatmul.f32.vlgmr.msrb.gmra.mxu1 %v1586_v44 }
0x11c8   :  { %1775 = vmatpush.msra.mxu1 %v3441_v31 }
0x11ca   :  { %1776 = vmatpush.msra.mxu1 %v3447_v49 }
0x11cc   :  { %1777 = vmatpush.msra.mxu1 %v3453_v61 }
0x11ce   :  { %1778 = vmatpush.msra.mxu1 %v3459_v62 }
0x11d0   :  { %1779 = vmatpush.msra.mxu1 %v3502_v47 }
0x11d2   :  { %1780 = vmatpush.msra.mxu1 %v3508_v0 }
0x11d4   :  { %1781 = vmatpush.msra.mxu1 %v3514_v10 }
0x11d6   :  { %1782 = vmatpush.msra.mxu1 %v3520_v14 }
0x11d8   :  { %1783 = vmatpush.msra.mxu1 %v3526_v15 }
0x11da   :  { %1784 = vmatpush.msra.mxu1 %v3532_v16 }
0x11dc   :  { %1785 = vmatpush.msra.mxu1 %v3538_v25 }
0x11de   :  { %1786 = vmatpush.msra.mxu1 %v3544_v26 }
0x11e0   :  { %1859 = vmatpush.msrb.mxu1 %v3550_v12 }
0x11e2   :  { %1860 = vmatpush.msrb.mxu1 %v3556_v1 }
0x11e4   :  { %1861 = vmatpush.msrb.mxu1 %v3562_v3 }
0x11e6   :  { %1862 = vmatpush.msrb.mxu1 %v3607_v57 }
0x11e8   :  { %1863 = vmatpush.msrb.mxu1 %v3613_v59 }
0x11ea   :  { %1864 = vmatpush.msrb.mxu1 %v3619_v4 }
0x11ec   :  { %1865 = vmatpush.msrb.mxu1 %v3625_v7 }
0x11ee   :  { %1866 = vmatpush.msrb.mxu1 %v3631_v37 }
0x11f0   :  { %1867 = vmatpush.msrb.mxu1 %v3637_v20 }
0x11f2   :  { %1868 = vmatpush.msrb.mxu1 %v3643_v21 }
0x11f4   :  { %1869 = vmatpush.msrb.mxu1 %v3649_v22 }
0x11f6   :  { %1870 = vmatpush.msrb.mxu1 %v3655_v23 }
0x11f8   :  { %1871 = vmatpush.msrb.mxu1 %v3700_v33 }
0x11fa   :  { %1872 = vmatpush.msrb.mxu1 %v3706_v34 }
0x11fc   :  { %1873 = vmatpush.msrb.mxu1 %v3712_v35 }
0x11fe   :  { %1874 = vmatpush.msrb.mxu1 %v3718_v36 }
0x123c   :  { %v1604_v40 = vpop.f32.mrf.mxu1 }
0x123d   :  { %v3992_v51 = vadd.f32 %v3762_v53, %v1604_v40 }
0x123f   :  { %v1607_v55 = vmul.f32 0.05, %v3992_v51 }
0x1241   :  { %v1608_v43 = vadd.f32 %v1607_v55, %v3954_v50 }
0x1243   :  { %v1609_v27 = vmax.f32 %v1608_v43, 0.0 }
0x1245   :  { %1626 = vmatmul.f32.vlgmr.msra.gmra.mxu2 %v1609_v27 }
0x1246   :  { %1794 = vmatpush.msra.mxu2 %v3417_v38 }
0x1248   :  { %1795 = vmatpush.msra.mxu2 %v3423_v39 }
0x124a   :  { %1796 = vmatpush.msra.mxu2 %v3429_v28 }
0x124c   :  { %1797 = vmatpush.msra.mxu2 %v3435_v30 }
0x124d   :  { %1719 = vmatmul.f32.vlgmr.msrb.gmra.mxu2 %v1609_v27  ;;  %v4101_v27 = vld [vmem:[%s4186_s4] ss:$0 sm:$0xff]  ;;  %s2071_s4 = smov [#allocation5]  }
0x124e   :  { %1798 = vmatpush.msra.mxu2 %v3441_v31  ;;  %s1933_s29 = sshll.u32 %s2071_s4, 4  ;;  %s1934_s29 = int_to_ptr.vmem [resolvable:$true] %s1933_s29 }
0x1250   :  { %1799 = vmatpush.msra.mxu2 %v3447_v49 }
0x1252   :  { %1800 = vmatpush.msra.mxu2 %v3453_v61 }
0x1254   :  { %1801 = vmatpush.msra.mxu2 %v3459_v62 }
0x1256   :  { %1802 = vmatpush.msra.mxu2 %v3502_v47 }
0x1258   :  { %1803 = vmatpush.msra.mxu2 %v3508_v0 }
0x125a   :  { %1804 = vmatpush.msra.mxu2 %v3514_v10 }
0x125c   :  { %1805 = vmatpush.msra.mxu2 %v3520_v14 }
0x125e   :  { %1806 = vmatpush.msra.mxu2 %v3526_v15 }
0x1260   :  { %1807 = vmatpush.msra.mxu2 %v3532_v16 }
0x1262   :  { %1808 = vmatpush.msra.mxu2 %v3538_v25 }
0x1264   :  { %1809 = vmatpush.msra.mxu2 %v3544_v26 }
0x1266   :  { %1879 = vmatpush.msrb.mxu2 %v3550_v12 }
0x1268   :  { %1880 = vmatpush.msrb.mxu2 %v3556_v1 }
0x126a   :  { %1881 = vmatpush.msrb.mxu2 %v3562_v3 }
0x126c   :  { %1882 = vmatpush.msrb.mxu2 %v3607_v57 }
0x126e   :  { %1883 = vmatpush.msrb.mxu2 %v3613_v59 }
0x1270   :  { %1884 = vmatpush.msrb.mxu2 %v3619_v4 }
0x1272   :  { %1885 = vmatpush.msrb.mxu2 %v3625_v7 }
0x1274   :  { %1886 = vmatpush.msrb.mxu2 %v3631_v37 }
0x1276   :  { %1887 = vmatpush.msrb.mxu2 %v3637_v20 }
0x1278   :  { %1888 = vmatpush.msrb.mxu2 %v3643_v21 }
0x127a   :  { %1889 = vmatpush.msrb.mxu2 %v3649_v22 }
0x127c   :  { %1890 = vmatpush.msrb.mxu2 %v3655_v23 }
0x127e   :  { %1891 = vmatpush.msrb.mxu2 %v3700_v33 }
0x1280   :  { %1892 = vmatpush.msrb.mxu2 %v3706_v34 }
0x1282   :  { %1893 = vmatpush.msrb.mxu2 %v3712_v35 }
0x1284   :  { %1894 = vmatpush.msrb.mxu2 %v3718_v36 }
0x12c8   :  { %v1627_v56 = vpop.f32.mrf.mxu2 }
0x12c9   :  { %v1628_v54 = vadd.f32 %v3762_v53, %v1627_v56  ;;  %v249_v56 = vadd.f32 %v4101_v27, %v2641_v42  ;;  %v413_v42 = vadd.f32 %v4101_v27, %v2753_v2  ;;  %v985_v2 = vadd.f32 %v4101_v27, %v3410_v11 }
0x12cb   :  { %v1630_v44 = vmul.f32 0.05, %v1628_v54 }
0x12cd   :  { %v1631_v40 = vadd.f32 %v1630_v44, %v3954_v50  ;;  %v269_v44 = vadd.f32 %v4101_v27, %v2677_v48  ;;  %v637_v48 = vadd.f32 %v4101_v27, %v3144_v29  ;;  %v597_v29 = vadd.f32 %v4101_v27, %v3064_v63  ;;  %v4198_v63 = vld [vmem:[#allocation8_spill] sm:$0xff] }
0x12cf   :  { %v1632_v55 = vmax.f32 %v1631_v40, 0.0  ;;  %v291_v40 = vmul.f32 2.0, %v249_v56  ;;  %v4203_v56 = vld [vmem:[#allocation11_spill] sm:$0xff] }
0x12d1   :  { %1649 = vmatmul.f32.vlgmr.msra.gmra.mxu3 %v1632_v55 }
0x12d2   :  { %1817 = vmatpush.msra.mxu3 %v3417_v38  ;;  %v4064_v38 = vpop.f32.mrf.mxu3 }
0x12d4   :  { %1818 = vmatpush.msra.mxu3 %v3423_v39  ;;  %v1676_v39 = vmul.f32 2.0, %v1628_v54  ;;  %v433_v54 = vadd.f32 %v4101_v27, %v2832_v13  ;;  %v801_v13 = vadd.f32 %v4101_v27, %v3259_v32 }
0x12d6   :  { %1819 = vmatpush.msra.mxu3 %v3429_v28 }
0x12d8   :  { %1820 = vmatpush.msra.mxu3 %v3435_v30 }
0x12d9   :  { %1739 = vmatmul.f32.vlgmr.msrb.gmra.mxu3 %v1632_v55  ;;  %v475_v55 = vmul.f32 2.0, %v433_v54  ;;  %v1149_v54 = vadd.f32 %v4101_v27, %v4203_v56 }
0x12da   :  { %1821 = vmatpush.msra.mxu3 %v3441_v31  ;;  %v1677_v31 = vadd.f32 %v1676_v39, %v3992_v51  ;;  %v229_v39 = vadd.f32 %v4101_v27, %v2602_v6  ;;  %v821_v6 = vadd.f32 %v4101_v27, %v3295_v8  ;;  %v1169_v8 = vadd.f32 %v4101_v27, %v3721_v52 }
0x12dc   :  { %1822 = vmatpush.msra.mxu3 %v3447_v49 }
0x12de   :  { %1823 = vmatpush.msra.mxu3 %v3453_v61 }
0x12e0   :  { %1824 = vmatpush.msra.mxu3 %v3459_v62 }
0x12e2   :  { %1825 = vmatpush.msra.mxu3 %v3502_v47 }
0x12e4   :  { %1826 = vmatpush.msra.mxu3 %v3508_v0 }
0x12e6   :  { %1827 = vmatpush.msra.mxu3 %v3514_v10  ;;  %v4085_v10 = vpop.f32.mrf.mxu0 }
0x12e8   :  { %1828 = vmatpush.msra.mxu3 %v3520_v14 }
0x12ea   :  { %1829 = vmatpush.msra.mxu3 %v3526_v15 }
0x12ec   :  { %1830 = vmatpush.msra.mxu3 %v3532_v16 }
0x12ee   :  { %1831 = vmatpush.msra.mxu3 %v3538_v25 }
0x12f0   :  { %1832 = vmatpush.msra.mxu3 %v3544_v26 }
0x12f2   :  { %1900 = vmatpush.msrb.mxu3 %v3550_v12 }
0x12f4   :  { %1901 = vmatpush.msrb.mxu3 %v3556_v1 }
0x12f6   :  { %1902 = vmatpush.msrb.mxu3 %v3562_v3 }
0x12f8   :  { %1903 = vmatpush.msrb.mxu3 %v3607_v57 }
0x12fa   :  { %1904 = vmatpush.msrb.mxu3 %v3613_v59 }
0x12fc   :  { %1905 = vmatpush.msrb.mxu3 %v3619_v4 }
0x12fe   :  { %1906 = vmatpush.msrb.mxu3 %v3625_v7 }
0x1300   :  { %1907 = vmatpush.msrb.mxu3 %v3631_v37 }
0x1302   :  { %1908 = vmatpush.msrb.mxu3 %v3637_v20 }
0x1304   :  { %1909 = vmatpush.msrb.mxu3 %v3643_v21 }
0x1306   :  { %1910 = vmatpush.msrb.mxu3 %v3649_v22 }
0x1308   :  { %1911 = vmatpush.msrb.mxu3 %v3655_v23 }
0x130a   :  { %1912 = vmatpush.msrb.mxu3 %v3700_v33 }
0x130c   :  { %1913 = vmatpush.msrb.mxu3 %v3706_v34 }
0x130e   :  { %1914 = vmatpush.msrb.mxu3 %v3712_v35 }
0x1310   :  { %1915 = vmatpush.msrb.mxu3 %v3718_v36 }
0x1354   :  { %v1650_v28 = vpop.f32.mrf.mxu3 }
0x1355   :  { %v1651_v30 = vadd.f32 %v3762_v53, %v1650_v28  ;;  %v617_v28 = vadd.f32 %v4101_v27, %v3103_v41  ;;  %v473_v41 = vadd.f32 %v4101_v27, %v3005_v60  ;;  %v781_v60 = vadd.f32 %v4101_v27, %v3220_v5 }
0x1357   :  { %v1653_v49 = vmul.f32 0.1, %v1651_v30  ;;  %v1678_v61 = vmul.f32 2.0, %v1651_v30  ;;  %v293_v30 = vmul.f32 2.0, %v269_v44 }
0x1359   :  { %v1654_v62 = vadd.f32 %v1653_v49, %v3954_v50  ;;  %v1679_v47 = vadd.f32 %v1678_v61, %v1677_v31  ;;  %v289_v49 = vadd.f32 %v4101_v27, %v2714_v58  ;;  %v476_v61 = vadd.f32 %v475_v55, %v413_v42 }
0x135a   :  { %v1005_v58 = vadd.f32 %v4101_v27, %v3486_v19 }
0x135b   :  { %v1655_v0 = vmax.f32 %v1654_v62, 0.0  ;;  %v659_v62 = vmul.f32 2.0, %v617_v28 }
0x135d   :  { %1672 = vmatmul.f32.vlgmr.msrb.gmra.mxu0 %v1655_v0  ;;  %v660_v11 = vadd.f32 %v659_v62, %v597_v29 }
0x135e   :  { %1839 = vmatpush.msrb.mxu0 %v3550_v12 }
0x1360   :  { %1840 = vmatpush.msrb.mxu0 %v3556_v1  ;;  %v4089_v1 = vpop.f32.mrf.mxu1 }
0x1362   :  { %1841 = vmatpush.msrb.mxu0 %v3562_v3 }
0x1364   :  { %1842 = vmatpush.msrb.mxu0 %v3607_v57 }
0x1365   :  { %1759 = vmatmul.f32.vlgmr.msra.gmra.mxu0 %v1655_v0  ;;  %v843_v0 = vmul.f32 2.0, %v801_v13 }
0x1366   :  { %1843 = vmatpush.msrb.mxu0 %v3613_v59 }
0x1368   :  { %1844 = vmatpush.msrb.mxu0 %v3619_v4 }
0x136a   :  { %1845 = vmatpush.msrb.mxu0 %v3625_v7 }
0x136c   :  { %1846 = vmatpush.msrb.mxu0 %v3631_v37  ;;  %v4092_v37 = vpop.f32.mrf.mxu2 }
0x136e   :  { %1847 = vmatpush.msrb.mxu0 %v3637_v20 }
0x1370   :  { %1848 = vmatpush.msrb.mxu0 %v3643_v21 }
0x1372   :  { %1849 = vmatpush.msrb.mxu0 %v3649_v22 }
0x1374   :  { %1850 = vmatpush.msrb.mxu0 %v3655_v23 }
0x1376   :  { %1851 = vmatpush.msrb.mxu0 %v3700_v33 }
0x1378   :  { %1852 = vmatpush.msrb.mxu0 %v3706_v34  ;;  %v4095_v34 = vpop.f32.mrf.mxu3 }
0x137a   :  { %1853 = vmatpush.msrb.mxu0 %v3712_v35 }
0x137c   :  { %1854 = vmatpush.msrb.mxu0 %v3718_v36 }
0x13da   :  { %v1673_v14 = vpop.f32.mrf.mxu0 }
0x13db   :  { %v1674_v15 = vadd.f32 %v3762_v53, %v1673_v14  ;;  %v661_v14 = vmul.f32 2.0, %v637_v48 }
0x13dd   :  { %v1680_v16 = vadd.f32 %v1679_v47, %v1674_v15 }
0x13df   :  { %v1681_v25 = vmul.f32 0.016666668, %v1680_v16  ;;  %v845_v16 = vmul.f32 2.0, %v821_v6 }
0x13e1   :  { %v1682_v26 = vadd.f32 %v1681_v25, %v3954_v50 }
0x13e3   :  { %v1770_v12 = vmax.f32 %v1682_v26, 0.0 }
0x13e5   :  { %1787 = vmatmul.f32.vlgmr.msra.gmra.mxu1 %v1770_v12  ;;  %1855 = vmatmul.f32.vlgmr.msrb.gmra.mxu0 %v1770_v12  ;;  %v1027_v12 = vmul.f32 2.0, %v985_v2  ;;  %v1741_v2 = vadd.f32 %v4101_v27, %v4095_v34  ;;  %v1577_v34 = vadd.f32 %v4101_v27, %v4085_v10 }
0x1462   :  { %v1788_v3 = vpop.f32.mrf.mxu1 }
0x1463   :  { %v1789_v57 = vadd.f32 %v3762_v53, %v1788_v3  ;;  %v844_v3 = vadd.f32 %v843_v0, %v781_v60 }
0x1465   :  { %v1791_v59 = vmul.f32 0.05, %v1789_v57  ;;  %v841_v57 = vadd.f32 %v4101_v27, %v4198_v63 }
0x1467   :  { %v1792_v4 = vadd.f32 %v1791_v59, %v1682_v26  ;;  %v4199_v59 = vld [vmem:[#allocation12_spill] sm:$0xff] }
0x1468   :  { %v1189_v19 = vadd.f32 %v4101_v27, %v4199_v59 }
0x1469   :  { %v1793_v7 = vmax.f32 %v1792_v4, 0.0  ;;  %v4200_v4 = vld [vmem:[#allocation15_spill] sm:$0xff] }
0x146a   :  { %v1353_v52 = vadd.f32 %v4101_v27, %v4200_v4 }
0x146b   :  { %1810 = vmatmul.f32.vlgmr.msra.gmra.mxu2 %v1793_v7  ;;  %1875 = vmatmul.f32.vlgmr.msrb.gmra.mxu1 %v1793_v7  ;;  %v662_v7 = vadd.f32 %v661_v14, %v660_v11  ;;  %v1701_v11 = vadd.f32 %v4101_v27, %v4089_v1 }
0x146c   :  { %v1395_v55 = vmul.f32 2.0, %v1353_v52 }
0x14e8   :  { %v1876_v0 = vpop.f32.mrf.mxu1 }
0x14ee   :  { %v1811_v20 = vpop.f32.mrf.mxu2 }
0x14ef   :  { %v1812_v21 = vadd.f32 %v3762_v53, %v1811_v20  ;;  %v4201_v20 = vld [vmem:[#allocation9_spill] sm:$0xff] }
0x14f0   :  { %v965_v5 = vadd.f32 %v4101_v27, %v4201_v20 }
0x14f1   :  { %v1814_v22 = vmul.f32 0.05, %v1812_v21  ;;  %v1029_v21 = vmul.f32 2.0, %v1005_v58 }
0x14f3   :  { %v1815_v23 = vadd.f32 %v1814_v22, %v1682_v26  ;;  %v1211_v22 = vmul.f32 2.0, %v1169_v8 }
0x14f5   :  { %v1816_v33 = vmax.f32 %v1815_v23, 0.0  ;;  %v1212_v28 = vadd.f32 %v1211_v22, %v1149_v54 }
0x14f7   :  { %1833 = vmatmul.f32.vlgmr.msra.gmra.mxu3 %v1816_v33  ;;  %1895 = vmatmul.f32.vlgmr.msrb.gmra.mxu2 %v1816_v33  ;;  %v846_v33 = vadd.f32 %v845_v16, %v844_v3 }
0x157a   :  { %v1834_v35 = vpop.f32.mrf.mxu3 }
0x157b   :  { %v1835_v36 = vadd.f32 %v3762_v53, %v1834_v35  ;;  %v453_v53 = vadd.f32 %v4101_v27, %v2923_v24  ;;  %v292_v24 = vadd.f32 %v291_v40, %v229_v39  ;;  %v1537_v35 = vadd.f32 %v4101_v27, %v4028_v17 }
0x157c   :  { %v1213_v40 = vmul.f32 2.0, %v1189_v19  ;;  %v1721_v17 = vadd.f32 %v4101_v27, %v4092_v37  ;;  %v1393_v37 = vadd.f32 %v4101_v27, %v3950_v18  ;;  %v1877_v18 = vadd.f32 %v4101_v27, %v1876_v0 }
0x157d   :  { %v1837_v50 = vmul.f32 0.1, %v1835_v36  ;;  %v477_v31 = vmul.f32 2.0, %v453_v53  ;;  %v294_v47 = vadd.f32 %v293_v30, %v292_v24  ;;  %v847_v53 = vadd.f32 %v846_v33, %v841_v57  ;;  %v4204_v30 = vld [vmem:[#allocation13_spill] sm:$0xff] }
0x157e   :  { %v1209_v42 = vadd.f32 %v4101_v27, %v4204_v30  ;;  %v1579_v24 = vmul.f32 2.0, %v1537_v35  ;;  %v1763_v58 = vmul.f32 2.0, %v1721_v17 }
0x157f   :  { %v1838_v51 = vadd.f32 %v1837_v50, %v1682_v26  ;;  %v478_v32 = vadd.f32 %v477_v31, %v476_v61  ;;  %v295_v15 = vadd.f32 %v294_v47, %v289_v49  ;;  %v657_v26 = vadd.f32 %v4101_v27, %v3181_v9  ;;  %v4205_v31 = vld [vmem:[#allocation14_spill] sm:$0xff]  ;;  %v1760_v49 = vpop.f32.mrf.mxu0 }
0x1580   :  { %v1373_v9 = vadd.f32 %v4101_v27, %v3913_v45  ;;  %v1028_v50 = vadd.f32 %v1027_v12, %v965_v5  ;;  %v1557_v45 = vadd.f32 %v4101_v27, %v4064_v38  ;;  %v1333_v13 = vadd.f32 %v4101_v27, %v4205_v31  ;;  %v2017_v61 = vld [vmem:[#allocation2] sm:$0xff] }
0x1581   :  { %v1899_v43 = vmax.f32 %v1838_v51, 0.0  ;;  %v479_v25 = vadd.f32 %v478_v32, %v473_v41  ;;  %v296_v23 = vmul.f32 0.016666668, %v295_v15  ;;  %v663_v36 = vadd.f32 %v662_v7, %v657_v26  ;;  %v4202_v51 = vld [vmem:[#allocation10_spill] sm:$0xff] }
0x1582   :  { %v1030_v39 = vadd.f32 %v1029_v21, %v1028_v50  ;;  %v1397_v48 = vmul.f32 2.0, %v1373_v9  ;;  %v1214_v38 = vadd.f32 %v1213_v40, %v1212_v28  ;;  %v1396_v47 = vadd.f32 %v1395_v55, %v1333_v13 }
0x1583   :  { %1916 = vmatmul.f32.vlgmr.msrb.gmra.mxu3 %v1899_v43  ;;  %v1025_v43 = vadd.f32 %v4101_v27, %v4202_v51  ;;  %v480_v44 = vmul.f32 0.016666668, %v479_v25  ;;  %v297_v6 = vadd.f32 %v2017_v61, %v296_v23  ;;  %v664_v41 = vmul.f32 0.016666668, %v663_v36  ;;  %v1896_v25 = vpop.f32.mrf.mxu2 }
0x1584   :  { %v1517_v32 = vadd.f32 %v4101_v27, %v3989_v46  ;;  %v1581_v14 = vmul.f32 2.0, %v1557_v45  ;;  %v848_v8 = vmul.f32 0.016666668, %v847_v53  ;;  %v1215_v15 = vadd.f32 %v1214_v38, %v1209_v42 }
0x1585   :  { %v1031_v62 = vadd.f32 %v1030_v39, %v1025_v43  ;;  %v481_v29 = vadd.f32 %v480_v44, %v297_v6  ;;  %v1398_v60 = vadd.f32 %v1397_v48, %v1396_v47  ;;  %v1765_v26 = vmul.f32 2.0, %v1741_v2 }
0x1586   :  { %v1580_v16 = vadd.f32 %v1579_v24, %v1517_v32  ;;  %v1764_v57 = vadd.f32 %v1763_v58, %v1701_v11  ;;  %v1761_v59 = vadd.f32 %v4101_v27, %v1760_v49  ;;  %v1897_v19 = vadd.f32 %v4101_v27, %v1896_v25 }
0x1587   :  { %v665_v12 = vadd.f32 %v664_v41, %v481_v29  ;;  %v1032_v46 = vmul.f32 0.016666668, %v1031_v62  ;;  %v1399_v3 = vadd.f32 %v1398_v60, %v1393_v37  ;;  %v1856_v52 = vpop.f32.mrf.mxu0  ;;  %v1216_v7 = vmul.f32 0.016666668, %v1215_v15 }
0x1588   :  { %v1582_v63 = vadd.f32 %v1581_v14, %v1580_v16  ;;  %v1766_v10 = vadd.f32 %v1765_v26, %v1764_v57  ;;  %v1920_v5 = vmul.f32 2.0, %v1877_v18  ;;  %v1857_v23 = vadd.f32 %v4101_v27, %v1856_v52 }
0x1589   :  { %v849_v4 = vadd.f32 %v848_v8, %v665_v12  ;;  %v1400_v1 = vmul.f32 0.016666668, %v1399_v3  ;;  %v1922_v33 = vmul.f32 2.0, %v1897_v19 }
0x158a   :  { %v1583_v20 = vadd.f32 %v1582_v63, %v1577_v34  ;;  %v1767_v22 = vadd.f32 %v1766_v10, %v1761_v59  ;;  %v1921_v36 = vadd.f32 %v1920_v5, %v1857_v23 }
0x158b   :  { %v1033_v21 = vadd.f32 %v1032_v46, %v849_v4 }
0x158c   :  { %v1584_v35 = vmul.f32 0.016666668, %v1583_v20  ;;  %v1768_v43 = vmul.f32 0.016666668, %v1767_v22  ;;  %v1923_v56 = vadd.f32 %v1922_v33, %v1921_v36 }
0x158d   :  { %v1217_v9 = vadd.f32 %v1216_v7, %v1033_v21 }
0x158f   :  { %v1401_v51 = vadd.f32 %v1400_v1, %v1217_v9 }
0x1591   :  { %v1585_v44 = vadd.f32 %v1584_v35, %v1401_v51 }
0x1593   :  { %v1769_v40 = vadd.f32 %v1768_v43, %v1585_v44 }
0x1606   :  { %v1917_v50 = vpop.f32.mrf.mxu3 }
0x1607   :  { %v1918_v54 = vadd.f32 %v4101_v27, %v1917_v50 }
0x1609   :  { %v1924_v53 = vadd.f32 %v1923_v56, %v1918_v54 }
0x160b   :  { %v1925_v55 = vmul.f32 0.016666668, %v1924_v53 }
0x160d   :  { %v1926_v39 = vadd.f32 %v1925_v55, %v1769_v40 }
0x160f   :  { %1927 = vst.msk [vmem:[#allocation5] sm:$0xff] %vm90_vm0, %v1926_v39 }
0x1610   :  { %1938 = dma.vmem_to_hbm [thread:$0]  %s1934_s29, 128, %s1936_s9, [#allocation4]  }
0x1611   :  { %2068 = dma.done.wait [#allocation4], 128  }
0x1612   :  { %2069 = vsyncadd [#allocation4], 4294967168 }
0x1613   :  { %1943 = vsyncpa [#allocation3], 1 }
0x1614   :  { %1944 = vsyncpa [#allocation4], 1 }

</bundles_post_ra>
